<compile_context>
chip_gen: v6e
topology: v6e:2x2x1
jax: 0.10.0
libtpu: 0.0.40
codegen_flags: <defaults>
</compile_context>

<pallas_src>
import functools

import numpy as np
import jax
import jax.numpy as jnp
from jax import lax
from jax.experimental import pallas as pl
from jax.experimental.pallas import tpu as pltpu


def _projectnet_kernel(c_ref, Q_ref, c0_ref, MMwt_ref, MMb_ref, T_ref, S_ref,
                       gu_ref, go_ref, out_ref, *,
                       dim, rounds, rho0, xrho0, factor, tol,
                       max_proj_iters, dykstra_unroll):
    f32 = jnp.float32
    c = c_ref[...]          # (Bb, n_pad)       costs, zero beyond dim
    Q = Q_ref[...]          # (n_pad, n_pad)    I - A^T AA^T (zero-padded)
    MMwt = MMwt_ref[...]    # (n_pad, dd_pad)   Linear(dim, dim*dim).weight^T
    T = T_ref[...]          # (n_pad, dd_pad)   T[j, i*dim+j] = 1 (tile x dim times)
    S = S_ref[...]          # (dd_pad, n_pad)   S[i*dim+j, i] = 1 (segment-sum over j)

    Bb, n_pad = c.shape
    dd_pad = MMwt.shape[1]

    # ---- hoisted broadcasts: materialized exactly once for the whole kernel ----
    c0b = jnp.broadcast_to(c0_ref[...], (Bb, n_pad))
    neg_gub = jnp.broadcast_to(-gu_ref[...], (Bb, n_pad))
    gob = jnp.broadcast_to(go_ref[...], (Bb, n_pad))
    MMbb = jnp.broadcast_to(MMb_ref[...], (Bb, dd_pad))

    lane = lax.broadcasted_iota(jnp.int32, (Bb, n_pad), 1)
    in_dim = lane < dim

    def dykstra(x0):
        # Dykstra projection onto {A x = b} ∩ {x >= 0}.
        # The scalar while-condition (vreg->sreg sync + branch) is evaluated once
        # per `dykstra_unroll` iterations; the first iterate with err < tol is
        # tracked with a select so the returned y matches the reference exactly.
        # The PyTorch loop is unbounded; here it is additionally bounded by
        # max_proj_iters (returns the last iterate if it never converges).
        z = jnp.zeros_like(x0)

        def cond(carry):
            i, _, _, _, _, conv = carry
            return jnp.logical_and(jnp.logical_not(conv), i < max_proj_iters)

        def body(carry):
            i, xx, p, q, y_first, conv = carry
            for _ in range(dykstra_unroll):      # straight-line unrolled block
                xp = xx + p
                # folded:  xp - (xp @ A.T - b) @ AA.T  ==  xp @ Q + c0
                y = jnp.dot(xp, Q, preferred_element_type=f32) + c0b
                p = xp - y
                yq = y + q
                xx = jnp.maximum(yq, 0.0)
                q = yq - xx
                # first-converged tracking;  max(relu(-y)) < tol <=> max(-y) < tol
                y_first = jnp.where(conv, y_first, y)
                conv = jnp.logical_or(conv, jnp.max(-y) < tol)
            return i + dykstra_unroll, xx, p, q, y_first, conv

        init = (jnp.asarray(0, jnp.int32), x0, z, z, x0, jnp.asarray(False))
        return lax.while_loop(cond, body, init)[4]

    x = jnp.zeros_like(c)
    rho = float(rho0)
    xrho = float(xrho0)

    for _ in range(rounds):
        # ---- step_learn(x, c, xrho, rho), at full (padded) lane width ----
        diff = x - c
        grad = neg_gub * (c >= x).astype(f32) + gob * (x >= c).astype(f32)
        # TODO(synk): large-dim regime (dim ~ 256): tile the dd_pad axis with an
        # inner "arbitrary" grid axis + VMEM f32 accumulator for s, replace T by
        # lane replication of x, cast MMwt/T/S to bf16 once validated against the
        # tie comparisons above, and single-buffer the invariant operands
        # (memory_space=VMEM / pl.Buffered(1)); otherwise MMwt/T/S alone exceed
        # v7x's 64 MiB VMEM.
        Mflat = jnp.dot(diff, MMwt, preferred_element_type=f32) + MMbb  # (Bb, dd_pad)
        xt = jnp.dot(x, T, preferred_element_type=f32)                  # x tiled dim times
        s = jnp.dot(Mflat * xt, S, preferred_element_type=f32)          # == bmm(M, x)
        x = x - (xrho * s + rho * grad + rho * diff)
        # ---- polytope projection; lane mask replaces the y[:, :dim] slice ----
        y = dykstra(x)
        x = jnp.where(in_dim, y, 0.0)
        rho *= factor
        xrho *= factor

    out_ref[...] = x


def projectnet_forward(c, A, b, MMw, MMb, gamma_under, gamma_over, *,
                       dim, rounds=3, rho=0.1, xrho=0.1, factor=1.0,
                       tol=1e-3, max_proj_iters=300, dykstra_unroll=8):
    c = jnp.asarray(c, jnp.float32)
    A_np = np.asarray(A, np.float32)
    Bsz = c.shape[0]
    m, n_full = A_np.shape
    dd = dim * dim

    def _pad128(n):
        return max(128, ((n + 127) // 128) * 128)

    n_pad = _pad128(n_full)
    dd_pad = _pad128(dd)

    # ---- batch blocking: "parallel" grid axis over batch blocks ----
    # Small batches: pad to a sublane multiple by replicating the last row, so the
    # Dykstra convergence max() is identical to the reference.  Large batches are
    # split into 256-row blocks (fills the MXU; convergence is then per-block).
    if Bsz <= 256:
        block_b = ((Bsz + 7) // 8) * 8
    else:
        block_b = 256
    B_pad = ((Bsz + block_b - 1) // block_b) * block_b
    n_blocks = B_pad // block_b

    # ---- host-side glue (mirrors ProjectNet.__init__), folded + zero-padded ----
    AA = A_np.T @ np.linalg.inv(A_np @ A_np.T)                     # (n_full, m)
    Q = np.zeros((n_pad, n_pad), np.float32)
    Q[:n_full, :n_full] = np.eye(n_full, dtype=np.float32) - A_np.T @ AA.T
    c0 = np.zeros((1, n_pad), np.float32)
    c0[:, :n_full] = np.asarray(b, np.float32).reshape(1, m) @ AA.T

    MMwt = np.zeros((n_pad, dd_pad), np.float32)
    MMwt[:dim, :dd] = np.asarray(MMw, np.float32).T                # Linear weight^T
    MMb_p = np.zeros((1, dd_pad), np.float32)
    MMb_p[:, :dd] = np.asarray(MMb, np.float32).reshape(1, dd)

    # constant tile / segment-sum matrices for the bmm -> matmul rewrite
    T = np.zeros((n_pad, dd_pad), np.float32)
    S = np.zeros((dd_pad, n_pad), np.float32)
    jj = np.arange(dim)
    for i in range(dim):
        T[jj, i * dim + jj] = 1.0
        S[i * dim + jj, i] = 1.0

    gu = np.zeros((1, n_pad), np.float32)
    gu[:, :dim] = np.asarray(gamma_under, np.float32).reshape(1, dim)
    go = np.zeros((1, n_pad), np.float32)
    go[:, :dim] = np.asarray(gamma_over, np.float32).reshape(1, dim)

    c_p = jnp.zeros((B_pad, n_pad), jnp.float32)
    c_p = c_p.at[:Bsz, :dim].set(c)
    if B_pad > Bsz:
        c_p = c_p.at[Bsz:, :].set(c_p[Bsz - 1, :])   # replicate last row (see above)

    # ---- resident VMEM footprint -> scoped limit + cost estimate ----
    const_bytes = 4 * (Q.size + c0.size + MMwt.size + MMb_p.size + T.size +
                       S.size + gu.size + go.size)
    io_bytes = 4 * 2 * 2 * block_b * n_pad          # c + out, double-buffered
    vmem_limit = int(min(max(2 * (const_bytes + io_bytes) + (4 << 20), 32 << 20),
                         48 << 20))                 # stay under v7x's 64 MiB

    step_flops = 2 * block_b * n_pad * dd_pad * 2 + 2 * block_b * dd_pad * n_pad
    proj_flops = max_proj_iters * 2 * block_b * n_pad * n_pad
    cost = pl.CostEstimate(
        flops=int(n_blocks * rounds * (step_flops + proj_flops)),
        transcendentals=0,
        bytes_accessed=int(const_bytes + 4 * 2 * B_pad * n_pad))

    kern = functools.partial(_projectnet_kernel, dim=dim, rounds=rounds,
                             rho0=rho, xrho0=xrho, factor=factor, tol=tol,
                             max_proj_iters=max_proj_iters,
                             dykstra_unroll=dykstra_unroll)

    def fs(shape):
        nd = len(shape)
        return pl.BlockSpec(shape, lambda i, _nd=nd: (0,) * _nd)

    out = pl.pallas_call(
        kern,
        out_shape=jax.ShapeDtypeStruct((B_pad, n_pad), jnp.float32),
        grid=(n_blocks,),
        in_specs=[pl.BlockSpec((block_b, n_pad), lambda i: (i, 0)),   # c (batch-blocked)
                  fs((n_pad, n_pad)), fs((1, n_pad)),                 # Q, c0
                  fs((n_pad, dd_pad)), fs((1, dd_pad)),               # MMwt, MMb
                  fs((n_pad, dd_pad)), fs((dd_pad, n_pad)),           # T, S
                  fs((1, n_pad)), fs((1, n_pad))],                    # gu, go
        out_specs=pl.BlockSpec((block_b, n_pad), lambda i: (i, 0)),
        compiler_params=pltpu.CompilerParams(
            dimension_semantics=("parallel",),
            vmem_limit_bytes=vmem_limit),
        cost_estimate=cost,
    )(c_p, jnp.asarray(Q), jnp.asarray(c0), jnp.asarray(MMwt),
      jnp.asarray(MMb_p), jnp.asarray(T), jnp.asarray(S),
      jnp.asarray(gu), jnp.asarray(go))
    return out[:Bsz, :dim]


def reference_forward_np(c, A, b, MMw, MMb, gu, go, *, dim, rounds, rho, xrho,
                         factor, tol, max_proj_iters):
    """Pure-numpy mirror of the PyTorch forward (learnable=True path, unfolded)."""
    c = np.asarray(c, np.float32)
    A = np.asarray(A, np.float32)
    b = np.asarray(b, np.float32).reshape(1, -1)
    AAt = (A.T @ np.linalg.inv(A @ A.T)).T
    MMwt = np.asarray(MMw, np.float32).T
    MMb = np.asarray(MMb, np.float32).reshape(1, -1)
    gu = np.asarray(gu, np.float32).reshape(1, -1)
    go = np.asarray(go, np.float32).reshape(1, -1)
    Bsz, n_full = c.shape[0], A.shape[1]

    def project(xp):
        return xp - (xp @ A.T - b) @ AAt

    x = np.zeros_like(c)
    for _ in range(rounds):
        diff = x - c
        grad = -gu * (c >= x) + go * (x >= c)
        Mflat = diff @ MMwt + MMb
        M = Mflat.reshape(Bsz, dim, dim)
        s = np.einsum('bij,bj->bi', M, x)
        x = x - (xrho * s + rho * grad + rho * diff)
        xx = np.concatenate(
            [x, np.zeros((Bsz, n_full - dim), np.float32)], axis=1)
        p = np.zeros_like(xx)
        q = np.zeros_like(xx)
        y = xx
        for _ in range(max_proj_iters):
            y = project(xx + p)
            p = xx + p - y
            xx_new = np.maximum(y + q, 0.0)
            q = y + q - xx_new
            xx = xx_new
            if np.max(np.maximum(-y, 0.0)) < tol:
                break
        x = y[:, :dim].astype(np.float32)
        rho *= factor
        xrho *= factor
    return x


if __name__ == "__main__":
    key = jax.random.PRNGKey(0)
    kc, kA, kf, kw, kb, kg1, kg2 = jax.random.split(key, 7)

    B, DIM, M, NFULL = 8, 16, 8, 24          # small shapes; A has extra slack cols
    c = jax.random.normal(kc, (B, DIM), jnp.float32)
    A = jax.random.normal(kA, (M, NFULL), jnp.float32)
    x_feas = jnp.abs(jax.random.normal(kf, (NFULL,), jnp.float32)) + 0.1
    b = A @ x_feas                            # ensures {Ax=b, x>=0} is nonempty
    MMw = 0.05 * jax.random.normal(kw, (DIM * DIM, DIM), jnp.float32)   # Linear(dim, dim*dim)
    MMb = 0.05 * jax.random.normal(kb, (DIM * DIM,), jnp.float32)
    gamma_under = 0.1 + jnp.abs(jax.random.normal(kg1, (DIM,), jnp.float32))
    gamma_over = 0.1 + jnp.abs(jax.random.normal(kg2, (DIM,), jnp.float32))

    out = projectnet_forward(c, A, b, MMw, MMb, gamma_under, gamma_over,
                             dim=DIM, rounds=3, rho=0.1, xrho=0.1,
                             factor=1.0, tol=1e-3, max_proj_iters=300,
                             dykstra_unroll=8)
    out = jax.block_until_ready(out)

    ref = reference_forward_np(np.asarray(c), np.asarray(A), np.asarray(b),
                               np.asarray(MMw), np.asarray(MMb),
                               np.asarray(gamma_under), np.asarray(gamma_over),
                               dim=DIM, rounds=3, rho=0.1, xrho=0.1,
                               factor=1.0, tol=1e-3, max_proj_iters=300)

    out_np = np.asarray(out)
    assert out_np.shape == (B, DIM)
    assert np.all(np.isfinite(out_np))
    assert np.allclose(out_np, ref, atol=2e-2, rtol=2e-2), \
        float(np.max(np.abs(out_np - ref)))
    print("KERNEL_OK")
</pallas_src>

<mosaic_0001>
module attributes {stable_mosaic.version = 11 : i64} {
  func.func @_projectnet_kernel(%arg0: i32, %arg1: memref<8x128xf32, #tpu.memory_space<vmem>>, %arg2: memref<128x128xf32, #tpu.memory_space<vmem>>, %arg3: memref<1x128xf32, #tpu.memory_space<vmem>>, %arg4: memref<128x256xf32, #tpu.memory_space<vmem>>, %arg5: memref<1x256xf32, #tpu.memory_space<vmem>>, %arg6: memref<128x256xf32, #tpu.memory_space<vmem>>, %arg7: memref<256x128xf32, #tpu.memory_space<vmem>>, %arg8: memref<1x128xf32, #tpu.memory_space<vmem>>, %arg9: memref<1x128xf32, #tpu.memory_space<vmem>>, %arg10: memref<8x128xf32, #tpu.memory_space<vmem>>) attributes {dimension_semantics = [#tpu.dimension_semantics<parallel>], iteration_bounds = array<i64: 1>, scalar_prefetch = 0 : i64, scratch_operands = 0 : i64, tpu.core_type = #tpu.core_type<tc>, window_params = [{transform_indices = @transform_0, window_bounds = array<i64: 8, 128>}, {pipeline_mode = #tpu.pipeline_mode<synchronous>, transform_indices = @transform_1, window_bounds = array<i64: 128, 128>}, {pipeline_mode = #tpu.pipeline_mode<synchronous>, transform_indices = @transform_2, window_bounds = array<i64: 1, 128>}, {pipeline_mode = #tpu.pipeline_mode<synchronous>, transform_indices = @transform_3, window_bounds = array<i64: 128, 256>}, {pipeline_mode = #tpu.pipeline_mode<synchronous>, transform_indices = @transform_4, window_bounds = array<i64: 1, 256>}, {pipeline_mode = #tpu.pipeline_mode<synchronous>, transform_indices = @transform_5, window_bounds = array<i64: 128, 256>}, {pipeline_mode = #tpu.pipeline_mode<synchronous>, transform_indices = @transform_6, window_bounds = array<i64: 256, 128>}, {pipeline_mode = #tpu.pipeline_mode<synchronous>, transform_indices = @transform_7, window_bounds = array<i64: 1, 128>}, {pipeline_mode = #tpu.pipeline_mode<synchronous>, transform_indices = @transform_8, window_bounds = array<i64: 1, 128>}, {transform_indices = @transform_9, window_bounds = array<i64: 8, 128>}]} {
    %c0 = arith.constant 0 : index
    %c0_0 = arith.constant 0 : index
    %0 = vector.load %arg1[%c0, %c0_0] : memref<8x128xf32, #tpu.memory_space<vmem>>, vector<8x128xf32>
    %c0_1 = arith.constant 0 : index
    %c0_2 = arith.constant 0 : index
    %1 = vector.load %arg2[%c0_1, %c0_2] : memref<128x128xf32, #tpu.memory_space<vmem>>, vector<128x128xf32>
    %c0_3 = arith.constant 0 : index
    %c0_4 = arith.constant 0 : index
    %2 = vector.load %arg4[%c0_3, %c0_4] : memref<128x256xf32, #tpu.memory_space<vmem>>, vector<128x256xf32>
    %c0_5 = arith.constant 0 : index
    %c0_6 = arith.constant 0 : index
    %3 = vector.load %arg6[%c0_5, %c0_6] : memref<128x256xf32, #tpu.memory_space<vmem>>, vector<128x256xf32>
    %c0_7 = arith.constant 0 : index
    %c0_8 = arith.constant 0 : index
    %4 = vector.load %arg7[%c0_7, %c0_8] : memref<256x128xf32, #tpu.memory_space<vmem>>, vector<256x128xf32>
    %c0_9 = arith.constant 0 : index
    %c0_10 = arith.constant 0 : index
    %5 = vector.load %arg3[%c0_9, %c0_10] : memref<1x128xf32, #tpu.memory_space<vmem>>, vector<1x128xf32>
    %6 = vector.shape_cast %5 : vector<1x128xf32> to vector<1x128xf32>
    %7 = vector.broadcast %6 : vector<1x128xf32> to vector<8x128xf32>
    %c0_11 = arith.constant 0 : index
    %c0_12 = arith.constant 0 : index
    %8 = vector.load %arg8[%c0_11, %c0_12] : memref<1x128xf32, #tpu.memory_space<vmem>>, vector<1x128xf32>
    %cst = arith.constant 0.000000e+00 : f32
    %9 = vector.broadcast %cst : f32 to vector<1x128xf32>
    %10 = arith.subf %9, %8 : vector<1x128xf32>
    %11 = vector.shape_cast %10 : vector<1x128xf32> to vector<1x128xf32>
    %12 = vector.broadcast %11 : vector<1x128xf32> to vector<8x128xf32>
    %c0_13 = arith.constant 0 : index
    %c0_14 = arith.constant 0 : index
    %13 = vector.load %arg9[%c0_13, %c0_14] : memref<1x128xf32, #tpu.memory_space<vmem>>, vector<1x128xf32>
    %14 = vector.shape_cast %13 : vector<1x128xf32> to vector<1x128xf32>
    %15 = vector.broadcast %14 : vector<1x128xf32> to vector<8x128xf32>
    %c0_15 = arith.constant 0 : index
    %c0_16 = arith.constant 0 : index
    %16 = vector.load %arg5[%c0_15, %c0_16] : memref<1x256xf32, #tpu.memory_space<vmem>>, vector<1x256xf32>
    %17 = vector.shape_cast %16 : vector<1x256xf32> to vector<1x256xf32>
    %18 = vector.broadcast %17 : vector<1x256xf32> to vector<8x256xf32>
    %19 = tpu.iota {dimensions = array<i32: 1>} : vector<8x128xi32>
    %c16_i32 = arith.constant 16 : i32
    %20 = vector.broadcast %c16_i32 : i32 to vector<8x128xi32>
    %21 = arith.cmpi slt, %19, %20 : vector<8x128xi32>
    %cst_17 = arith.constant 0.000000e+00 : f32
    %22 = vector.broadcast %cst_17 : f32 to vector<8x128xf32>
    %23 = arith.subf %22, %0 : vector<8x128xf32>
    %24 = arith.cmpf oge, %0, %22 : vector<8x128xf32>
    %25 = arith.extui %24 : vector<8x128xi1> to vector<8x128xi32>
    %26 = arith.sitofp %25 : vector<8x128xi32> to vector<8x128xf32>
    %27 = arith.mulf %12, %26 : vector<8x128xf32>
    %28 = arith.cmpf oge, %22, %0 : vector<8x128xf32>
    %29 = arith.extui %28 : vector<8x128xi1> to vector<8x128xi32>
    %30 = arith.sitofp %29 : vector<8x128xi32> to vector<8x128xf32>
    %31 = arith.mulf %15, %30 : vector<8x128xf32>
    %32 = arith.addf %27, %31 : vector<8x128xf32>
    %cst_18 = arith.constant dense<0.000000e+00> : vector<8x256xf32>
    %33 = tpu.matmul %23, %2, %cst_18 {dimension_numbers = #tpu.dot_dimension_numbers<[1], [0], [0], [1], [0, 0, 1, 1], [], []>} : vector<8x128xf32>, vector<128x256xf32>, vector<8x256xf32> -> vector<8x256xf32>
    %34 = arith.addf %33, %18 : vector<8x256xf32>
    %cst_19 = arith.constant dense<0.000000e+00> : vector<8x256xf32>
    %35 = tpu.matmul %22, %3, %cst_19 {dimension_numbers = #tpu.dot_dimension_numbers<[1], [0], [0], [1], [0, 0, 1, 1], [], []>} : vector<8x128xf32>, vector<128x256xf32>, vector<8x256xf32> -> vector<8x256xf32>
    %36 = arith.mulf %34, %35 : vector<8x256xf32>
    %cst_20 = arith.constant dense<0.000000e+00> : vector<8x128xf32>
    %37 = tpu.matmul %36, %4, %cst_20 {dimension_numbers = #tpu.dot_dimension_numbers<[1], [0], [0], [1], [0, 0, 1, 1], [], []>} : vector<8x256xf32>, vector<256x128xf32>, vector<8x128xf32> -> vector<8x128xf32>
    %cst_21 = arith.constant 1.000000e-01 : f32
    %38 = vector.broadcast %cst_21 : f32 to vector<8x128xf32>
    %39 = arith.mulf %38, %37 : vector<8x128xf32>
    %cst_22 = arith.constant 1.000000e-01 : f32
    %40 = vector.broadcast %cst_22 : f32 to vector<8x128xf32>
    %41 = arith.mulf %40, %32 : vector<8x128xf32>
    %42 = arith.addf %39, %41 : vector<8x128xf32>
    %cst_23 = arith.constant 1.000000e-01 : f32
    %43 = vector.broadcast %cst_23 : f32 to vector<8x128xf32>
    %44 = arith.mulf %43, %23 : vector<8x128xf32>
    %45 = arith.addf %42, %44 : vector<8x128xf32>
    %46 = arith.subf %22, %45 : vector<8x128xf32>
    %cst_24 = arith.constant 0.000000e+00 : f32
    %47 = vector.broadcast %cst_24 : f32 to vector<8x128xf32>
    %c0_i32 = arith.constant 0 : i32
    %false = arith.constant false
    %48:6 = scf.while (%arg11 = %c0_i32, %arg12 = %46, %arg13 = %47, %arg14 = %47, %arg15 = %46, %arg16 = %false) : (i32, vector<8x128xf32>, vector<8x128xf32>, vector<8x128xf32>, vector<8x128xf32>, i1) -> (i32, vector<8x128xf32>, vector<8x128xf32>, vector<8x128xf32>, vector<8x128xf32>, i1) {
      %true = arith.constant true
      %108 = arith.xori %arg16, %true : i1
      %c300_i32 = arith.constant 300 : i32
      %109 = arith.cmpi slt, %arg11, %c300_i32 : i32
      %110 = arith.andi %108, %109 : i1
      scf.condition(%110) %arg11, %arg12, %arg13, %arg14, %arg15, %arg16 : i32, vector<8x128xf32>, vector<8x128xf32>, vector<8x128xf32>, vector<8x128xf32>, i1
    } do {
    ^bb0(%arg11: i32, %arg12: vector<8x128xf32>, %arg13: vector<8x128xf32>, %arg14: vector<8x128xf32>, %arg15: vector<8x128xf32>, %arg16: i1):
      %108 = arith.addf %arg12, %arg13 : vector<8x128xf32>
      %cst_48 = arith.constant dense<0.000000e+00> : vector<8x128xf32>
      %109 = tpu.matmul %108, %1, %cst_48 {dimension_numbers = #tpu.dot_dimension_numbers<[1], [0], [0], [1], [0, 0, 1, 1], [], []>} : vector<8x128xf32>, vector<128x128xf32>, vector<8x128xf32> -> vector<8x128xf32>
      %110 = arith.addf %109, %7 : vector<8x128xf32>
      %111 = arith.subf %108, %110 : vector<8x128xf32>
      %112 = arith.addf %110, %arg14 : vector<8x128xf32>
      %cst_49 = arith.constant 0.000000e+00 : f32
      %113 = vector.broadcast %cst_49 : f32 to vector<8x128xf32>
      %114 = arith.maximumf %112, %113 : vector<8x128xf32>
      %115 = arith.subf %112, %114 : vector<8x128xf32>
      %116 = arith.select %arg16, %arg15, %110 : vector<8x128xf32>
      %cst_50 = arith.constant 0.000000e+00 : f32
      %117 = vector.broadcast %cst_50 : f32 to vector<8x128xf32>
      %118 = arith.subf %117, %110 : vector<8x128xf32>
      %119 = vector.shape_cast %118 : vector<8x128xf32> to vector<1x8x128xf32>
      %cst_51 = arith.constant dense<0xFF800000> : vector<1xf32>
      %120 = vector.multi_reduction <maximumf>, %119, %cst_51 [1, 2] : vector<1x8x128xf32> to vector<1xf32>
      %121 = vector.shape_cast %120 : vector<1xf32> to vector<1x1x1xf32>
      %122 = vector.extract %121[0, 0, 0] : f32 from vector<1x1x1xf32>
      %cst_52 = arith.constant 1.000000e-03 : f32
      %123 = arith.cmpf olt, %122, %cst_52 : f32
      %124 = arith.ori %arg16, %123 : i1
      %125 = arith.addf %114, %111 : vector<8x128xf32>
      %cst_53 = arith.constant dense<0.000000e+00> : vector<8x128xf32>
      %126 = tpu.matmul %125, %1, %cst_53 {dimension_numbers = #tpu.dot_dimension_numbers<[1], [0], [0], [1], [0, 0, 1, 1], [], []>} : vector<8x128xf32>, vector<128x128xf32>, vector<8x128xf32> -> vector<8x128xf32>
      %127 = arith.addf %126, %7 : vector<8x128xf32>
      %128 = arith.subf %125, %127 : vector<8x128xf32>
      %129 = arith.addf %127, %115 : vector<8x128xf32>
      %cst_54 = arith.constant 0.000000e+00 : f32
      %130 = vector.broadcast %cst_54 : f32 to vector<8x128xf32>
      %131 = arith.maximumf %129, %130 : vector<8x128xf32>
      %132 = arith.subf %129, %131 : vector<8x128xf32>
      %133 = arith.select %124, %116, %127 : vector<8x128xf32>
      %cst_55 = arith.constant 0.000000e+00 : f32
      %134 = vector.broadcast %cst_55 : f32 to vector<8x128xf32>
      %135 = arith.subf %134, %127 : vector<8x128xf32>
      %136 = vector.shape_cast %135 : vector<8x128xf32> to vector<1x8x128xf32>
      %cst_56 = arith.constant dense<0xFF800000> : vector<1xf32>
      %137 = vector.multi_reduction <maximumf>, %136, %cst_56 [1, 2] : vector<1x8x128xf32> to vector<1xf32>
      %138 = vector.shape_cast %137 : vector<1xf32> to vector<1x1x1xf32>
      %139 = vector.extract %138[0, 0, 0] : f32 from vector<1x1x1xf32>
      %cst_57 = arith.constant 1.000000e-03 : f32
      %140 = arith.cmpf olt, %139, %cst_57 : f32
      %141 = arith.ori %124, %140 : i1
      %142 = arith.addf %131, %128 : vector<8x128xf32>
      %cst_58 = arith.constant dense<0.000000e+00> : vector<8x128xf32>
      %143 = tpu.matmul %142, %1, %cst_58 {dimension_numbers = #tpu.dot_dimension_numbers<[1], [0], [0], [1], [0, 0, 1, 1], [], []>} : vector<8x128xf32>, vector<128x128xf32>, vector<8x128xf32> -> vector<8x128xf32>
      %144 = arith.addf %143, %7 : vector<8x128xf32>
      %145 = arith.subf %142, %144 : vector<8x128xf32>
      %146 = arith.addf %144, %132 : vector<8x128xf32>
      %cst_59 = arith.constant 0.000000e+00 : f32
      %147 = vector.broadcast %cst_59 : f32 to vector<8x128xf32>
      %148 = arith.maximumf %146, %147 : vector<8x128xf32>
      %149 = arith.subf %146, %148 : vector<8x128xf32>
      %150 = arith.select %141, %133, %144 : vector<8x128xf32>
      %cst_60 = arith.constant 0.000000e+00 : f32
      %151 = vector.broadcast %cst_60 : f32 to vector<8x128xf32>
      %152 = arith.subf %151, %144 : vector<8x128xf32>
      %153 = vector.shape_cast %152 : vector<8x128xf32> to vector<1x8x128xf32>
      %cst_61 = arith.constant dense<0xFF800000> : vector<1xf32>
      %154 = vector.multi_reduction <maximumf>, %153, %cst_61 [1, 2] : vector<1x8x128xf32> to vector<1xf32>
      %155 = vector.shape_cast %154 : vector<1xf32> to vector<1x1x1xf32>
      %156 = vector.extract %155[0, 0, 0] : f32 from vector<1x1x1xf32>
      %cst_62 = arith.constant 1.000000e-03 : f32
      %157 = arith.cmpf olt, %156, %cst_62 : f32
      %158 = arith.ori %141, %157 : i1
      %159 = arith.addf %148, %145 : vector<8x128xf32>
      %cst_63 = arith.constant dense<0.000000e+00> : vector<8x128xf32>
      %160 = tpu.matmul %159, %1, %cst_63 {dimension_numbers = #tpu.dot_dimension_numbers<[1], [0], [0], [1], [0, 0, 1, 1], [], []>} : vector<8x128xf32>, vector<128x128xf32>, vector<8x128xf32> -> vector<8x128xf32>
      %161 = arith.addf %160, %7 : vector<8x128xf32>
      %162 = arith.subf %159, %161 : vector<8x128xf32>
      %163 = arith.addf %161, %149 : vector<8x128xf32>
      %cst_64 = arith.constant 0.000000e+00 : f32
      %164 = vector.broadcast %cst_64 : f32 to vector<8x128xf32>
      %165 = arith.maximumf %163, %164 : vector<8x128xf32>
      %166 = arith.subf %163, %165 : vector<8x128xf32>
      %167 = arith.select %158, %150, %161 : vector<8x128xf32>
      %cst_65 = arith.constant 0.000000e+00 : f32
      %168 = vector.broadcast %cst_65 : f32 to vector<8x128xf32>
      %169 = arith.subf %168, %161 : vector<8x128xf32>
      %170 = vector.shape_cast %169 : vector<8x128xf32> to vector<1x8x128xf32>
      %cst_66 = arith.constant dense<0xFF800000> : vector<1xf32>
      %171 = vector.multi_reduction <maximumf>, %170, %cst_66 [1, 2] : vector<1x8x128xf32> to vector<1xf32>
      %172 = vector.shape_cast %171 : vector<1xf32> to vector<1x1x1xf32>
      %173 = vector.extract %172[0, 0, 0] : f32 from vector<1x1x1xf32>
      %cst_67 = arith.constant 1.000000e-03 : f32
      %174 = arith.cmpf olt, %173, %cst_67 : f32
      %175 = arith.ori %158, %174 : i1
      %176 = arith.addf %165, %162 : vector<8x128xf32>
      %cst_68 = arith.constant dense<0.000000e+00> : vector<8x128xf32>
      %177 = tpu.matmul %176, %1, %cst_68 {dimension_numbers = #tpu.dot_dimension_numbers<[1], [0], [0], [1], [0, 0, 1, 1], [], []>} : vector<8x128xf32>, vector<128x128xf32>, vector<8x128xf32> -> vector<8x128xf32>
      %178 = arith.addf %177, %7 : vector<8x128xf32>
      %179 = arith.subf %176, %178 : vector<8x128xf32>
      %180 = arith.addf %178, %166 : vector<8x128xf32>
      %cst_69 = arith.constant 0.000000e+00 : f32
      %181 = vector.broadcast %cst_69 : f32 to vector<8x128xf32>
      %182 = arith.maximumf %180, %181 : vector<8x128xf32>
      %183 = arith.subf %180, %182 : vector<8x128xf32>
      %184 = arith.select %175, %167, %178 : vector<8x128xf32>
      %cst_70 = arith.constant 0.000000e+00 : f32
      %185 = vector.broadcast %cst_70 : f32 to vector<8x128xf32>
      %186 = arith.subf %185, %178 : vector<8x128xf32>
      %187 = vector.shape_cast %186 : vector<8x128xf32> to vector<1x8x128xf32>
      %cst_71 = arith.constant dense<0xFF800000> : vector<1xf32>
      %188 = vector.multi_reduction <maximumf>, %187, %cst_71 [1, 2] : vector<1x8x128xf32> to vector<1xf32>
      %189 = vector.shape_cast %188 : vector<1xf32> to vector<1x1x1xf32>
      %190 = vector.extract %189[0, 0, 0] : f32 from vector<1x1x1xf32>
      %cst_72 = arith.constant 1.000000e-03 : f32
      %191 = arith.cmpf olt, %190, %cst_72 : f32
      %192 = arith.ori %175, %191 : i1
      %193 = arith.addf %182, %179 : vector<8x128xf32>
      %cst_73 = arith.constant dense<0.000000e+00> : vector<8x128xf32>
      %194 = tpu.matmul %193, %1, %cst_73 {dimension_numbers = #tpu.dot_dimension_numbers<[1], [0], [0], [1], [0, 0, 1, 1], [], []>} : vector<8x128xf32>, vector<128x128xf32>, vector<8x128xf32> -> vector<8x128xf32>
      %195 = arith.addf %194, %7 : vector<8x128xf32>
      %196 = arith.subf %193, %195 : vector<8x128xf32>
      %197 = arith.addf %195, %183 : vector<8x128xf32>
      %cst_74 = arith.constant 0.000000e+00 : f32
      %198 = vector.broadcast %cst_74 : f32 to vector<8x128xf32>
      %199 = arith.maximumf %197, %198 : vector<8x128xf32>
      %200 = arith.subf %197, %199 : vector<8x128xf32>
      %201 = arith.select %192, %184, %195 : vector<8x128xf32>
      %cst_75 = arith.constant 0.000000e+00 : f32
      %202 = vector.broadcast %cst_75 : f32 to vector<8x128xf32>
      %203 = arith.subf %202, %195 : vector<8x128xf32>
      %204 = vector.shape_cast %203 : vector<8x128xf32> to vector<1x8x128xf32>
      %cst_76 = arith.constant dense<0xFF800000> : vector<1xf32>
      %205 = vector.multi_reduction <maximumf>, %204, %cst_76 [1, 2] : vector<1x8x128xf32> to vector<1xf32>
      %206 = vector.shape_cast %205 : vector<1xf32> to vector<1x1x1xf32>
      %207 = vector.extract %206[0, 0, 0] : f32 from vector<1x1x1xf32>
      %cst_77 = arith.constant 1.000000e-03 : f32
      %208 = arith.cmpf olt, %207, %cst_77 : f32
      %209 = arith.ori %192, %208 : i1
      %210 = arith.addf %199, %196 : vector<8x128xf32>
      %cst_78 = arith.constant dense<0.000000e+00> : vector<8x128xf32>
      %211 = tpu.matmul %210, %1, %cst_78 {dimension_numbers = #tpu.dot_dimension_numbers<[1], [0], [0], [1], [0, 0, 1, 1], [], []>} : vector<8x128xf32>, vector<128x128xf32>, vector<8x128xf32> -> vector<8x128xf32>
      %212 = arith.addf %211, %7 : vector<8x128xf32>
      %213 = arith.subf %210, %212 : vector<8x128xf32>
      %214 = arith.addf %212, %200 : vector<8x128xf32>
      %cst_79 = arith.constant 0.000000e+00 : f32
      %215 = vector.broadcast %cst_79 : f32 to vector<8x128xf32>
      %216 = arith.maximumf %214, %215 : vector<8x128xf32>
      %217 = arith.subf %214, %216 : vector<8x128xf32>
      %218 = arith.select %209, %201, %212 : vector<8x128xf32>
      %cst_80 = arith.constant 0.000000e+00 : f32
      %219 = vector.broadcast %cst_80 : f32 to vector<8x128xf32>
      %220 = arith.subf %219, %212 : vector<8x128xf32>
      %221 = vector.shape_cast %220 : vector<8x128xf32> to vector<1x8x128xf32>
      %cst_81 = arith.constant dense<0xFF800000> : vector<1xf32>
      %222 = vector.multi_reduction <maximumf>, %221, %cst_81 [1, 2] : vector<1x8x128xf32> to vector<1xf32>
      %223 = vector.shape_cast %222 : vector<1xf32> to vector<1x1x1xf32>
      %224 = vector.extract %223[0, 0, 0] : f32 from vector<1x1x1xf32>
      %cst_82 = arith.constant 1.000000e-03 : f32
      %225 = arith.cmpf olt, %224, %cst_82 : f32
      %226 = arith.ori %209, %225 : i1
      %227 = arith.addf %216, %213 : vector<8x128xf32>
      %cst_83 = arith.constant dense<0.000000e+00> : vector<8x128xf32>
      %228 = tpu.matmul %227, %1, %cst_83 {dimension_numbers = #tpu.dot_dimension_numbers<[1], [0], [0], [1], [0, 0, 1, 1], [], []>} : vector<8x128xf32>, vector<128x128xf32>, vector<8x128xf32> -> vector<8x128xf32>
      %229 = arith.addf %228, %7 : vector<8x128xf32>
      %230 = arith.subf %227, %229 : vector<8x128xf32>
      %231 = arith.addf %229, %217 : vector<8x128xf32>
      %cst_84 = arith.constant 0.000000e+00 : f32
      %232 = vector.broadcast %cst_84 : f32 to vector<8x128xf32>
      %233 = arith.maximumf %231, %232 : vector<8x128xf32>
      %234 = arith.subf %231, %233 : vector<8x128xf32>
      %235 = arith.select %226, %218, %229 : vector<8x128xf32>
      %cst_85 = arith.constant 0.000000e+00 : f32
      %236 = vector.broadcast %cst_85 : f32 to vector<8x128xf32>
      %237 = arith.subf %236, %229 : vector<8x128xf32>
      %238 = vector.shape_cast %237 : vector<8x128xf32> to vector<1x8x128xf32>
      %cst_86 = arith.constant dense<0xFF800000> : vector<1xf32>
      %239 = vector.multi_reduction <maximumf>, %238, %cst_86 [1, 2] : vector<1x8x128xf32> to vector<1xf32>
      %240 = vector.shape_cast %239 : vector<1xf32> to vector<1x1x1xf32>
      %241 = vector.extract %240[0, 0, 0] : f32 from vector<1x1x1xf32>
      %cst_87 = arith.constant 1.000000e-03 : f32
      %242 = arith.cmpf olt, %241, %cst_87 : f32
      %243 = arith.ori %226, %242 : i1
      %c8_i32 = arith.constant 8 : i32
      %244 = arith.addi %arg11, %c8_i32 : i32
      scf.yield %244, %233, %230, %234, %235, %243 : i32, vector<8x128xf32>, vector<8x128xf32>, vector<8x128xf32>, vector<8x128xf32>, i1
    }
    %cst_25 = arith.constant 0.000000e+00 : f32
    %49 = vector.broadcast %cst_25 : f32 to vector<8x128xf32>
    %50 = arith.select %21, %48#4, %49 : vector<8x128xi1>, vector<8x128xf32>
    %51 = arith.subf %50, %0 : vector<8x128xf32>
    %52 = arith.cmpf oge, %0, %50 : vector<8x128xf32>
    %53 = arith.extui %52 : vector<8x128xi1> to vector<8x128xi32>
    %54 = arith.sitofp %53 : vector<8x128xi32> to vector<8x128xf32>
    %55 = arith.mulf %12, %54 : vector<8x128xf32>
    %56 = arith.cmpf oge, %50, %0 : vector<8x128xf32>
    %57 = arith.extui %56 : vector<8x128xi1> to vector<8x128xi32>
    %58 = arith.sitofp %57 : vector<8x128xi32> to vector<8x128xf32>
    %59 = arith.mulf %15, %58 : vector<8x128xf32>
    %60 = arith.addf %55, %59 : vector<8x128xf32>
    %cst_26 = arith.constant dense<0.000000e+00> : vector<8x256xf32>
    %61 = tpu.matmul %51, %2, %cst_26 {dimension_numbers = #tpu.dot_dimension_numbers<[1], [0], [0], [1], [0, 0, 1, 1], [], []>} : vector<8x128xf32>, vector<128x256xf32>, vector<8x256xf32> -> vector<8x256xf32>
    %62 = arith.addf %61, %18 : vector<8x256xf32>
    %cst_27 = arith.constant dense<0.000000e+00> : vector<8x256xf32>
    %63 = tpu.matmul %50, %3, %cst_27 {dimension_numbers = #tpu.dot_dimension_numbers<[1], [0], [0], [1], [0, 0, 1, 1], [], []>} : vector<8x128xf32>, vector<128x256xf32>, vector<8x256xf32> -> vector<8x256xf32>
    %64 = arith.mulf %62, %63 : vector<8x256xf32>
    %cst_28 = arith.constant dense<0.000000e+00> : vector<8x128xf32>
    %65 = tpu.matmul %64, %4, %cst_28 {dimension_numbers = #tpu.dot_dimension_numbers<[1], [0], [0], [1], [0, 0, 1, 1], [], []>} : vector<8x256xf32>, vector<256x128xf32>, vector<8x128xf32> -> vector<8x128xf32>
    %cst_29 = arith.constant 1.000000e-01 : f32
    %66 = vector.broadcast %cst_29 : f32 to vector<8x128xf32>
    %67 = arith.mulf %66, %65 : vector<8x128xf32>
    %cst_30 = arith.constant 1.000000e-01 : f32
    %68 = vector.broadcast %cst_30 : f32 to vector<8x128xf32>
    %69 = arith.mulf %68, %60 : vector<8x128xf32>
    %70 = arith.addf %67, %69 : vector<8x128xf32>
    %cst_31 = arith.constant 1.000000e-01 : f32
    %71 = vector.broadcast %cst_31 : f32 to vector<8x128xf32>
    %72 = arith.mulf %71, %51 : vector<8x128xf32>
    %73 = arith.addf %70, %72 : vector<8x128xf32>
    %74 = arith.subf %50, %73 : vector<8x128xf32>
    %cst_32 = arith.constant 0.000000e+00 : f32
    %75 = vector.broadcast %cst_32 : f32 to vector<8x128xf32>
    %c0_i32_33 = arith.constant 0 : i32
    %false_34 = arith.constant false
    %76:6 = scf.while (%arg11 = %c0_i32_33, %arg12 = %74, %arg13 = %75, %arg14 = %75, %arg15 = %74, %arg16 = %false_34) : (i32, vector<8x128xf32>, vector<8x128xf32>, vector<8x128xf32>, vector<8x128xf32>, i1) -> (i32, vector<8x128xf32>, vector<8x128xf32>, vector<8x128xf32>, vector<8x128xf32>, i1) {
      %true = arith.constant true
      %108 = arith.xori %arg16, %true : i1
      %c300_i32 = arith.constant 300 : i32
      %109 = arith.cmpi slt, %arg11, %c300_i32 : i32
      %110 = arith.andi %108, %109 : i1
      scf.condition(%110) %arg11, %arg12, %arg13, %arg14, %arg15, %arg16 : i32, vector<8x128xf32>, vector<8x128xf32>, vector<8x128xf32>, vector<8x128xf32>, i1
    } do {
    ^bb0(%arg11: i32, %arg12: vector<8x128xf32>, %arg13: vector<8x128xf32>, %arg14: vector<8x128xf32>, %arg15: vector<8x128xf32>, %arg16: i1):
      %108 = arith.addf %arg12, %arg13 : vector<8x128xf32>
      %cst_48 = arith.constant dense<0.000000e+00> : vector<8x128xf32>
      %109 = tpu.matmul %108, %1, %cst_48 {dimension_numbers = #tpu.dot_dimension_numbers<[1], [0], [0], [1], [0, 0, 1, 1], [], []>} : vector<8x128xf32>, vector<128x128xf32>, vector<8x128xf32> -> vector<8x128xf32>
      %110 = arith.addf %109, %7 : vector<8x128xf32>
      %111 = arith.subf %108, %110 : vector<8x128xf32>
      %112 = arith.addf %110, %arg14 : vector<8x128xf32>
      %cst_49 = arith.constant 0.000000e+00 : f32
      %113 = vector.broadcast %cst_49 : f32 to vector<8x128xf32>
      %114 = arith.maximumf %112, %113 : vector<8x128xf32>
      %115 = arith.subf %112, %114 : vector<8x128xf32>
      %116 = arith.select %arg16, %arg15, %110 : vector<8x128xf32>
      %cst_50 = arith.constant 0.000000e+00 : f32
      %117 = vector.broadcast %cst_50 : f32 to vector<8x128xf32>
      %118 = arith.subf %117, %110 : vector<8x128xf32>
      %119 = vector.shape_cast %118 : vector<8x128xf32> to vector<1x8x128xf32>
      %cst_51 = arith.constant dense<0xFF800000> : vector<1xf32>
      %120 = vector.multi_reduction <maximumf>, %119, %cst_51 [1, 2] : vector<1x8x128xf32> to vector<1xf32>
      %121 = vector.shape_cast %120 : vector<1xf32> to vector<1x1x1xf32>
      %122 = vector.extract %121[0, 0, 0] : f32 from vector<1x1x1xf32>
      %cst_52 = arith.constant 1.000000e-03 : f32
      %123 = arith.cmpf olt, %122, %cst_52 : f32
      %124 = arith.ori %arg16, %123 : i1
      %125 = arith.addf %114, %111 : vector<8x128xf32>
      %cst_53 = arith.constant dense<0.000000e+00> : vector<8x128xf32>
      %126 = tpu.matmul %125, %1, %cst_53 {dimension_numbers = #tpu.dot_dimension_numbers<[1], [0], [0], [1], [0, 0, 1, 1], [], []>} : vector<8x128xf32>, vector<128x128xf32>, vector<8x128xf32> -> vector<8x128xf32>
      %127 = arith.addf %126, %7 : vector<8x128xf32>
      %128 = arith.subf %125, %127 : vector<8x128xf32>
      %129 = arith.addf %127, %115 : vector<8x128xf32>
      %cst_54 = arith.constant 0.000000e+00 : f32
      %130 = vector.broadcast %cst_54 : f32 to vector<8x128xf32>
      %131 = arith.maximumf %129, %130 : vector<8x128xf32>
      %132 = arith.subf %129, %131 : vector<8x128xf32>
      %133 = arith.select %124, %116, %127 : vector<8x128xf32>
      %cst_55 = arith.constant 0.000000e+00 : f32
      %134 = vector.broadcast %cst_55 : f32 to vector<8x128xf32>
      %135 = arith.subf %134, %127 : vector<8x128xf32>
      %136 = vector.shape_cast %135 : vector<8x128xf32> to vector<1x8x128xf32>
      %cst_56 = arith.constant dense<0xFF800000> : vector<1xf32>
      %137 = vector.multi_reduction <maximumf>, %136, %cst_56 [1, 2] : vector<1x8x128xf32> to vector<1xf32>
      %138 = vector.shape_cast %137 : vector<1xf32> to vector<1x1x1xf32>
      %139 = vector.extract %138[0, 0, 0] : f32 from vector<1x1x1xf32>
      %cst_57 = arith.constant 1.000000e-03 : f32
      %140 = arith.cmpf olt, %139, %cst_57 : f32
      %141 = arith.ori %124, %140 : i1
      %142 = arith.addf %131, %128 : vector<8x128xf32>
      %cst_58 = arith.constant dense<0.000000e+00> : vector<8x128xf32>
      %143 = tpu.matmul %142, %1, %cst_58 {dimension_numbers = #tpu.dot_dimension_numbers<[1], [0], [0], [1], [0, 0, 1, 1], [], []>} : vector<8x128xf32>, vector<128x128xf32>, vector<8x128xf32> -> vector<8x128xf32>
      %144 = arith.addf %143, %7 : vector<8x128xf32>
      %145 = arith.subf %142, %144 : vector<8x128xf32>
      %146 = arith.addf %144, %132 : vector<8x128xf32>
      %cst_59 = arith.constant 0.000000e+00 : f32
      %147 = vector.broadcast %cst_59 : f32 to vector<8x128xf32>
      %148 = arith.maximumf %146, %147 : vector<8x128xf32>
      %149 = arith.subf %146, %148 : vector<8x128xf32>
      %150 = arith.select %141, %133, %144 : vector<8x128xf32>
      %cst_60 = arith.constant 0.000000e+00 : f32
      %151 = vector.broadcast %cst_60 : f32 to vector<8x128xf32>
      %152 = arith.subf %151, %144 : vector<8x128xf32>
      %153 = vector.shape_cast %152 : vector<8x128xf32> to vector<1x8x128xf32>
      %cst_61 = arith.constant dense<0xFF800000> : vector<1xf32>
      %154 = vector.multi_reduction <maximumf>, %153, %cst_61 [1, 2] : vector<1x8x128xf32> to vector<1xf32>
      %155 = vector.shape_cast %154 : vector<1xf32> to vector<1x1x1xf32>
      %156 = vector.extract %155[0, 0, 0] : f32 from vector<1x1x1xf32>
      %cst_62 = arith.constant 1.000000e-03 : f32
      %157 = arith.cmpf olt, %156, %cst_62 : f32
      %158 = arith.ori %141, %157 : i1
      %159 = arith.addf %148, %145 : vector<8x128xf32>
      %cst_63 = arith.constant dense<0.000000e+00> : vector<8x128xf32>
      %160 = tpu.matmul %159, %1, %cst_63 {dimension_numbers = #tpu.dot_dimension_numbers<[1], [0], [0], [1], [0, 0, 1, 1], [], []>} : vector<8x128xf32>, vector<128x128xf32>, vector<8x128xf32> -> vector<8x128xf32>
      %161 = arith.addf %160, %7 : vector<8x128xf32>
      %162 = arith.subf %159, %161 : vector<8x128xf32>
      %163 = arith.addf %161, %149 : vector<8x128xf32>
      %cst_64 = arith.constant 0.000000e+00 : f32
      %164 = vector.broadcast %cst_64 : f32 to vector<8x128xf32>
      %165 = arith.maximumf %163, %164 : vector<8x128xf32>
      %166 = arith.subf %163, %165 : vector<8x128xf32>
      %167 = arith.select %158, %150, %161 : vector<8x128xf32>
      %cst_65 = arith.constant 0.000000e+00 : f32
      %168 = vector.broadcast %cst_65 : f32 to vector<8x128xf32>
      %169 = arith.subf %168, %161 : vector<8x128xf32>
      %170 = vector.shape_cast %169 : vector<8x128xf32> to vector<1x8x128xf32>
      %cst_66 = arith.constant dense<0xFF800000> : vector<1xf32>
      %171 = vector.multi_reduction <maximumf>, %170, %cst_66 [1, 2] : vector<1x8x128xf32> to vector<1xf32>
      %172 = vector.shape_cast %171 : vector<1xf32> to vector<1x1x1xf32>
      %173 = vector.extract %172[0, 0, 0] : f32 from vector<1x1x1xf32>
      %cst_67 = arith.constant 1.000000e-03 : f32
      %174 = arith.cmpf olt, %173, %cst_67 : f32
      %175 = arith.ori %158, %174 : i1
      %176 = arith.addf %165, %162 : vector<8x128xf32>
      %cst_68 = arith.constant dense<0.000000e+00> : vector<8x128xf32>
      %177 = tpu.matmul %176, %1, %cst_68 {dimension_numbers = #tpu.dot_dimension_numbers<[1], [0], [0], [1], [0, 0, 1, 1], [], []>} : vector<8x128xf32>, vector<128x128xf32>, vector<8x128xf32> -> vector<8x128xf32>
      %178 = arith.addf %177, %7 : vector<8x128xf32>
      %179 = arith.subf %176, %178 : vector<8x128xf32>
      %180 = arith.addf %178, %166 : vector<8x128xf32>
      %cst_69 = arith.constant 0.000000e+00 : f32
      %181 = vector.broadcast %cst_69 : f32 to vector<8x128xf32>
      %182 = arith.maximumf %180, %181 : vector<8x128xf32>
      %183 = arith.subf %180, %182 : vector<8x128xf32>
      %184 = arith.select %175, %167, %178 : vector<8x128xf32>
      %cst_70 = arith.constant 0.000000e+00 : f32
      %185 = vector.broadcast %cst_70 : f32 to vector<8x128xf32>
      %186 = arith.subf %185, %178 : vector<8x128xf32>
      %187 = vector.shape_cast %186 : vector<8x128xf32> to vector<1x8x128xf32>
      %cst_71 = arith.constant dense<0xFF800000> : vector<1xf32>
      %188 = vector.multi_reduction <maximumf>, %187, %cst_71 [1, 2] : vector<1x8x128xf32> to vector<1xf32>
      %189 = vector.shape_cast %188 : vector<1xf32> to vector<1x1x1xf32>
      %190 = vector.extract %189[0, 0, 0] : f32 from vector<1x1x1xf32>
      %cst_72 = arith.constant 1.000000e-03 : f32
      %191 = arith.cmpf olt, %190, %cst_72 : f32
      %192 = arith.ori %175, %191 : i1
      %193 = arith.addf %182, %179 : vector<8x128xf32>
      %cst_73 = arith.constant dense<0.000000e+00> : vector<8x128xf32>
      %194 = tpu.matmul %193, %1, %cst_73 {dimension_numbers = #tpu.dot_dimension_numbers<[1], [0], [0], [1], [0, 0, 1, 1], [], []>} : vector<8x128xf32>, vector<128x128xf32>, vector<8x128xf32> -> vector<8x128xf32>
      %195 = arith.addf %194, %7 : vector<8x128xf32>
      %196 = arith.subf %193, %195 : vector<8x128xf32>
      %197 = arith.addf %195, %183 : vector<8x128xf32>
      %cst_74 = arith.constant 0.000000e+00 : f32
      %198 = vector.broadcast %cst_74 : f32 to vector<8x128xf32>
      %199 = arith.maximumf %197, %198 : vector<8x128xf32>
      %200 = arith.subf %197, %199 : vector<8x128xf32>
      %201 = arith.select %192, %184, %195 : vector<8x128xf32>
      %cst_75 = arith.constant 0.000000e+00 : f32
      %202 = vector.broadcast %cst_75 : f32 to vector<8x128xf32>
      %203 = arith.subf %202, %195 : vector<8x128xf32>
      %204 = vector.shape_cast %203 : vector<8x128xf32> to vector<1x8x128xf32>
      %cst_76 = arith.constant dense<0xFF800000> : vector<1xf32>
      %205 = vector.multi_reduction <maximumf>, %204, %cst_76 [1, 2] : vector<1x8x128xf32> to vector<1xf32>
      %206 = vector.shape_cast %205 : vector<1xf32> to vector<1x1x1xf32>
      %207 = vector.extract %206[0, 0, 0] : f32 from vector<1x1x1xf32>
      %cst_77 = arith.constant 1.000000e-03 : f32
      %208 = arith.cmpf olt, %207, %cst_77 : f32
      %209 = arith.ori %192, %208 : i1
      %210 = arith.addf %199, %196 : vector<8x128xf32>
      %cst_78 = arith.constant dense<0.000000e+00> : vector<8x128xf32>
      %211 = tpu.matmul %210, %1, %cst_78 {dimension_numbers = #tpu.dot_dimension_numbers<[1], [0], [0], [1], [0, 0, 1, 1], [], []>} : vector<8x128xf32>, vector<128x128xf32>, vector<8x128xf32> -> vector<8x128xf32>
      %212 = arith.addf %211, %7 : vector<8x128xf32>
      %213 = arith.subf %210, %212 : vector<8x128xf32>
      %214 = arith.addf %212, %200 : vector<8x128xf32>
      %cst_79 = arith.constant 0.000000e+00 : f32
      %215 = vector.broadcast %cst_79 : f32 to vector<8x128xf32>
      %216 = arith.maximumf %214, %215 : vector<8x128xf32>
      %217 = arith.subf %214, %216 : vector<8x128xf32>
      %218 = arith.select %209, %201, %212 : vector<8x128xf32>
      %cst_80 = arith.constant 0.000000e+00 : f32
      %219 = vector.broadcast %cst_80 : f32 to vector<8x128xf32>
      %220 = arith.subf %219, %212 : vector<8x128xf32>
      %221 = vector.shape_cast %220 : vector<8x128xf32> to vector<1x8x128xf32>
      %cst_81 = arith.constant dense<0xFF800000> : vector<1xf32>
      %222 = vector.multi_reduction <maximumf>, %221, %cst_81 [1, 2] : vector<1x8x128xf32> to vector<1xf32>
      %223 = vector.shape_cast %222 : vector<1xf32> to vector<1x1x1xf32>
      %224 = vector.extract %223[0, 0, 0] : f32 from vector<1x1x1xf32>
      %cst_82 = arith.constant 1.000000e-03 : f32
      %225 = arith.cmpf olt, %224, %cst_82 : f32
      %226 = arith.ori %209, %225 : i1
      %227 = arith.addf %216, %213 : vector<8x128xf32>
      %cst_83 = arith.constant dense<0.000000e+00> : vector<8x128xf32>
      %228 = tpu.matmul %227, %1, %cst_83 {dimension_numbers = #tpu.dot_dimension_numbers<[1], [0], [0], [1], [0, 0, 1, 1], [], []>} : vector<8x128xf32>, vector<128x128xf32>, vector<8x128xf32> -> vector<8x128xf32>
      %229 = arith.addf %228, %7 : vector<8x128xf32>
      %230 = arith.subf %227, %229 : vector<8x128xf32>
      %231 = arith.addf %229, %217 : vector<8x128xf32>
      %cst_84 = arith.constant 0.000000e+00 : f32
      %232 = vector.broadcast %cst_84 : f32 to vector<8x128xf32>
      %233 = arith.maximumf %231, %232 : vector<8x128xf32>
      %234 = arith.subf %231, %233 : vector<8x128xf32>
      %235 = arith.select %226, %218, %229 : vector<8x128xf32>
      %cst_85 = arith.constant 0.000000e+00 : f32
      %236 = vector.broadcast %cst_85 : f32 to vector<8x128xf32>
      %237 = arith.subf %236, %229 : vector<8x128xf32>
      %238 = vector.shape_cast %237 : vector<8x128xf32> to vector<1x8x128xf32>
      %cst_86 = arith.constant dense<0xFF800000> : vector<1xf32>
      %239 = vector.multi_reduction <maximumf>, %238, %cst_86 [1, 2] : vector<1x8x128xf32> to vector<1xf32>
      %240 = vector.shape_cast %239 : vector<1xf32> to vector<1x1x1xf32>
      %241 = vector.extract %240[0, 0, 0] : f32 from vector<1x1x1xf32>
      %cst_87 = arith.constant 1.000000e-03 : f32
      %242 = arith.cmpf olt, %241, %cst_87 : f32
      %243 = arith.ori %226, %242 : i1
      %c8_i32 = arith.constant 8 : i32
      %244 = arith.addi %arg11, %c8_i32 : i32
      scf.yield %244, %233, %230, %234, %235, %243 : i32, vector<8x128xf32>, vector<8x128xf32>, vector<8x128xf32>, vector<8x128xf32>, i1
    }
    %cst_35 = arith.constant 0.000000e+00 : f32
    %77 = vector.broadcast %cst_35 : f32 to vector<8x128xf32>
    %78 = arith.select %21, %76#4, %77 : vector<8x128xi1>, vector<8x128xf32>
    %79 = arith.subf %78, %0 : vector<8x128xf32>
    %80 = arith.cmpf oge, %0, %78 : vector<8x128xf32>
    %81 = arith.extui %80 : vector<8x128xi1> to vector<8x128xi32>
    %82 = arith.sitofp %81 : vector<8x128xi32> to vector<8x128xf32>
    %83 = arith.mulf %12, %82 : vector<8x128xf32>
    %84 = arith.cmpf oge, %78, %0 : vector<8x128xf32>
    %85 = arith.extui %84 : vector<8x128xi1> to vector<8x128xi32>
    %86 = arith.sitofp %85 : vector<8x128xi32> to vector<8x128xf32>
    %87 = arith.mulf %15, %86 : vector<8x128xf32>
    %88 = arith.addf %83, %87 : vector<8x128xf32>
    %cst_36 = arith.constant dense<0.000000e+00> : vector<8x256xf32>
    %89 = tpu.matmul %79, %2, %cst_36 {dimension_numbers = #tpu.dot_dimension_numbers<[1], [0], [0], [1], [0, 0, 1, 1], [], []>} : vector<8x128xf32>, vector<128x256xf32>, vector<8x256xf32> -> vector<8x256xf32>
    %90 = arith.addf %89, %18 : vector<8x256xf32>
    %cst_37 = arith.constant dense<0.000000e+00> : vector<8x256xf32>
    %91 = tpu.matmul %78, %3, %cst_37 {dimension_numbers = #tpu.dot_dimension_numbers<[1], [0], [0], [1], [0, 0, 1, 1], [], []>} : vector<8x128xf32>, vector<128x256xf32>, vector<8x256xf32> -> vector<8x256xf32>
    %92 = arith.mulf %90, %91 : vector<8x256xf32>
    %cst_38 = arith.constant dense<0.000000e+00> : vector<8x128xf32>
    %93 = tpu.matmul %92, %4, %cst_38 {dimension_numbers = #tpu.dot_dimension_numbers<[1], [0], [0], [1], [0, 0, 1, 1], [], []>} : vector<8x256xf32>, vector<256x128xf32>, vector<8x128xf32> -> vector<8x128xf32>
    %cst_39 = arith.constant 1.000000e-01 : f32
    %94 = vector.broadcast %cst_39 : f32 to vector<8x128xf32>
    %95 = arith.mulf %94, %93 : vector<8x128xf32>
    %cst_40 = arith.constant 1.000000e-01 : f32
    %96 = vector.broadcast %cst_40 : f32 to vector<8x128xf32>
    %97 = arith.mulf %96, %88 : vector<8x128xf32>
    %98 = arith.addf %95, %97 : vector<8x128xf32>
    %cst_41 = arith.constant 1.000000e-01 : f32
    %99 = vector.broadcast %cst_41 : f32 to vector<8x128xf32>
    %100 = arith.mulf %99, %79 : vector<8x128xf32>
    %101 = arith.addf %98, %100 : vector<8x128xf32>
    %102 = arith.subf %78, %101 : vector<8x128xf32>
    %cst_42 = arith.constant 0.000000e+00 : f32
    %103 = vector.broadcast %cst_42 : f32 to vector<8x128xf32>
    %c0_i32_43 = arith.constant 0 : i32
    %false_44 = arith.constant false
    %104:6 = scf.while (%arg11 = %c0_i32_43, %arg12 = %102, %arg13 = %103, %arg14 = %103, %arg15 = %102, %arg16 = %false_44) : (i32, vector<8x128xf32>, vector<8x128xf32>, vector<8x128xf32>, vector<8x128xf32>, i1) -> (i32, vector<8x128xf32>, vector<8x128xf32>, vector<8x128xf32>, vector<8x128xf32>, i1) {
      %true = arith.constant true
      %108 = arith.xori %arg16, %true : i1
      %c300_i32 = arith.constant 300 : i32
      %109 = arith.cmpi slt, %arg11, %c300_i32 : i32
      %110 = arith.andi %108, %109 : i1
      scf.condition(%110) %arg11, %arg12, %arg13, %arg14, %arg15, %arg16 : i32, vector<8x128xf32>, vector<8x128xf32>, vector<8x128xf32>, vector<8x128xf32>, i1
    } do {
    ^bb0(%arg11: i32, %arg12: vector<8x128xf32>, %arg13: vector<8x128xf32>, %arg14: vector<8x128xf32>, %arg15: vector<8x128xf32>, %arg16: i1):
      %108 = arith.addf %arg12, %arg13 : vector<8x128xf32>
      %cst_48 = arith.constant dense<0.000000e+00> : vector<8x128xf32>
      %109 = tpu.matmul %108, %1, %cst_48 {dimension_numbers = #tpu.dot_dimension_numbers<[1], [0], [0], [1], [0, 0, 1, 1], [], []>} : vector<8x128xf32>, vector<128x128xf32>, vector<8x128xf32> -> vector<8x128xf32>
      %110 = arith.addf %109, %7 : vector<8x128xf32>
      %111 = arith.subf %108, %110 : vector<8x128xf32>
      %112 = arith.addf %110, %arg14 : vector<8x128xf32>
      %cst_49 = arith.constant 0.000000e+00 : f32
      %113 = vector.broadcast %cst_49 : f32 to vector<8x128xf32>
      %114 = arith.maximumf %112, %113 : vector<8x128xf32>
      %115 = arith.subf %112, %114 : vector<8x128xf32>
      %116 = arith.select %arg16, %arg15, %110 : vector<8x128xf32>
      %cst_50 = arith.constant 0.000000e+00 : f32
      %117 = vector.broadcast %cst_50 : f32 to vector<8x128xf32>
      %118 = arith.subf %117, %110 : vector<8x128xf32>
      %119 = vector.shape_cast %118 : vector<8x128xf32> to vector<1x8x128xf32>
      %cst_51 = arith.constant dense<0xFF800000> : vector<1xf32>
      %120 = vector.multi_reduction <maximumf>, %119, %cst_51 [1, 2] : vector<1x8x128xf32> to vector<1xf32>
      %121 = vector.shape_cast %120 : vector<1xf32> to vector<1x1x1xf32>
      %122 = vector.extract %121[0, 0, 0] : f32 from vector<1x1x1xf32>
      %cst_52 = arith.constant 1.000000e-03 : f32
      %123 = arith.cmpf olt, %122, %cst_52 : f32
      %124 = arith.ori %arg16, %123 : i1
      %125 = arith.addf %114, %111 : vector<8x128xf32>
      %cst_53 = arith.constant dense<0.000000e+00> : vector<8x128xf32>
      %126 = tpu.matmul %125, %1, %cst_53 {dimension_numbers = #tpu.dot_dimension_numbers<[1], [0], [0], [1], [0, 0, 1, 1], [], []>} : vector<8x128xf32>, vector<128x128xf32>, vector<8x128xf32> -> vector<8x128xf32>
      %127 = arith.addf %126, %7 : vector<8x128xf32>
      %128 = arith.subf %125, %127 : vector<8x128xf32>
      %129 = arith.addf %127, %115 : vector<8x128xf32>
      %cst_54 = arith.constant 0.000000e+00 : f32
      %130 = vector.broadcast %cst_54 : f32 to vector<8x128xf32>
      %131 = arith.maximumf %129, %130 : vector<8x128xf32>
      %132 = arith.subf %129, %131 : vector<8x128xf32>
      %133 = arith.select %124, %116, %127 : vector<8x128xf32>
      %cst_55 = arith.constant 0.000000e+00 : f32
      %134 = vector.broadcast %cst_55 : f32 to vector<8x128xf32>
      %135 = arith.subf %134, %127 : vector<8x128xf32>
      %136 = vector.shape_cast %135 : vector<8x128xf32> to vector<1x8x128xf32>
      %cst_56 = arith.constant dense<0xFF800000> : vector<1xf32>
      %137 = vector.multi_reduction <maximumf>, %136, %cst_56 [1, 2] : vector<1x8x128xf32> to vector<1xf32>
      %138 = vector.shape_cast %137 : vector<1xf32> to vector<1x1x1xf32>
      %139 = vector.extract %138[0, 0, 0] : f32 from vector<1x1x1xf32>
      %cst_57 = arith.constant 1.000000e-03 : f32
      %140 = arith.cmpf olt, %139, %cst_57 : f32
      %141 = arith.ori %124, %140 : i1
      %142 = arith.addf %131, %128 : vector<8x128xf32>
      %cst_58 = arith.constant dense<0.000000e+00> : vector<8x128xf32>
      %143 = tpu.matmul %142, %1, %cst_58 {dimension_numbers = #tpu.dot_dimension_numbers<[1], [0], [0], [1], [0, 0, 1, 1], [], []>} : vector<8x128xf32>, vector<128x128xf32>, vector<8x128xf32> -> vector<8x128xf32>
      %144 = arith.addf %143, %7 : vector<8x128xf32>
      %145 = arith.subf %142, %144 : vector<8x128xf32>
      %146 = arith.addf %144, %132 : vector<8x128xf32>
      %cst_59 = arith.constant 0.000000e+00 : f32
      %147 = vector.broadcast %cst_59 : f32 to vector<8x128xf32>
      %148 = arith.maximumf %146, %147 : vector<8x128xf32>
      %149 = arith.subf %146, %148 : vector<8x128xf32>
      %150 = arith.select %141, %133, %144 : vector<8x128xf32>
      %cst_60 = arith.constant 0.000000e+00 : f32
      %151 = vector.broadcast %cst_60 : f32 to vector<8x128xf32>
      %152 = arith.subf %151, %144 : vector<8x128xf32>
      %153 = vector.shape_cast %152 : vector<8x128xf32> to vector<1x8x128xf32>
      %cst_61 = arith.constant dense<0xFF800000> : vector<1xf32>
      %154 = vector.multi_reduction <maximumf>, %153, %cst_61 [1, 2] : vector<1x8x128xf32> to vector<1xf32>
      %155 = vector.shape_cast %154 : vector<1xf32> to vector<1x1x1xf32>
      %156 = vector.extract %155[0, 0, 0] : f32 from vector<1x1x1xf32>
      %cst_62 = arith.constant 1.000000e-03 : f32
      %157 = arith.cmpf olt, %156, %cst_62 : f32
      %158 = arith.ori %141, %157 : i1
      %159 = arith.addf %148, %145 : vector<8x128xf32>
      %cst_63 = arith.constant dense<0.000000e+00> : vector<8x128xf32>
      %160 = tpu.matmul %159, %1, %cst_63 {dimension_numbers = #tpu.dot_dimension_numbers<[1], [0], [0], [1], [0, 0, 1, 1], [], []>} : vector<8x128xf32>, vector<128x128xf32>, vector<8x128xf32> -> vector<8x128xf32>
      %161 = arith.addf %160, %7 : vector<8x128xf32>
      %162 = arith.subf %159, %161 : vector<8x128xf32>
      %163 = arith.addf %161, %149 : vector<8x128xf32>
      %cst_64 = arith.constant 0.000000e+00 : f32
      %164 = vector.broadcast %cst_64 : f32 to vector<8x128xf32>
      %165 = arith.maximumf %163, %164 : vector<8x128xf32>
      %166 = arith.subf %163, %165 : vector<8x128xf32>
      %167 = arith.select %158, %150, %161 : vector<8x128xf32>
      %cst_65 = arith.constant 0.000000e+00 : f32
      %168 = vector.broadcast %cst_65 : f32 to vector<8x128xf32>
      %169 = arith.subf %168, %161 : vector<8x128xf32>
      %170 = vector.shape_cast %169 : vector<8x128xf32> to vector<1x8x128xf32>
      %cst_66 = arith.constant dense<0xFF800000> : vector<1xf32>
      %171 = vector.multi_reduction <maximumf>, %170, %cst_66 [1, 2] : vector<1x8x128xf32> to vector<1xf32>
      %172 = vector.shape_cast %171 : vector<1xf32> to vector<1x1x1xf32>
      %173 = vector.extract %172[0, 0, 0] : f32 from vector<1x1x1xf32>
      %cst_67 = arith.constant 1.000000e-03 : f32
      %174 = arith.cmpf olt, %173, %cst_67 : f32
      %175 = arith.ori %158, %174 : i1
      %176 = arith.addf %165, %162 : vector<8x128xf32>
      %cst_68 = arith.constant dense<0.000000e+00> : vector<8x128xf32>
      %177 = tpu.matmul %176, %1, %cst_68 {dimension_numbers = #tpu.dot_dimension_numbers<[1], [0], [0], [1], [0, 0, 1, 1], [], []>} : vector<8x128xf32>, vector<128x128xf32>, vector<8x128xf32> -> vector<8x128xf32>
      %178 = arith.addf %177, %7 : vector<8x128xf32>
      %179 = arith.subf %176, %178 : vector<8x128xf32>
      %180 = arith.addf %178, %166 : vector<8x128xf32>
      %cst_69 = arith.constant 0.000000e+00 : f32
      %181 = vector.broadcast %cst_69 : f32 to vector<8x128xf32>
      %182 = arith.maximumf %180, %181 : vector<8x128xf32>
      %183 = arith.subf %180, %182 : vector<8x128xf32>
      %184 = arith.select %175, %167, %178 : vector<8x128xf32>
      %cst_70 = arith.constant 0.000000e+00 : f32
      %185 = vector.broadcast %cst_70 : f32 to vector<8x128xf32>
      %186 = arith.subf %185, %178 : vector<8x128xf32>
      %187 = vector.shape_cast %186 : vector<8x128xf32> to vector<1x8x128xf32>
      %cst_71 = arith.constant dense<0xFF800000> : vector<1xf32>
      %188 = vector.multi_reduction <maximumf>, %187, %cst_71 [1, 2] : vector<1x8x128xf32> to vector<1xf32>
      %189 = vector.shape_cast %188 : vector<1xf32> to vector<1x1x1xf32>
      %190 = vector.extract %189[0, 0, 0] : f32 from vector<1x1x1xf32>
      %cst_72 = arith.constant 1.000000e-03 : f32
      %191 = arith.cmpf olt, %190, %cst_72 : f32
      %192 = arith.ori %175, %191 : i1
      %193 = arith.addf %182, %179 : vector<8x128xf32>
      %cst_73 = arith.constant dense<0.000000e+00> : vector<8x128xf32>
      %194 = tpu.matmul %193, %1, %cst_73 {dimension_numbers = #tpu.dot_dimension_numbers<[1], [0], [0], [1], [0, 0, 1, 1], [], []>} : vector<8x128xf32>, vector<128x128xf32>, vector<8x128xf32> -> vector<8x128xf32>
      %195 = arith.addf %194, %7 : vector<8x128xf32>
      %196 = arith.subf %193, %195 : vector<8x128xf32>
      %197 = arith.addf %195, %183 : vector<8x128xf32>
      %cst_74 = arith.constant 0.000000e+00 : f32
      %198 = vector.broadcast %cst_74 : f32 to vector<8x128xf32>
      %199 = arith.maximumf %197, %198 : vector<8x128xf32>
      %200 = arith.subf %197, %199 : vector<8x128xf32>
      %201 = arith.select %192, %184, %195 : vector<8x128xf32>
      %cst_75 = arith.constant 0.000000e+00 : f32
      %202 = vector.broadcast %cst_75 : f32 to vector<8x128xf32>
      %203 = arith.subf %202, %195 : vector<8x128xf32>
      %204 = vector.shape_cast %203 : vector<8x128xf32> to vector<1x8x128xf32>
      %cst_76 = arith.constant dense<0xFF800000> : vector<1xf32>
      %205 = vector.multi_reduction <maximumf>, %204, %cst_76 [1, 2] : vector<1x8x128xf32> to vector<1xf32>
      %206 = vector.shape_cast %205 : vector<1xf32> to vector<1x1x1xf32>
      %207 = vector.extract %206[0, 0, 0] : f32 from vector<1x1x1xf32>
      %cst_77 = arith.constant 1.000000e-03 : f32
      %208 = arith.cmpf olt, %207, %cst_77 : f32
      %209 = arith.ori %192, %208 : i1
      %210 = arith.addf %199, %196 : vector<8x128xf32>
      %cst_78 = arith.constant dense<0.000000e+00> : vector<8x128xf32>
      %211 = tpu.matmul %210, %1, %cst_78 {dimension_numbers = #tpu.dot_dimension_numbers<[1], [0], [0], [1], [0, 0, 1, 1], [], []>} : vector<8x128xf32>, vector<128x128xf32>, vector<8x128xf32> -> vector<8x128xf32>
      %212 = arith.addf %211, %7 : vector<8x128xf32>
      %213 = arith.subf %210, %212 : vector<8x128xf32>
      %214 = arith.addf %212, %200 : vector<8x128xf32>
      %cst_79 = arith.constant 0.000000e+00 : f32
      %215 = vector.broadcast %cst_79 : f32 to vector<8x128xf32>
      %216 = arith.maximumf %214, %215 : vector<8x128xf32>
      %217 = arith.subf %214, %216 : vector<8x128xf32>
      %218 = arith.select %209, %201, %212 : vector<8x128xf32>
      %cst_80 = arith.constant 0.000000e+00 : f32
      %219 = vector.broadcast %cst_80 : f32 to vector<8x128xf32>
      %220 = arith.subf %219, %212 : vector<8x128xf32>
      %221 = vector.shape_cast %220 : vector<8x128xf32> to vector<1x8x128xf32>
      %cst_81 = arith.constant dense<0xFF800000> : vector<1xf32>
      %222 = vector.multi_reduction <maximumf>, %221, %cst_81 [1, 2] : vector<1x8x128xf32> to vector<1xf32>
      %223 = vector.shape_cast %222 : vector<1xf32> to vector<1x1x1xf32>
      %224 = vector.extract %223[0, 0, 0] : f32 from vector<1x1x1xf32>
      %cst_82 = arith.constant 1.000000e-03 : f32
      %225 = arith.cmpf olt, %224, %cst_82 : f32
      %226 = arith.ori %209, %225 : i1
      %227 = arith.addf %216, %213 : vector<8x128xf32>
      %cst_83 = arith.constant dense<0.000000e+00> : vector<8x128xf32>
      %228 = tpu.matmul %227, %1, %cst_83 {dimension_numbers = #tpu.dot_dimension_numbers<[1], [0], [0], [1], [0, 0, 1, 1], [], []>} : vector<8x128xf32>, vector<128x128xf32>, vector<8x128xf32> -> vector<8x128xf32>
      %229 = arith.addf %228, %7 : vector<8x128xf32>
      %230 = arith.subf %227, %229 : vector<8x128xf32>
      %231 = arith.addf %229, %217 : vector<8x128xf32>
      %cst_84 = arith.constant 0.000000e+00 : f32
      %232 = vector.broadcast %cst_84 : f32 to vector<8x128xf32>
      %233 = arith.maximumf %231, %232 : vector<8x128xf32>
      %234 = arith.subf %231, %233 : vector<8x128xf32>
      %235 = arith.select %226, %218, %229 : vector<8x128xf32>
      %cst_85 = arith.constant 0.000000e+00 : f32
      %236 = vector.broadcast %cst_85 : f32 to vector<8x128xf32>
      %237 = arith.subf %236, %229 : vector<8x128xf32>
      %238 = vector.shape_cast %237 : vector<8x128xf32> to vector<1x8x128xf32>
      %cst_86 = arith.constant dense<0xFF800000> : vector<1xf32>
      %239 = vector.multi_reduction <maximumf>, %238, %cst_86 [1, 2] : vector<1x8x128xf32> to vector<1xf32>
      %240 = vector.shape_cast %239 : vector<1xf32> to vector<1x1x1xf32>
      %241 = vector.extract %240[0, 0, 0] : f32 from vector<1x1x1xf32>
      %cst_87 = arith.constant 1.000000e-03 : f32
      %242 = arith.cmpf olt, %241, %cst_87 : f32
      %243 = arith.ori %226, %242 : i1
      %c8_i32 = arith.constant 8 : i32
      %244 = arith.addi %arg11, %c8_i32 : i32
      scf.yield %244, %233, %230, %234, %235, %243 : i32, vector<8x128xf32>, vector<8x128xf32>, vector<8x128xf32>, vector<8x128xf32>, i1
    }
    %cst_45 = arith.constant 0.000000e+00 : f32
    %105 = vector.broadcast %cst_45 : f32 to vector<8x128xf32>
    %106 = arith.select %21, %104#4, %105 : vector<8x128xi1>, vector<8x128xf32>
    %c0_46 = arith.constant 0 : index
    %c0_47 = arith.constant 0 : index
    %107 = vector.load %arg10[%c0_46, %c0_47] : memref<8x128xf32, #tpu.memory_space<vmem>>, vector<8x128xf32>
    tpu.vector_store %arg10[%c0_46, %c0_47], %106 {strides = array<i32>} : memref<8x128xf32, #tpu.memory_space<vmem>>, vector<8x128xf32>,
    return
  }
  func.func @transform_0(%arg0: i32) -> (i32, i32) {
    %c0_i32 = arith.constant 0 : i32
    %c0_i32_0 = arith.constant 0 : i32
    return %arg0, %c0_i32 : i32, i32
  }
  func.func @transform_1(%arg0: i32) -> (i32, i32) {
    %c0_i32 = arith.constant 0 : i32
    %c0_i32_0 = arith.constant 0 : i32
    %c0_i32_1 = arith.constant 0 : i32
    return %c0_i32, %c0_i32_0 : i32, i32
  }
  func.func @transform_2(%arg0: i32) -> (i32, i32) {
    %c0_i32 = arith.constant 0 : i32
    %c0_i32_0 = arith.constant 0 : i32
    %c0_i32_1 = arith.constant 0 : i32
    return %c0_i32, %c0_i32_0 : i32, i32
  }
  func.func @transform_3(%arg0: i32) -> (i32, i32) {
    %c0_i32 = arith.constant 0 : i32
    %c0_i32_0 = arith.constant 0 : i32
    %c0_i32_1 = arith.constant 0 : i32
    return %c0_i32, %c0_i32_0 : i32, i32
  }
  func.func @transform_4(%arg0: i32) -> (i32, i32) {
    %c0_i32 = arith.constant 0 : i32
    %c0_i32_0 = arith.constant 0 : i32
    %c0_i32_1 = arith.constant 0 : i32
    return %c0_i32, %c0_i32_0 : i32, i32
  }
  func.func @transform_5(%arg0: i32) -> (i32, i32) {
    %c0_i32 = arith.constant 0 : i32
    %c0_i32_0 = arith.constant 0 : i32
    %c0_i32_1 = arith.constant 0 : i32
    return %c0_i32, %c0_i32_0 : i32, i32
  }
  func.func @transform_6(%arg0: i32) -> (i32, i32) {
    %c0_i32 = arith.constant 0 : i32
    %c0_i32_0 = arith.constant 0 : i32
    %c0_i32_1 = arith.constant 0 : i32
    return %c0_i32, %c0_i32_0 : i32, i32
  }
  func.func @transform_7(%arg0: i32) -> (i32, i32) {
    %c0_i32 = arith.constant 0 : i32
    %c0_i32_0 = arith.constant 0 : i32
    %c0_i32_1 = arith.constant 0 : i32
    return %c0_i32, %c0_i32_0 : i32, i32
  }
  func.func @transform_8(%arg0: i32) -> (i32, i32) {
    %c0_i32 = arith.constant 0 : i32
    %c0_i32_0 = arith.constant 0 : i32
    %c0_i32_1 = arith.constant 0 : i32
    return %c0_i32, %c0_i32_0 : i32, i32
  }
  func.func @transform_9(%arg0: i32) -> (i32, i32) {
    %c0_i32 = arith.constant 0 : i32
    %c0_i32_0 = arith.constant 0 : i32
    return %arg0, %c0_i32 : i32, i32
  }
}

</mosaic_0001>

<bundles_post_ra>
// kernel: tpu_custom_call.1
= control target key start
LH: loop header
LB: loop body
LE: loop exit
PB: predicated region body
PF: predicated region fallthrough
CT: control target
= control target key end

     0   :  { %14 = vsyncpa [#allocation3], 0  ;;  %s6984_s0 = inlined_call_operand.hbm [shape: f32[8,128], index: 0, kind: input, shape index: {}]   ;;  %s6985_s1 = inlined_call_operand.hbm [shape: f32[128,128], index: 1, kind: input, shape index: {}]   ;;  %s6986_s2 = inlined_call_operand.vmem [shape: f32[1,128], index: 2, kind: input, shape index: {}]   ;;  %s6987_s3 = inlined_call_operand.hbm [shape: f32[128,256], index: 3, kind: input, shape index: {}]   ;;  %s6988_s4 = inlined_call_operand.vmem [shape: f32[1,256], index: 4, kind: input, shape index: {}]   ;;  %s6989_s5 = inlined_call_operand.hbm [shape: f32[128,256], index: 5, kind: input, shape index: {}]   ;;  %s6990_s6 = inlined_call_operand.hbm [shape: f32[256,128], index: 6, kind: input, shape index: {}]   ;;  %s6991_s7 = inlined_call_operand.vmem [shape: f32[1,128], index: 7, kind: input, shape index: {}]   ;;  %s6992_s8 = inlined_call_operand.vmem [shape: f32[1,128], index: 8, kind: input, shape index: {}]   ;;  %s6993_s9 = inlined_call_operand.hbm [shape: f32[8,128], index: 9, kind: output, shape index: {}]  }
   0x1   :  { %15 = vsyncpa [#allocation6], 0 }
   0x2   :  { %16 = vsyncpa [#allocation9], 0 }
   0x3   :  { %17 = vsyncpa [#allocation4], 0  ;;  %s5097_s30 = smov [#allocation5]  }
   0x4   :  { %s33_s10 = sshll.u32 %s5097_s30, 4  ;;  %s34_s10 = int_to_ptr.vmem [resolvable:$true] %s33_s10 }
   0x5   :  { %s4833_s11 = scalar_lea.vmem %s34_s10, 2048  ;;  %p4838_p1 = scmp.lt.s32.totalorder %s34_s10, %s34_s10 }
   0x6   :  { %p4834_p0 = scmp.ne.s32.totalorder %s34_s10, %s4833_s11  ;;  %p4839_p2 = scmp.lt.s32.totalorder %s4833_s11, %s4833_s11 }
   0x8   :  { %p4840_p3 = por %p4839_p2, %p4838_p1 }
   0xa   :  { %p4841_p4 = pnand %p4840_p3, %p4834_p0 }
   0xc   :  { %4844 = shalt.err (!%p4841_p4)
}
   0xd   :  { %s5098_s12 = smov 128   ;;  %s5099_s13 = smov 8  }
   0xe   :  { %39 = dma.hbm_to_vmem [thread:$0]  %s6985_s1, 2048, %s34_s10, [#allocation6], %s5098_s12, %s5098_s12, %s5099_s13  }
   0xf   :  { %s5100_s16 = smov [#allocation8]   ;;  %s5101_s18 = smov [#allocation2]  }
  0x10   :  { %s61_s17 = sshll.u32 %s5100_s16, 4  ;;  %s24_s19 = sshll.u32 %s5101_s18, 4  ;;  %s62_s17 = int_to_ptr.vmem [resolvable:$true] %s61_s17  ;;  %s25_s19 = int_to_ptr.vmem [resolvable:$true] %s24_s19 }
  0x11   :  { %s4853_s20 = scalar_lea.vmem %s62_s17, 4096  ;;  %p4858_p6 = scmp.lt.s32.totalorder %s62_s17, %s62_s17 }
  0x12   :  { %p4854_p5 = scmp.ne.s32.totalorder %s62_s17, %s4853_s20  ;;  %p4859_p7 = scmp.lt.s32.totalorder %s4853_s20, %s4853_s20 }
  0x14   :  { %p4860_p8 = por %p4859_p7, %p4858_p6 }
  0x16   :  { %p4861_p9 = pnand %p4860_p8, %p4854_p5 }
  0x18   :  { %4864 = shalt.err (!%p4861_p9)
}
  0x19   :  { %s5102_s21 = smov 256   ;;  %s5103_s22 = smov 16  }
  0x1a   :  { %67 = dma.hbm_to_vmem [thread:$0]  %s6989_s5, 4096, %s62_s17, [#allocation9], %s5102_s21, %s5102_s21, %s5103_s22  }
  0x1b   :  { %s4873_s1 = scalar_lea.vmem %s25_s19, 128  ;;  %p4878_p11 = scmp.lt.s32.totalorder %s25_s19, %s25_s19 }
  0x1c   :  { %p4874_p10 = scmp.ne.s32.totalorder %s25_s19, %s4873_s1  ;;  %p4879_p12 = scmp.lt.s32.totalorder %s4873_s1, %s4873_s1 }
  0x1e   :  { %p4880_p13 = por %p4879_p12, %p4878_p11 }
  0x20   :  { %p4881_p0 = pnand %p4880_p13, %p4874_p10 }
  0x22   :  { %4884 = shalt.err (!%p4881_p0)
}
  0x23   :  { %27 = dma.hbm_to_vmem [thread:$0]  %s6984_s0, 128, %s25_s19, [#allocation3]  }
  0x24   :  { %s5104_s27 = smov [#allocation7]   ;;  %s5105_s29 = smov [#allocation10]  }
  0x25   :  { %s47_s28 = sshll.u32 %s5104_s27, 4  ;;  %s73_s30 = sshll.u32 %s5105_s29, 4  ;;  %s48_s28 = int_to_ptr.vmem [resolvable:$true] %s47_s28  ;;  %s74_s30 = int_to_ptr.vmem [resolvable:$true] %s73_s30 }
  0x26   :  { %s4893_s10 = scalar_lea.vmem %s48_s28, 4096  ;;  %p4898_p2 = scmp.lt.s32.totalorder %s48_s28, %s48_s28 }
  0x27   :  { %p4894_p1 = scmp.ne.s32.totalorder %s48_s28, %s4893_s10  ;;  %p4899_p3 = scmp.lt.s32.totalorder %s4893_s10, %s4893_s10 }
  0x29   :  { %p4900_p4 = por %p4899_p3, %p4898_p2 }
  0x2b   :  { %p4901_p5 = pnand %p4900_p4, %p4894_p1 }
  0x2d   :  { %4904 = shalt.err (!%p4901_p5)
}
  0x2e   :  { %53 = dma.hbm_to_vmem [thread:$0]  %s6987_s3, 4096, %s48_s28, [#allocation6], %s5102_s21, %s5102_s21, %s5103_s22  }
  0x2f   :  { %s4913_s14 = scalar_lea.vmem %s74_s30, 4096  ;;  %p4918_p7 = scmp.lt.s32.totalorder %s74_s30, %s74_s30 }
  0x30   :  { %p4914_p6 = scmp.ne.s32.totalorder %s74_s30, %s4913_s14  ;;  %p4919_p8 = scmp.lt.s32.totalorder %s4913_s14, %s4913_s14 }
  0x32   :  { %p4920_p9 = por %p4919_p8, %p4918_p7 }
  0x34   :  { %p4921_p10 = pnand %p4920_p9, %p4914_p6 }
  0x36   :  { %4924 = shalt.err (!%p4921_p10)
}
  0x37   :  { %79 = dma.hbm_to_vmem [thread:$0]  %s6990_s6, 4096, %s74_s30, [#allocation9], %s5098_s12, %s5098_s12, %s5099_s13  }
  0x38   :  { %5017 = dma.done.wait [#allocation3], 128  }
  0x39   :  { %5018 = vsyncadd [#allocation3], 4294967168 }
  0x3a   :  { %5019 = dma.done.wait [#allocation6], 6144  }
  0x3b   :  { %5020 = vsyncadd [#allocation6], 4294961152 }
  0x3c   :  { %5021 = dma.done.wait [#allocation9], 8192  }
  0x3d   :  { %5022 = vsyncadd [#allocation9], 4294959104  ;;  %v6994_v0 = vlaneseq  ;;  %v6995_v1 = vmov 0.0   ;;  %v5191_v3 = vld [vmem:[#allocation5] sm:$0xff]  ;;  %v5193_v4 = vld [vmem:[#allocation5 + $0x8] sm:$0xff]  ;;  %p5550_p11 = pmov 0  }
  0x3e   :  { %323 = vmatprep.mubr.f32.mxu0 %v6995_v1  ;;  %394 = vmatprep.mubr.f32.mxu1 %v6995_v1  ;;  %7083 = vst [vmem:[#allocation17_spill] sm:$0xff] %v5191_v3  ;;  %v5195_v5 = vld [vmem:[#allocation5 + $0x10] sm:$0xff]  ;;  %v5197_v6 = vld [vmem:[#allocation5 + $0x18] sm:$0xff]  ;;  %v5199_v7 = vld [vmem:[#allocation5 + $0x20] sm:$0xff]  ;;  %s5562_s18 = smov 0  }
  0x3f   :  { %v5188_v2 = vand.u32 127, %v6994_v0  ;;  %v5201_v8 = vld [vmem:[#allocation5 + $0x28] sm:$0xff]  ;;  %v5203_v9 = vld [vmem:[#allocation5 + $0x30] sm:$0xff]  ;;  %v5205_v10 = vld [vmem:[#allocation5 + $0x38] sm:$0xff] }
  0x40   :  { %v5207_v11 = vld [vmem:[#allocation5 + $0x40] sm:$0xff]  ;;  %v5209_v12 = vld [vmem:[#allocation5 + $0x48] sm:$0xff]  ;;  %v5211_v13 = vld [vmem:[#allocation5 + $0x50] sm:$0xff] }
  0x41   :  { %7082 = vst [vmem:[#allocation16_spill] sm:$0xff] %v5188_v2  ;;  %vm248_vm0 = vcmp.lt.s32.totalorder %v5188_v2, 16  ;;  %v5213_v14 = vld [vmem:[#allocation5 + $0x58] sm:$0xff]  ;;  %v5215_v15 = vld [vmem:[#allocation5 + $0x60] sm:$0xff]  ;;  %v5217_v16 = vld [vmem:[#allocation5 + $0x68] sm:$0xff] }
  0x42   :  { %v5219_v17 = vld [vmem:[#allocation5 + $0x70] sm:$0xff]  ;;  %v5221_v18 = vld [vmem:[#allocation5 + $0x78] sm:$0xff]  ;;  %v5239_v24 = vld [vmem:[#allocation7 + $0xe8] sm:$0xff] }
  0x43   :  { %v5226_v19 = vld [vmem:[%s6986_s2] ss:$0 sm:$0xff]  ;;  %v5233_v22 = vld [vmem:[#allocation7 + $0xf0] sm:$0xff]  ;;  %v5241_v25 = vld [vmem:[#allocation8 + $0xe8] sm:$0xff] }
  0x44   :  { %v5228_v20 = vld [vmem:[#allocation7 + $0xf8] sm:$0xff]  ;;  %v5235_v23 = vld [vmem:[#allocation8 + $0xf0] sm:$0xff]  ;;  %v5243_v26 = vld [vmem:[#allocation7 + $0xe0] sm:$0xff] }
  0x45   :  { %259 = vmatprep.subr.mxu0 %v5228_v20  ;;  %v5231_v21 = vld [vmem:[#allocation8 + $0xf8] sm:$0xff]  ;;  %v5247_v27 = vld [vmem:[#allocation8 + $0xe0] sm:$0xff]  ;;  %v5255_v30 = vld [vmem:[#allocation7 + $0xd0] sm:$0xff] }
  0x46   :  { %330 = vmatprep.subr.mxu1 %v5231_v21  ;;  %260 = vmatpush1.msra.mxu0 %v5233_v22  ;;  %v5249_v28 = vld [vmem:[#allocation7 + $0xd8] sm:$0xff]  ;;  %v5257_v31 = vld [vmem:[#allocation8 + $0xd0] sm:$0xff]  ;;  %v5259_v32 = vld [vmem:[#allocation7 + $0xc8] sm:$0xff] }
  0x47   :  { %331 = vmatpush1.msra.mxu1 %v5235_v23  ;;  %261 = vmatprep.subr.mxu0 %v5239_v24  ;;  %v5251_v29 = vld [vmem:[#allocation8 + $0xd8] sm:$0xff]  ;;  %v5263_v33 = vld [vmem:[#allocation8 + $0xc8] sm:$0xff]  ;;  %v5265_v34 = vld [vmem:[#allocation7 + $0xc0] sm:$0xff] }
  0x48   :  { %332 = vmatprep.subr.mxu1 %v5241_v25  ;;  %262 = vmatpush1.msra.mxu0 %v5243_v26  ;;  %v5269_v35 = vld [vmem:[#allocation8 + $0xc0] sm:$0xff]  ;;  %v5271_v36 = vld [vmem:[#allocation7 + $0xb8] sm:$0xff]  ;;  %v5277_v38 = vld [vmem:[#allocation7 + $0xb0] sm:$0xff] }
  0x49   :  { %333 = vmatpush1.msra.mxu1 %v5247_v27  ;;  %263 = vmatprep.subr.mxu0 %v5249_v28  ;;  %v5275_v37 = vld [vmem:[#allocation8 + $0xb8] sm:$0xff]  ;;  %v5281_v39 = vld [vmem:[#allocation8 + $0xb0] sm:$0xff]  ;;  %v5283_v40 = vld [vmem:[#allocation7 + $0xa8] sm:$0xff] }
  0x4a   :  { %334 = vmatprep.subr.mxu1 %v5251_v29  ;;  %264 = vmatpush1.msra.mxu0 %v5255_v30  ;;  %v5287_v41 = vld [vmem:[#allocation8 + $0xa8] sm:$0xff]  ;;  %v5289_v42 = vld [vmem:[#allocation7 + $0xa0] sm:$0xff]  ;;  %v5295_v44 = vld [vmem:[#allocation7 + $0x98] sm:$0xff] }
  0x4b   :  { %335 = vmatpush1.msra.mxu1 %v5257_v31  ;;  %265 = vmatprep.subr.mxu0 %v5259_v32  ;;  %v5293_v43 = vld [vmem:[#allocation8 + $0xa0] sm:$0xff]  ;;  %v5299_v45 = vld [vmem:[#allocation8 + $0x98] sm:$0xff]  ;;  %v5301_v46 = vld [vmem:[#allocation7 + $0x90] sm:$0xff] }
  0x4c   :  { %336 = vmatprep.subr.mxu1 %v5263_v33  ;;  %266 = vmatpush1.msra.mxu0 %v5265_v34  ;;  %v5305_v47 = vld [vmem:[#allocation8 + $0x90] sm:$0xff]  ;;  %v5307_v48 = vld [vmem:[#allocation7 + $0x88] sm:$0xff]  ;;  %v5313_v50 = vld [vmem:[#allocation7 + $0x80] sm:$0xff] }
  0x4d   :  { %337 = vmatpush1.msra.mxu1 %v5269_v35  ;;  %267 = vmatprep.subr.mxu0 %v5271_v36  ;;  %7084 = vst [vmem:[#allocation18_spill] sm:$0xff] %v5307_v48  ;;  %v5311_v49 = vld [vmem:[#allocation8 + $0x88] sm:$0xff]  ;;  %7086 = vst [vmem:[#allocation20_spill] sm:$0xff] %v5313_v50  ;;  %v5317_v51 = vld [vmem:[#allocation8 + $0x80] sm:$0xff] }
  0x4e   :  { %338 = vmatprep.subr.mxu1 %v5275_v37  ;;  %268 = vmatpush1.msra.mxu0 %v5277_v38  ;;  %7085 = vst [vmem:[#allocation19_spill] sm:$0xff] %v5311_v49  ;;  %7087 = vst [vmem:[#allocation21_spill] sm:$0xff] %v5317_v51  ;;  %v5319_v52 = vld [vmem:[#allocation7 + $0x78] sm:$0xff]  ;;  %v5325_v54 = vld [vmem:[#allocation7 + $0x70] sm:$0xff] }
  0x4f   :  { %339 = vmatpush1.msra.mxu1 %v5281_v39  ;;  %269 = vmatprep.subr.mxu0 %v5283_v40  ;;  %7088 = vst [vmem:[#allocation22_spill] sm:$0xff] %v5319_v52  ;;  %v5323_v53 = vld [vmem:[#allocation8 + $0x78] sm:$0xff]  ;;  %7090 = vst [vmem:[#allocation24_spill] sm:$0xff] %v5325_v54  ;;  %v5329_v55 = vld [vmem:[#allocation8 + $0x70] sm:$0xff] }
  0x50   :  { %340 = vmatprep.subr.mxu1 %v5287_v41  ;;  %270 = vmatpush1.msra.mxu0 %v5289_v42  ;;  %7089 = vst [vmem:[#allocation23_spill] sm:$0xff] %v5323_v53  ;;  %7091 = vst [vmem:[#allocation25_spill] sm:$0xff] %v5329_v55  ;;  %v5331_v56 = vld [vmem:[#allocation7 + $0x68] sm:$0xff]  ;;  %v5337_v58 = vld [vmem:[#allocation7 + $0x60] sm:$0xff] }
  0x51   :  { %341 = vmatpush1.msra.mxu1 %v5293_v43  ;;  %271 = vmatprep.subr.mxu0 %v5295_v44  ;;  %7092 = vst [vmem:[#allocation26_spill] sm:$0xff] %v5331_v56  ;;  %v5335_v57 = vld [vmem:[#allocation8 + $0x68] sm:$0xff]  ;;  %7094 = vst [vmem:[#allocation28_spill] sm:$0xff] %v5337_v58  ;;  %v5341_v59 = vld [vmem:[#allocation8 + $0x60] sm:$0xff] }
  0x52   :  { %342 = vmatprep.subr.mxu1 %v5299_v45  ;;  %272 = vmatpush1.msra.mxu0 %v5301_v46  ;;  %7093 = vst [vmem:[#allocation27_spill] sm:$0xff] %v5335_v57  ;;  %7095 = vst [vmem:[#allocation29_spill] sm:$0xff] %v5341_v59  ;;  %v5343_v60 = vld [vmem:[#allocation7 + $0x58] sm:$0xff]  ;;  %v5349_v62 = vld [vmem:[#allocation7 + $0x50] sm:$0xff] }
  0x53   :  { %343 = vmatpush1.msra.mxu1 %v5305_v47  ;;  %273 = vmatprep.subr.mxu0 %v5307_v48  ;;  %7096 = vst [vmem:[#allocation30_spill] sm:$0xff] %v5343_v60  ;;  %v5347_v61 = vld [vmem:[#allocation8 + $0x58] sm:$0xff]  ;;  %7098 = vst [vmem:[#allocation32_spill] sm:$0xff] %v5349_v62  ;;  %v5353_v63 = vld [vmem:[#allocation8 + $0x50] sm:$0xff] }
  0x54   :  { %344 = vmatprep.subr.mxu1 %v5311_v49  ;;  %274 = vmatpush1.msra.mxu0 %v5313_v50  ;;  %7097 = vst [vmem:[#allocation31_spill] sm:$0xff] %v5347_v61  ;;  %7099 = vst [vmem:[#allocation33_spill] sm:$0xff] %v5353_v63  ;;  %v5355_v0 = vld [vmem:[#allocation7 + $0x48] sm:$0xff]  ;;  %v5361_v2 = vld [vmem:[#allocation7 + $0x40] sm:$0xff] }
  0x55   :  { %345 = vmatpush1.msra.mxu1 %v5317_v51  ;;  %275 = vmatprep.subr.mxu0 %v5319_v52  ;;  %7100 = vst [vmem:[#allocation34_spill] sm:$0xff] %v5355_v0  ;;  %v5359_v1 = vld [vmem:[#allocation8 + $0x48] sm:$0xff]  ;;  %7102 = vst [vmem:[#allocation36_spill] sm:$0xff] %v5361_v2 }
  0x56   :  { %346 = vmatprep.subr.mxu1 %v5323_v53  ;;  %276 = vmatpush1.msra.mxu0 %v5325_v54  ;;  %7101 = vst [vmem:[#allocation35_spill] sm:$0xff] %v5359_v1 }
  0x57   :  { %347 = vmatpush1.msra.mxu1 %v5329_v55  ;;  %277 = vmatprep.subr.mxu0 %v5331_v56  ;;  %v5365_v56 = vld [vmem:[#allocation8 + $0x40] sm:$0xff]  ;;  %v5409_v55 = vld [vmem:[#allocation8 + $0x8] sm:$0xff] }
  0x58   :  { %348 = vmatprep.subr.mxu1 %v5335_v57  ;;  %278 = vmatpush1.msra.mxu0 %v5337_v58  ;;  %7103 = vst [vmem:[#allocation37_spill] sm:$0xff] %v5365_v56  ;;  %v5367_v57 = vld [vmem:[#allocation7 + $0x38] sm:$0xff]  ;;  %7117 = vst [vmem:[#allocation51_spill] sm:$0xff] %v5409_v55 }
  0x59   :  { %349 = vmatpush1.msra.mxu1 %v5341_v59  ;;  %279 = vmatprep.subr.mxu0 %v5343_v60  ;;  %7104 = vst [vmem:[#allocation38_spill] sm:$0xff] %v5367_v57  ;;  %v5371_v58 = vld [vmem:[#allocation8 + $0x38] sm:$0xff]  ;;  %v5373_v59 = vld [vmem:[#allocation7 + $0x30] sm:$0xff] }
  0x5a   :  { %350 = vmatprep.subr.mxu1 %v5347_v61  ;;  %280 = vmatpush1.msra.mxu0 %v5349_v62  ;;  %7105 = vst [vmem:[#allocation39_spill] sm:$0xff] %v5371_v58  ;;  %7106 = vst [vmem:[#allocation40_spill] sm:$0xff] %v5373_v59  ;;  %v5377_v60 = vld [vmem:[#allocation8 + $0x30] sm:$0xff]  ;;  %v5379_v61 = vld [vmem:[#allocation7 + $0x28] sm:$0xff] }
  0x5b   :  { %351 = vmatpush1.msra.mxu1 %v5353_v63  ;;  %281 = vmatprep.subr.mxu0 %v5355_v0  ;;  %7107 = vst [vmem:[#allocation41_spill] sm:$0xff] %v5377_v60  ;;  %7108 = vst [vmem:[#allocation42_spill] sm:$0xff] %v5379_v61  ;;  %v5383_v62 = vld [vmem:[#allocation8 + $0x28] sm:$0xff]  ;;  %v5385_v63 = vld [vmem:[#allocation7 + $0x20] sm:$0xff] }
  0x5c   :  { %352 = vmatprep.subr.mxu1 %v5359_v1  ;;  %282 = vmatpush1.msra.mxu0 %v5361_v2  ;;  %7109 = vst [vmem:[#allocation43_spill] sm:$0xff] %v5383_v62  ;;  %7110 = vst [vmem:[#allocation44_spill] sm:$0xff] %v5385_v63  ;;  %v5389_v0 = vld [vmem:[#allocation8 + $0x20] sm:$0xff]  ;;  %v5391_v1 = vld [vmem:[#allocation7 + $0x18] sm:$0xff] }
  0x5d   :  { %353 = vmatpush1.msra.mxu1 %v5365_v56  ;;  %283 = vmatprep.subr.mxu0 %v5367_v57  ;;  %7111 = vst [vmem:[#allocation45_spill] sm:$0xff] %v5389_v0  ;;  %7112 = vst [vmem:[#allocation46_spill] sm:$0xff] %v5391_v1  ;;  %v5393_v2 = vld [vmem:[#allocation2] sm:$0xff]  ;;  %v5399_v57 = vld [vmem:[#allocation7 + $0x10] sm:$0xff] }
  0x5e   :  { %354 = vmatprep.subr.mxu1 %v5371_v58  ;;  %284 = vmatpush1.msra.mxu0 %v5373_v59  ;;  %v5397_v56 = vld [vmem:[#allocation8 + $0x18] sm:$0xff]  ;;  %7114 = vst [vmem:[#allocation48_spill] sm:$0xff] %v5399_v57  ;;  %v5403_v58 = vld [vmem:[#allocation8 + $0x10] sm:$0xff]  ;;  %v5405_v59 = vld [vmem:[#allocation7 + $0x8] sm:$0xff]  ;;  %vm250_vm1 = vcmp.ge.f32.partialorder %v5393_v2, 0.0  ;;  %vm3255_vm2 = vcmp.le.f32.partialorder %v5393_v2, 0.0 }
  0x5f   :  { %355 = vmatpush1.msra.mxu1 %v5377_v60  ;;  %285 = vmatprep.subr.mxu0 %v5379_v61  ;;  %7113 = vst [vmem:[#allocation47_spill] sm:$0xff] %v5397_v56  ;;  %7115 = vst [vmem:[#allocation49_spill] sm:$0xff] %v5403_v58  ;;  %v5411_v60 = vld [vmem:[#allocation7] sm:$0xff]  ;;  %v7029_v61 = vsub.f32 0.0, %v5393_v2 }
  0x60   :  { %356 = vmatprep.subr.mxu1 %v5383_v62  ;;  %286 = vmatpush1.msra.mxu0 %v5385_v63  ;;  %7116 = vst [vmem:[#allocation50_spill] sm:$0xff] %v5405_v59  ;;  %7118 = vst [vmem:[#allocation52_spill] sm:$0xff] %v5411_v60  ;;  %v5416_v62 = vld [vmem:[#allocation8] sm:$0xff]  ;;  %v5420_v63 = vld [vmem:[#allocation10 + $0xf8] sm:$0xff] }
  0x61   :  { %357 = vmatpush1.msra.mxu1 %v5389_v0  ;;  %287 = vmatprep.subr.mxu0 %v5391_v1  ;;  %7119 = vst [vmem:[#allocation53_spill] sm:$0xff] %v5416_v62  ;;  %7120 = vst [vmem:[#allocation54_spill] sm:$0xff] %v5420_v63  ;;  %v5424_v1 = vld [vmem:[#allocation10 + $0x78] sm:$0xff] }
  0x62   :  { %358 = vmatprep.subr.mxu1 %v5397_v56  ;;  %288 = vmatpush1.msra.mxu0 %v5399_v57  ;;  %7121 = vst [vmem:[#allocation55_spill] sm:$0xff] %v5424_v1  ;;  %v5429_v57 = vld [vmem:[#allocation10 + $0xf0] sm:$0xff]  ;;  %v7123_v56 = vmov 0.0  }
  0x63   :  { %359 = vmatpush1.msra.mxu1 %v5403_v58  ;;  %289 = vmatprep.subr.mxu0 %v5405_v59  ;;  %7122 = vst [vmem:[#allocation56_spill] sm:$0xff] %v5429_v57  ;;  %v5433_v59 = vld [vmem:[#allocation10 + $0x70] sm:$0xff] }
  0x64   :  { %360 = vmatprep.subr.mxu1 %v5409_v55  ;;  %290 = vmatpush1.msra.mxu0 %v5411_v60  ;;  %7124 = vst [vmem:[#allocation57_spill] sm:$0xff] %v5433_v59  ;;  %v5436_v55 = vld [vmem:[#allocation10 + $0xe8] sm:$0xff] }
  0x65   :  { %361 = vmatpush1.msra.mxu1 %v5416_v62  ;;  %324 = vmatmul.mubr.f32.vlgmr.msra.gmra.mxu0 %v7029_v61  ;;  %7125 = vst [vmem:[#allocation58_spill] sm:$0xff] %v5436_v55  ;;  %v5439_v60 = vld [vmem:[#allocation10 + $0x68] sm:$0xff]  ;;  %v5442_v62 = vld [vmem:[#allocation10 + $0xe0] sm:$0xff] }
  0x66   :  { %395 = vmatmul.mubr.f32.vlgmr.msra.gmra.mxu1 %v7123_v56  ;;  %3263 = vmatprep.subr.mxu0 %v5420_v63  ;;  %7126 = vst [vmem:[#allocation59_spill] sm:$0xff] %v5439_v60  ;;  %7127 = vst [vmem:[#allocation60_spill] sm:$0xff] %v5442_v62  ;;  %v5445_v61 = vld [vmem:[#allocation10 + $0x60] sm:$0xff]  ;;  %v5448_v63 = vld [vmem:[#allocation10 + $0xd8] sm:$0xff] }
  0x67   :  { %3264 = vmatpush3.msra.mxu0 %v5424_v1  ;;  %7128 = vst [vmem:[#allocation61_spill] sm:$0xff] %v5445_v61  ;;  %7129 = vst [vmem:[#allocation62_spill] sm:$0xff] %v5448_v63  ;;  %v5451_v1 = vld [vmem:[#allocation10 + $0x58] sm:$0xff] }
  0x68   :  { %3265 = vmatprep.subr.mxu0 %v5429_v57  ;;  %7130 = vst [vmem:[#allocation63_spill] sm:$0xff] %v5451_v1  ;;  %v5454_v57 = vld [vmem:[#allocation10 + $0xd0] sm:$0xff] }
  0x69   :  { %3266 = vmatpush3.msra.mxu0 %v5433_v59  ;;  %7131 = vst [vmem:[#allocation64_spill] sm:$0xff] %v5454_v57  ;;  %v5457_v59 = vld [vmem:[#allocation10 + $0x50] sm:$0xff] }
  0x6a   :  { %3267 = vmatprep.subr.mxu0 %v5436_v55  ;;  %7132 = vst [vmem:[#allocation65_spill] sm:$0xff] %v5457_v59  ;;  %v5460_v55 = vld [vmem:[#allocation10 + $0xc8] sm:$0xff] }
  0x6b   :  { %3268 = vmatpush3.msra.mxu0 %v5439_v60  ;;  %7133 = vst [vmem:[#allocation66_spill] sm:$0xff] %v5460_v55  ;;  %v5463_v60 = vld [vmem:[#allocation10 + $0x48] sm:$0xff] }
  0x6c   :  { %3269 = vmatprep.subr.mxu0 %v5442_v62  ;;  %7134 = vst [vmem:[#allocation67_spill] sm:$0xff] %v5463_v60  ;;  %v5466_v62 = vld [vmem:[#allocation10 + $0xc0] sm:$0xff] }
  0x6d   :  { %3270 = vmatpush3.msra.mxu0 %v5445_v61  ;;  %7135 = vst [vmem:[#allocation68_spill] sm:$0xff] %v5466_v62  ;;  %v5469_v61 = vld [vmem:[#allocation10 + $0x40] sm:$0xff] }
  0x6e   :  { %3271 = vmatprep.subr.mxu0 %v5448_v63  ;;  %7136 = vst [vmem:[#allocation69_spill] sm:$0xff] %v5469_v61  ;;  %v5472_v63 = vld [vmem:[#allocation10 + $0xb8] sm:$0xff] }
  0x6f   :  { %3272 = vmatpush3.msra.mxu0 %v5451_v1  ;;  %7137 = vst [vmem:[#allocation70_spill] sm:$0xff] %v5472_v63  ;;  %v5475_v1 = vld [vmem:[#allocation10 + $0x38] sm:$0xff] }
  0x70   :  { %3273 = vmatprep.subr.mxu0 %v5454_v57  ;;  %7138 = vst [vmem:[#allocation71_spill] sm:$0xff] %v5475_v1  ;;  %v5478_v57 = vld [vmem:[#allocation10 + $0xb0] sm:$0xff] }
  0x71   :  { %3274 = vmatpush3.msra.mxu0 %v5457_v59  ;;  %7139 = vst [vmem:[#allocation72_spill] sm:$0xff] %v5478_v57  ;;  %v5481_v59 = vld [vmem:[#allocation10 + $0x30] sm:$0xff] }
  0x72   :  { %3275 = vmatprep.subr.mxu0 %v5460_v55  ;;  %7140 = vst [vmem:[#allocation73_spill] sm:$0xff] %v5481_v59  ;;  %v5484_v55 = vld [vmem:[#allocation10 + $0xa8] sm:$0xff] }
  0x73   :  { %3276 = vmatpush3.msra.mxu0 %v5463_v60  ;;  %7141 = vst [vmem:[#allocation74_spill] sm:$0xff] %v5484_v55  ;;  %v5487_v60 = vld [vmem:[#allocation10 + $0x28] sm:$0xff] }
  0x74   :  { %3277 = vmatprep.subr.mxu0 %v5466_v62  ;;  %7142 = vst [vmem:[#allocation75_spill] sm:$0xff] %v5487_v60  ;;  %v5490_v62 = vld [vmem:[#allocation10 + $0xa0] sm:$0xff] }
  0x75   :  { %3278 = vmatpush3.msra.mxu0 %v5469_v61  ;;  %7143 = vst [vmem:[#allocation76_spill] sm:$0xff] %v5490_v62  ;;  %v5493_v61 = vld [vmem:[#allocation10 + $0x20] sm:$0xff] }
  0x76   :  { %3279 = vmatprep.subr.mxu0 %v5472_v63  ;;  %7144 = vst [vmem:[#allocation77_spill] sm:$0xff] %v5493_v61 }
  0x77   :  { %3280 = vmatpush3.msra.mxu0 %v5475_v1  ;;  %v5498_v1 = vld [vmem:[#allocation10 + $0x98] sm:$0xff] }
  0x78   :  { %3281 = vmatprep.subr.mxu0 %v5478_v57  ;;  %7145 = vst [vmem:[#allocation78_spill] sm:$0xff] %v5498_v1  ;;  %v5501_v57 = vld [vmem:[#allocation10 + $0x18] sm:$0xff] }
  0x79   :  { %3282 = vmatpush3.msra.mxu0 %v5481_v59  ;;  %7146 = vst [vmem:[#allocation79_spill] sm:$0xff] %v5501_v57  ;;  %v5504_v59 = vld [vmem:[#allocation10 + $0x90] sm:$0xff] }
  0x7a   :  { %3283 = vmatprep.subr.mxu0 %v5484_v55  ;;  %7147 = vst [vmem:[#allocation80_spill] sm:$0xff] %v5504_v59  ;;  %v5507_v55 = vld [vmem:[#allocation10 + $0x10] sm:$0xff] }
  0x7b   :  { %3284 = vmatpush3.msra.mxu0 %v5487_v60  ;;  %7148 = vst [vmem:[#allocation81_spill] sm:$0xff] %v5507_v55  ;;  %v5510_v60 = vld [vmem:[#allocation10 + $0x88] sm:$0xff] }
  0x7c   :  { %3285 = vmatprep.subr.mxu0 %v5490_v62  ;;  %7149 = vst [vmem:[#allocation82_spill] sm:$0xff] %v5510_v60  ;;  %v5515_v62 = vld [vmem:[#allocation10 + $0x80] sm:$0xff] }
  0x7d   :  { %3286 = vmatpush3.msra.mxu0 %v5493_v61  ;;  %v5513_v61 = vld [vmem:[#allocation10 + $0x8] sm:$0xff]  ;;  %7151 = vst [vmem:[#allocation84_spill] sm:$0xff] %v5515_v62 }
  0x7e   :  { %3287 = vmatprep.subr.mxu0 %v5498_v1  ;;  %7150 = vst [vmem:[#allocation83_spill] sm:$0xff] %v5513_v61  ;;  %v5517_v1 = vld [vmem:[#allocation10] sm:$0xff] }
  0x7f   :  { %3288 = vmatpush3.msra.mxu0 %v5501_v57  ;;  %7152 = vst [vmem:[#allocation85_spill] sm:$0xff] %v5517_v1 }
  0x80   :  { %3289 = vmatprep.subr.mxu0 %v5504_v59  ;;  %v7153_v59 = vlaneseq }
  0x81   :  { %3290 = vmatpush3.msra.mxu0 %v5507_v55  ;;  %v234_v55 = vld [vmem:[%s6988_s4] sm:$0x3] }
  0x82   :  { %3291 = vmatprep.subr.mxu0 %v5510_v60  ;;  %v223_v57 = vshrl.u32 %v7153_v59, 7 }
  0x83   :  { %3292 = vmatpush3.msra.mxu0 %v5513_v61 }
  0x84   :  { %3293 = vmatprep.subr.mxu0 %v5515_v62  ;;  %v224_v63 = vsub.s32 0, %v223_v57  ;;  %v242_v60 = vsub.s32 1, %v223_v57  ;;  %v219_v57 = vld [vmem:[%s6991_s7] sm:$0x1] }
  0x85   :  { %3294 = vmatpush3.msra.mxu0 %v5517_v1  ;;  %v220_v50 = vsub.f32 0.0, %v219_v57 }
  0x86   :  { %v5526_v58 = vrot.slane %v234_v55, %v224_v63  ;;  %v5528_v0 = vrot.slane %v234_v55, %v242_v60 }
  0x87   :  { %v5537_v55 = vrot.slane %v220_v50, %v224_v63  ;;  %v7158_v50 = vsub.f32 0.0, %v5393_v2 }
  0x88   :  { %7154 = vst [vmem:[#allocation86_spill] sm:$0xff] %v5526_v58  ;;  %7155 = vst [vmem:[#allocation87_spill] sm:$0xff] %v5528_v0 }
  0x89   :  { %7156 = vst [vmem:[#allocation88_spill] sm:$0xff] %v5537_v55  ;;  %v476_v63 = vmul.f32 0.1, %v7158_v50 }
 0x125   :  { %v325_v54 = vpop.f32.mrf.mxu0 }
 0x126   :  { %v396_v53 = vpop.f32.mrf.mxu1  ;;  %v326_v61 = vadd.f32 %v325_v54, %v5526_v58 }
 0x127   :  { %v327_v52 = vpop.f32.mrf.mxu0 }
 0x128   :  { %v328_v62 = vadd.f32 %v327_v52, %v5528_v0  ;;  %v398_v1 = vpop.f32.mrf.mxu1  ;;  %v401_v59 = vmul.f32 %v396_v53, %v326_v61  ;;  %v5542_v52 = vld [vmem:[%s6992_s8] ss:$0 sm:$0xff] }
 0x129   :  { %7157 = vst [vmem:[#allocation89_spill] sm:$0xff] %v5542_v52 }
 0x12a   :  { %v402_v51 = vmul.f32 %v398_v1, %v328_v62  ;;  %v3254_v1 = vsel %vm250_vm1, 1.0, %v7123_v56 }
 0x12b   :  { %v253_v53 = vmul.f32 %v3254_v1, %v5537_v55  ;;  %v5556_v1 = vmov 0.0  }
 0x12c   :  { %467 = vmatprep.mubr.f32.mxu0 %v402_v51  ;;  %v3256_v51 = vsel %vm3255_vm2, 1.0, %v7123_v56 }
 0x12d   :  { %468 = vmatmul.mubr.f32.vlgmr.msra.gmra.mxu0 %v401_v59  ;;  %v257_v54 = vmul.f32 %v3256_v51, %v5542_v52  ;;  %v5558_v51 = vmov 0.0  }
 0x12f   :  { %v258_v60 = vadd.f32 %v257_v54, %v253_v53 }
 0x131   :  { %v474_v57 = vmul.f32 0.1, %v258_v60 }
 0x1ed   :  { %v3295_v61 = vpop.f32.mrf.mxu0 }
 0x1ef   :  { %v3296_v62 = vpop.f32.mrf.mxu0 }
 0x1f0   :  { %v3297_v59 = vadd.f32 %v3296_v62, %v3295_v61 }
 0x1f2   :  { %v473_v0 = vmul.f32 0.1, %v3297_v59 }
 0x1f4   :  { %v475_v58 = vadd.f32 %v474_v57, %v473_v0 }
 0x1f6   :  { %v477_v49 = vadd.f32 %v476_v63, %v475_v58 }
 0x1f8   :  { %v478_v48 = vsub.f32 0.0, %v477_v49  }
 0x1fa   :  { %v7161_v56 = vmov %v478_v48 }
 0x1fb LB: > { %v7162_v3 = vld [vmem:[#allocation17_spill] sm:$0xff]  ;;  %v7074_v0 = vmov 0.0   ;;  %vm5108_vm3 = vmmov 0   ;;  %v492_v49 = vadd.f32 %v5039_v51, %v5043_v48  ;;  %s567_s20 = scalar_select %p5027_p11, 1, 0  ;;  %s5047_s18 = sphi %s5562_s18, %s1220_s18   ;;  %v5043_v48 = vphi %v478_v48, %v1202_v48   ;;  %v5039_v51 = vphi %v5558_v51, %v1200_v51   ;;  %v5035_v1 = vphi %v5556_v1, %v1203_v1   ;;  %v5031_v56 = vphi %v7161_v56, %v7175_v56   ;;  %p5027_p11 = pphi %p5550_p11, %p1219_p11  }
 0x1fc   : > { %3776 = vmatprep.subr.mxu0 %v7074_v0  ;;  %3808 = vmatprep.mubr.msk.f32.mxu0 %vm5108_vm3, %v7074_v0  ;;  %s1220_s18 = sadd.s32 8, %s5047_s18  }
 0x1fd   : > { %3777 = vmatpush3.msra.mxu0 %v5221_v18  ;;  %3811 = vmatprep.subr.mxu1 %v7074_v0  ;;  %v568_v55 = vstv %s567_s20 }
 0x1fe   : > { %3778 = vmatprep.subr.mxu0 %v7074_v0  ;;  %3812 = vmatpush3.msra.mxu1 %v5221_v18  ;;  %vm569_vm4 = vcmp.eq.s32.totalorder %v568_v55, 1 }
 0x1ff   : > { %3779 = vmatpush3.msra.mxu0 %v5219_v17  ;;  %3813 = vmatprep.subr.mxu1 %v7074_v0 }
 0x200   : > { %3780 = vmatprep.subr.mxu0 %v7074_v0  ;;  %3814 = vmatpush3.msra.mxu1 %v5219_v17 }
 0x201   : > { %3781 = vmatpush3.msra.mxu0 %v5217_v16  ;;  %3815 = vmatprep.subr.mxu1 %v7074_v0 }
 0x202   : > { %3782 = vmatprep.subr.mxu0 %v7074_v0  ;;  %3816 = vmatpush3.msra.mxu1 %v5217_v16 }
 0x203   : > { %3783 = vmatpush3.msra.mxu0 %v5215_v15  ;;  %3817 = vmatprep.subr.mxu1 %v7074_v0 }
 0x204   : > { %3784 = vmatprep.subr.mxu0 %v7074_v0  ;;  %3818 = vmatpush3.msra.mxu1 %v5215_v15 }
 0x205   : > { %3785 = vmatpush3.msra.mxu0 %v5213_v14  ;;  %3819 = vmatprep.subr.mxu1 %v7074_v0 }
 0x206   : > { %3786 = vmatprep.subr.mxu0 %v7074_v0  ;;  %3820 = vmatpush3.msra.mxu1 %v5213_v14 }
 0x207   : > { %3787 = vmatpush3.msra.mxu0 %v5211_v13  ;;  %3821 = vmatprep.subr.mxu1 %v7074_v0 }
 0x208   : > { %3788 = vmatprep.subr.mxu0 %v7074_v0  ;;  %3822 = vmatpush3.msra.mxu1 %v5211_v13 }
 0x209   : > { %3789 = vmatpush3.msra.mxu0 %v5209_v12  ;;  %3823 = vmatprep.subr.mxu1 %v7074_v0 }
 0x20a   : > { %3790 = vmatprep.subr.mxu0 %v7074_v0  ;;  %3824 = vmatpush3.msra.mxu1 %v5209_v12 }
 0x20b   : > { %3791 = vmatpush3.msra.mxu0 %v5207_v11  ;;  %3825 = vmatprep.subr.mxu1 %v7074_v0 }
 0x20c   : > { %3792 = vmatprep.subr.mxu0 %v7074_v0  ;;  %3826 = vmatpush3.msra.mxu1 %v5207_v11 }
 0x20d   : > { %3793 = vmatpush3.msra.mxu0 %v5205_v10  ;;  %3827 = vmatprep.subr.mxu1 %v7074_v0 }
 0x20e   : > { %3794 = vmatprep.subr.mxu0 %v7074_v0  ;;  %3828 = vmatpush3.msra.mxu1 %v5205_v10 }
 0x20f   : > { %3795 = vmatpush3.msra.mxu0 %v5203_v9  ;;  %3829 = vmatprep.subr.mxu1 %v7074_v0 }
 0x210   : > { %3796 = vmatprep.subr.mxu0 %v7074_v0  ;;  %3830 = vmatpush3.msra.mxu1 %v5203_v9 }
 0x211   : > { %3797 = vmatpush3.msra.mxu0 %v5201_v8  ;;  %3831 = vmatprep.subr.mxu1 %v7074_v0 }
 0x212   : > { %3798 = vmatprep.subr.mxu0 %v7074_v0  ;;  %3832 = vmatpush3.msra.mxu1 %v5201_v8 }
 0x213   : > { %3799 = vmatpush3.msra.mxu0 %v5199_v7  ;;  %3833 = vmatprep.subr.mxu1 %v7074_v0 }
 0x214   : > { %3800 = vmatprep.subr.mxu0 %v7074_v0  ;;  %3834 = vmatpush3.msra.mxu1 %v5199_v7 }
 0x215   : > { %3801 = vmatpush3.msra.mxu0 %v5197_v6  ;;  %3835 = vmatprep.subr.mxu1 %v7074_v0 }
 0x216   : > { %3802 = vmatprep.subr.mxu0 %v7074_v0  ;;  %3836 = vmatpush3.msra.mxu1 %v5197_v6 }
 0x217   : > { %3803 = vmatpush3.msra.mxu0 %v5195_v5  ;;  %3837 = vmatprep.subr.mxu1 %v7074_v0 }
 0x218   : > { %3804 = vmatprep.subr.mxu0 %v7074_v0  ;;  %3838 = vmatpush3.msra.mxu1 %v5195_v5 }
 0x219   : > { %3805 = vmatpush3.msra.mxu0 %v5193_v4  ;;  %3839 = vmatprep.subr.mxu1 %v7074_v0 }
 0x21a   : > { %3806 = vmatprep.subr.mxu0 %v7074_v0  ;;  %3840 = vmatpush3.msra.mxu1 %v5193_v4 }
 0x21b   : > { %3807 = vmatpush3.msra.mxu0 %v7162_v3  ;;  %3841 = vmatprep.subr.mxu1 %v7074_v0 }
 0x21c   : > { %3809 = vmatmul.mubr.f32.vlgmr.msra.gmra.mxu0 %v492_v49  ;;  %3842 = vmatpush3.msra.mxu1 %v7162_v3 }
 0x21d   : > { %3843 = vmatprep.mubr.msk.f32.mxu1 %vm5108_vm3, %v7074_v0  ;;  %3846 = vmatprep.subr.mxu0 %v7074_v0 }
 0x21e   : > { %3847 = vmatpush3.msra.mxu0 %v5221_v18  ;;  %3878 = vmatprep.mubr.msk.f32.mxu0 %vm5108_vm3, %v7074_v0 }
 0x21f   : > { %3848 = vmatprep.subr.mxu0 %v7074_v0  ;;  %3881 = vmatprep.subr.mxu1 %v7074_v0 }
 0x220   : > { %3849 = vmatpush3.msra.mxu0 %v5219_v17 }
 0x221   : > { %3850 = vmatprep.subr.mxu0 %v7074_v0 }
 0x222   : > { %3851 = vmatpush3.msra.mxu0 %v5217_v16 }
 0x223   : > { %3852 = vmatprep.subr.mxu0 %v7074_v0 }
 0x224   : > { %3853 = vmatpush3.msra.mxu0 %v5215_v15 }
 0x225   : > { %3854 = vmatprep.subr.mxu0 %v7074_v0 }
 0x226   : > { %3855 = vmatpush3.msra.mxu0 %v5213_v14 }
 0x227   : > { %3856 = vmatprep.subr.mxu0 %v7074_v0 }
 0x228   : > { %3857 = vmatpush3.msra.mxu0 %v5211_v13 }
 0x229   : > { %3858 = vmatprep.subr.mxu0 %v7074_v0 }
 0x22a   : > { %3859 = vmatpush3.msra.mxu0 %v5209_v12 }
 0x22b   : > { %3860 = vmatprep.subr.mxu0 %v7074_v0 }
 0x22c   : > { %3861 = vmatpush3.msra.mxu0 %v5207_v11 }
 0x22d   : > { %3862 = vmatprep.subr.mxu0 %v7074_v0 }
 0x22e   : > { %3863 = vmatpush3.msra.mxu0 %v5205_v10 }
 0x22f   : > { %3864 = vmatprep.subr.mxu0 %v7074_v0 }
 0x230   : > { %3865 = vmatpush3.msra.mxu0 %v5203_v9 }
 0x231   : > { %3866 = vmatprep.subr.mxu0 %v7074_v0 }
 0x232   : > { %3867 = vmatpush3.msra.mxu0 %v5201_v8 }
 0x233   : > { %3868 = vmatprep.subr.mxu0 %v7074_v0 }
 0x234   : > { %3869 = vmatpush3.msra.mxu0 %v5199_v7 }
 0x235   : > { %3870 = vmatprep.subr.mxu0 %v7074_v0 }
 0x236   : > { %3871 = vmatpush3.msra.mxu0 %v5197_v6 }
 0x237   : > { %3872 = vmatprep.subr.mxu0 %v7074_v0 }
 0x238   : > { %3873 = vmatpush3.msra.mxu0 %v5195_v5 }
 0x239   : > { %3874 = vmatprep.subr.mxu0 %v7074_v0 }
 0x23a   : > { %3875 = vmatpush3.msra.mxu0 %v5193_v4 }
 0x23b   : > { %3876 = vmatprep.subr.mxu0 %v7074_v0 }
 0x23c   : > { %3877 = vmatpush3.msra.mxu0 %v7162_v3 }
 0x23d   : > { %3916 = vmatprep.subr.mxu0 %v7074_v0 }
 0x2dc   : > { %v559_v48 = vpop.f32.mrf.mxu0 }
 0x2dd   : > { %v5687_v58 = vadd.f32 %v5226_v19, %v559_v48 }
 0x2de   : > { %v3810_v53 = vpop.f32.mrf.mxu0 }
 0x2df   : > { %v571_v54 = vsub.f32 0.0, %v5687_v58  ;;  %v564_v60 = vadd.f32 %v5035_v1, %v5687_v58  ;;  %v563_v61 = vsub.f32 %v492_v49, %v5687_v58 }
 0x2e1   : > { %572 = vmax.xlane.f32.xlu0 %v571_v54  ;;  %v565_v62 = vmax.f32 %v564_v60, 0.0 }
 0x2e3   : > { %v566_v59 = vsub.f32 %v564_v60, %v565_v62  ;;  %v583_v57 = vadd.f32 %v565_v62, %v563_v61 }
 0x2e5   : > { %3844 = vmatmul.mubr.f32.vlgmr.msra.gmra.mxu1 %v583_v57 }
 0x2e6   : > { %3882 = vmatpush3.msra.mxu1 %v5221_v18  ;;  %3913 = vmatprep.mubr.msk.f32.mxu1 %vm5108_vm3, %v7074_v0 }
 0x2e7   : > { %3883 = vmatprep.subr.mxu1 %v7074_v0 }
 0x2e8   : > { %3884 = vmatpush3.msra.mxu1 %v5219_v17 }
 0x2e9   : > { %3885 = vmatprep.subr.mxu1 %v7074_v0 }
 0x2ea   : > { %3886 = vmatpush3.msra.mxu1 %v5217_v16 }
 0x2eb   : > { %3887 = vmatprep.subr.mxu1 %v7074_v0 }
 0x2ec   : > { %3888 = vmatpush3.msra.mxu1 %v5215_v15 }
 0x2ed   : > { %3889 = vmatprep.subr.mxu1 %v7074_v0 }
 0x2ee   : > { %3890 = vmatpush3.msra.mxu1 %v5213_v14 }
 0x2ef   : > { %3891 = vmatprep.subr.mxu1 %v7074_v0 }
 0x2f0   : > { %3892 = vmatpush3.msra.mxu1 %v5211_v13 }
 0x2f1   : > { %3893 = vmatprep.subr.mxu1 %v7074_v0 }
 0x2f2   : > { %3894 = vmatpush3.msra.mxu1 %v5209_v12 }
 0x2f3   : > { %3895 = vmatprep.subr.mxu1 %v7074_v0 }
 0x2f4   : > { %3896 = vmatpush3.msra.mxu1 %v5207_v11 }
 0x2f5   : > { %3897 = vmatprep.subr.mxu1 %v7074_v0 }
 0x2f6   : > { %3898 = vmatpush3.msra.mxu1 %v5205_v10 }
 0x2f7   : > { %3899 = vmatprep.subr.mxu1 %v7074_v0 }
 0x2f8   : > { %3900 = vmatpush3.msra.mxu1 %v5203_v9 }
 0x2f9   : > { %3901 = vmatprep.subr.mxu1 %v7074_v0 }
 0x2fa   : > { %3902 = vmatpush3.msra.mxu1 %v5201_v8 }
 0x2fb   : > { %3903 = vmatprep.subr.mxu1 %v7074_v0 }
 0x2fc   : > { %3904 = vmatpush3.msra.mxu1 %v5199_v7 }
 0x2fd   : > { %3905 = vmatprep.subr.mxu1 %v7074_v0 }
 0x2fe   : > { %3906 = vmatpush3.msra.mxu1 %v5197_v6 }
 0x2ff   : > { %3907 = vmatprep.subr.mxu1 %v7074_v0 }
 0x300   : > { %3908 = vmatpush3.msra.mxu1 %v5195_v5 }
 0x301   : > { %3909 = vmatprep.subr.mxu1 %v7074_v0 }
 0x302   : > { %3910 = vmatpush3.msra.mxu1 %v5193_v4 }
 0x303   : > { %3911 = vmatprep.subr.mxu1 %v7074_v0 }
 0x304   : > { %3912 = vmatpush3.msra.mxu1 %v7162_v3 }
 0x305   : > { %3951 = vmatprep.subr.mxu1 %v7074_v0 }
 0x36a   : > { %v573_v50 = vpop.xlane.xlu0 %572 }
 0x36b   : > { %v574_v63 = vrot.slane %v573_v50, 4 }
 0x36d   : > { %v575_v1 = vmax.f32 %v573_v50, %v574_v63 }
 0x36f   : > { %v576_v51 = vrot.slane %v575_v1, 2 }
 0x371   : > { %v577_v49 = vmax.f32 %v575_v1, %v576_v51  ;;  %v7165_v51 = vmov 0.0  }
 0x373   : > { %v578_v48 = vrot.slane %v577_v49, 1 }
 0x375   : > { %v579_v53 = vmax.f32 %v577_v49, %v578_v48 }
 0x377   : > { %4616 = vpush %v579_v53 }
 0x3a5   : > { %v650_v54 = vpop.f32.mrf.mxu1 }
 0x3a6   : > { %v651_v60 = vadd.f32 %v5226_v19, %v650_v54 }
 0x3a7   : > { %v3845_v61 = vpop.f32.mrf.mxu1 }
 0x3a8   : > { %v655_v62 = vadd.f32 %v651_v60, %v566_v59  ;;  %s4617_s21 = spop %4616  ;;  %v662_v52 = vsub.f32 0.0, %v651_v60  ;;  %v654_v0 = vsub.f32 %v583_v57, %v651_v60 }
 0x3a9   : > { %p581_p12 = scmp.lt.f32.partialorder %s4617_s21, 0.001 }
 0x3aa   : > { %663 = vmax.xlane.f32.xlu0 %v662_v52  ;;  %v656_v50 = vmax.f32 %v655_v62, 0.0  ;;  %v570_v52 = vsel %vm569_vm4, %v5031_v56, %v5687_v58 }
 0x3ab   : > { %p5732_p13 = por %p5027_p11, %p581_p12 }
 0x3ac   : > { %v674_v63 = vadd.f32 %v656_v50, %v654_v0  ;;  %v657_v1 = vsub.f32 %v655_v62, %v656_v50 }
 0x3ad   : > { %s658_s23 = scalar_select %p5732_p13, 1, 0 }
 0x3ae   : > { %3879 = vmatmul.mubr.f32.vlgmr.msra.gmra.mxu0 %v674_v63 }
 0x3af   : > { %v659_v59 = vstv %s658_s23  ;;  %3917 = vmatpush3.msra.mxu0 %v5221_v18  ;;  %3948 = vmatprep.mubr.msk.f32.mxu0 %vm5108_vm3, %v7165_v51 }
 0x3b0   : > { %vm660_vm5 = vcmp.eq.s32.totalorder %v659_v59, 1  ;;  %3918 = vmatprep.subr.mxu0 %v7165_v51 }
 0x3b1   : > { %v661_v57 = vsel %vm660_vm5, %v570_v52, %v651_v60  ;;  %3919 = vmatpush3.msra.mxu0 %v5219_v17 }
 0x3b2   : > { %3920 = vmatprep.subr.mxu0 %v7165_v51 }
 0x3b3   : > { %3921 = vmatpush3.msra.mxu0 %v5217_v16 }
 0x3b4   : > { %3922 = vmatprep.subr.mxu0 %v7165_v51 }
 0x3b5   : > { %3923 = vmatpush3.msra.mxu0 %v5215_v15 }
 0x3b6   : > { %3924 = vmatprep.subr.mxu0 %v7165_v51 }
 0x3b7   : > { %3925 = vmatpush3.msra.mxu0 %v5213_v14 }
 0x3b8   : > { %3926 = vmatprep.subr.mxu0 %v7165_v51 }
 0x3b9   : > { %3927 = vmatpush3.msra.mxu0 %v5211_v13 }
 0x3ba   : > { %3928 = vmatprep.subr.mxu0 %v7165_v51 }
 0x3bb   : > { %3929 = vmatpush3.msra.mxu0 %v5209_v12 }
 0x3bc   : > { %3930 = vmatprep.subr.mxu0 %v7165_v51 }
 0x3bd   : > { %3931 = vmatpush3.msra.mxu0 %v5207_v11 }
 0x3be   : > { %3932 = vmatprep.subr.mxu0 %v7165_v51 }
 0x3bf   : > { %3933 = vmatpush3.msra.mxu0 %v5205_v10 }
 0x3c0   : > { %3934 = vmatprep.subr.mxu0 %v7165_v51 }
 0x3c1   : > { %3935 = vmatpush3.msra.mxu0 %v5203_v9 }
 0x3c2   : > { %3936 = vmatprep.subr.mxu0 %v7165_v51 }
 0x3c3   : > { %3937 = vmatpush3.msra.mxu0 %v5201_v8 }
 0x3c4   : > { %3938 = vmatprep.subr.mxu0 %v7165_v51 }
 0x3c5   : > { %3939 = vmatpush3.msra.mxu0 %v5199_v7 }
 0x3c6   : > { %3940 = vmatprep.subr.mxu0 %v7165_v51 }
 0x3c7   : > { %3941 = vmatpush3.msra.mxu0 %v5197_v6 }
 0x3c8   : > { %3942 = vmatprep.subr.mxu0 %v7165_v51 }
 0x3c9   : > { %3943 = vmatpush3.msra.mxu0 %v5195_v5 }
 0x3ca   : > { %3944 = vmatprep.subr.mxu0 %v7165_v51 }
 0x3cb   : > { %3945 = vmatpush3.msra.mxu0 %v5193_v4 }
 0x3cc   : > { %3946 = vmatprep.subr.mxu0 %v7165_v51 }
 0x3cd   : > { %3947 = vmatpush3.msra.mxu0 %v7162_v3 }
 0x3ce   : > { %3986 = vmatprep.subr.mxu0 %v7165_v51 }
 0x433   : > { %v664_v55 = vpop.xlane.xlu0 %663 }
 0x434   : > { %v665_v56 = vrot.slane %v664_v55, 4 }
 0x436   : > { %v666_v0 = vmax.f32 %v664_v55, %v665_v56 }
 0x438   : > { %v667_v58 = vrot.slane %v666_v0, 2 }
 0x43a   : > { %v668_v49 = vmax.f32 %v666_v0, %v667_v58 }
 0x43c   : > { %v669_v48 = vrot.slane %v668_v49, 1 }
 0x43e   : > { %v670_v53 = vmax.f32 %v668_v49, %v669_v48 }
 0x440   : > { %4618 = vpush %v670_v53 }
 0x46e   : > { %v741_v54 = vpop.f32.mrf.mxu0 }
 0x46f   : > { %v742_v60 = vadd.f32 %v5226_v19, %v741_v54 }
 0x470   : > { %v3880_v61 = vpop.f32.mrf.mxu0 }
 0x471   : > { %v746_v62 = vadd.f32 %v742_v60, %v657_v1  ;;  %s4619_s24 = spop %4618  ;;  %v753_v50 = vsub.f32 0.0, %v742_v60  ;;  %v745_v59 = vsub.f32 %v674_v63, %v742_v60 }
 0x472   : > { %p672_p0 = scmp.lt.f32.partialorder %s4619_s24, 0.001 }
 0x473   : > { %754 = vmax.xlane.f32.xlu1 %v753_v50  ;;  %v747_v52 = vmax.f32 %v746_v62, 0.0 }
 0x474   : > { %p5777_p1 = por %p672_p0, %p5732_p13  ;;  %p487_p0 = scmp.lt.s32.totalorder %s1220_s18, 300 }
 0x475   : > { %v765_v55 = vadd.f32 %v747_v52, %v745_v59  ;;  %v748_v56 = vsub.f32 %v746_v62, %v747_v52 }
 0x476   : > { %s749_s25 = scalar_select %p5777_p1, 1, 0 }
 0x477   : > { %3914 = vmatmul.mubr.f32.vlgmr.msra.gmra.mxu1 %v765_v55 }
 0x478   : > { %v750_v0 = vstv %s749_s25  ;;  %3952 = vmatpush3.msra.mxu1 %v5221_v18  ;;  %3983 = vmatprep.mubr.msk.f32.mxu1 %vm5108_vm3, %v7165_v51 }
 0x479   : > { %vm751_vm6 = vcmp.eq.s32.totalorder %v750_v0, 1  ;;  %3953 = vmatprep.subr.mxu1 %v7165_v51 }
 0x47a   : > { %v752_v63 = vsel %vm751_vm6, %v661_v57, %v742_v60  ;;  %3954 = vmatpush3.msra.mxu1 %v5219_v17 }
 0x47b   : > { %3955 = vmatprep.subr.mxu1 %v7165_v51 }
 0x47c   : > { %3956 = vmatpush3.msra.mxu1 %v5217_v16 }
 0x47d   : > { %3957 = vmatprep.subr.mxu1 %v7165_v51 }
 0x47e   : > { %3958 = vmatpush3.msra.mxu1 %v5215_v15 }
 0x47f   : > { %3959 = vmatprep.subr.mxu1 %v7165_v51 }
 0x480   : > { %3960 = vmatpush3.msra.mxu1 %v5213_v14 }
 0x481   : > { %3961 = vmatprep.subr.mxu1 %v7165_v51 }
 0x482   : > { %3962 = vmatpush3.msra.mxu1 %v5211_v13 }
 0x483   : > { %3963 = vmatprep.subr.mxu1 %v7165_v51 }
 0x484   : > { %3964 = vmatpush3.msra.mxu1 %v5209_v12 }
 0x485   : > { %3965 = vmatprep.subr.mxu1 %v7165_v51 }
 0x486   : > { %3966 = vmatpush3.msra.mxu1 %v5207_v11 }
 0x487   : > { %3967 = vmatprep.subr.mxu1 %v7165_v51 }
 0x488   : > { %3968 = vmatpush3.msra.mxu1 %v5205_v10 }
 0x489   : > { %3969 = vmatprep.subr.mxu1 %v7165_v51 }
 0x48a   : > { %3970 = vmatpush3.msra.mxu1 %v5203_v9 }
 0x48b   : > { %3971 = vmatprep.subr.mxu1 %v7165_v51 }
 0x48c   : > { %3972 = vmatpush3.msra.mxu1 %v5201_v8 }
 0x48d   : > { %3973 = vmatprep.subr.mxu1 %v7165_v51 }
 0x48e   : > { %3974 = vmatpush3.msra.mxu1 %v5199_v7 }
 0x48f   : > { %3975 = vmatprep.subr.mxu1 %v7165_v51 }
 0x490   : > { %3976 = vmatpush3.msra.mxu1 %v5197_v6 }
 0x491   : > { %3977 = vmatprep.subr.mxu1 %v7165_v51 }
 0x492   : > { %3978 = vmatpush3.msra.mxu1 %v5195_v5 }
 0x493   : > { %3979 = vmatprep.subr.mxu1 %v7165_v51 }
 0x494   : > { %3980 = vmatpush3.msra.mxu1 %v5193_v4 }
 0x495   : > { %3981 = vmatprep.subr.mxu1 %v7165_v51 }
 0x496   : > { %3982 = vmatpush3.msra.mxu1 %v7162_v3 }
 0x497   : > { %4021 = vmatprep.subr.mxu1 %v7165_v51 }
 0x4fc   : > { %v755_v1 = vpop.xlane.xlu1 %754 }
 0x4fd   : > { %v756_v57 = vrot.slane %v755_v1, 4 }
 0x4ff   : > { %v757_v58 = vmax.f32 %v755_v1, %v756_v57 }
 0x501   : > { %v758_v49 = vrot.slane %v757_v58, 2 }
 0x503   : > { %v759_v48 = vmax.f32 %v757_v58, %v758_v49 }
 0x505   : > { %v760_v53 = vrot.slane %v759_v48, 1 }
 0x507   : > { %v761_v54 = vmax.f32 %v759_v48, %v760_v53 }
 0x509   : > { %4620 = vpush %v761_v54 }
 0x537   : > { %v832_v60 = vpop.f32.mrf.mxu1 }
 0x538   : > { %v833_v61 = vadd.f32 %v5226_v19, %v832_v60 }
 0x539   : > { %v3915_v62 = vpop.f32.mrf.mxu1 }
 0x53a   : > { %v837_v50 = vadd.f32 %v833_v61, %v748_v56  ;;  %s4621_s26 = spop %4620  ;;  %v844_v59 = vsub.f32 0.0, %v833_v61  ;;  %v836_v52 = vsub.f32 %v765_v55, %v833_v61 }
 0x53b   : > { %p763_p2 = scmp.lt.f32.partialorder %s4621_s26, 0.001 }
 0x53c   : > { %845 = vmax.xlane.f32.xlu1 %v844_v59  ;;  %v838_v0 = vmax.f32 %v837_v50, 0.0 }
 0x53d   : > { %p5820_p3 = por %p763_p2, %p5777_p1 }
 0x53e   : > { %v856_v1 = vadd.f32 %v838_v0, %v836_v52  ;;  %v839_v57 = vsub.f32 %v837_v50, %v838_v0 }
 0x53f   : > { %s840_s28 = scalar_select %p5820_p3, 1, 0 }
 0x540   : > { %3949 = vmatmul.mubr.f32.vlgmr.msra.gmra.mxu0 %v856_v1 }
 0x541   : > { %v841_v58 = vstv %s840_s28  ;;  %3987 = vmatpush3.msra.mxu0 %v5221_v18  ;;  %4018 = vmatprep.mubr.msk.f32.mxu0 %vm5108_vm3, %v7165_v51 }
 0x542   : > { %vm842_vm7 = vcmp.eq.s32.totalorder %v841_v58, 1  ;;  %3988 = vmatprep.subr.mxu0 %v7165_v51 }
 0x543   : > { %v843_v55 = vsel %vm842_vm7, %v752_v63, %v833_v61  ;;  %3989 = vmatpush3.msra.mxu0 %v5219_v17 }
 0x544   : > { %3990 = vmatprep.subr.mxu0 %v7165_v51 }
 0x545   : > { %3991 = vmatpush3.msra.mxu0 %v5217_v16 }
 0x546   : > { %3992 = vmatprep.subr.mxu0 %v7165_v51 }
 0x547   : > { %3993 = vmatpush3.msra.mxu0 %v5215_v15 }
 0x548   : > { %3994 = vmatprep.subr.mxu0 %v7165_v51 }
 0x549   : > { %3995 = vmatpush3.msra.mxu0 %v5213_v14 }
 0x54a   : > { %3996 = vmatprep.subr.mxu0 %v7165_v51 }
 0x54b   : > { %3997 = vmatpush3.msra.mxu0 %v5211_v13 }
 0x54c   : > { %3998 = vmatprep.subr.mxu0 %v7165_v51 }
 0x54d   : > { %3999 = vmatpush3.msra.mxu0 %v5209_v12 }
 0x54e   : > { %4000 = vmatprep.subr.mxu0 %v7165_v51 }
 0x54f   : > { %4001 = vmatpush3.msra.mxu0 %v5207_v11 }
 0x550   : > { %4002 = vmatprep.subr.mxu0 %v7165_v51 }
 0x551   : > { %4003 = vmatpush3.msra.mxu0 %v5205_v10 }
 0x552   : > { %4004 = vmatprep.subr.mxu0 %v7165_v51 }
 0x553   : > { %4005 = vmatpush3.msra.mxu0 %v5203_v9 }
 0x554   : > { %4006 = vmatprep.subr.mxu0 %v7165_v51 }
 0x555   : > { %4007 = vmatpush3.msra.mxu0 %v5201_v8 }
 0x556   : > { %4008 = vmatprep.subr.mxu0 %v7165_v51 }
 0x557   : > { %4009 = vmatpush3.msra.mxu0 %v5199_v7 }
 0x558   : > { %4010 = vmatprep.subr.mxu0 %v7165_v51 }
 0x559   : > { %4011 = vmatpush3.msra.mxu0 %v5197_v6 }
 0x55a   : > { %4012 = vmatprep.subr.mxu0 %v7165_v51 }
 0x55b   : > { %4013 = vmatpush3.msra.mxu0 %v5195_v5 }
 0x55c   : > { %4014 = vmatprep.subr.mxu0 %v7165_v51 }
 0x55d   : > { %4015 = vmatpush3.msra.mxu0 %v5193_v4 }
 0x55e   : > { %4016 = vmatprep.subr.mxu0 %v7165_v51 }
 0x55f   : > { %4017 = vmatpush3.msra.mxu0 %v7162_v3 }
 0x5c5   : > { %v846_v56 = vpop.xlane.xlu1 %845 }
 0x5c6   : > { %v847_v63 = vrot.slane %v846_v56, 4 }
 0x5c8   : > { %v848_v49 = vmax.f32 %v846_v56, %v847_v63 }
 0x5ca   : > { %v849_v48 = vrot.slane %v848_v49, 2 }
 0x5cc   : > { %v850_v53 = vmax.f32 %v848_v49, %v849_v48 }
 0x5ce   : > { %v851_v54 = vrot.slane %v850_v53, 1 }
 0x5d0   : > { %v852_v60 = vmax.f32 %v850_v53, %v851_v54 }
 0x5d2   : > { %4622 = vpush %v852_v60 }
 0x600   : > { %v923_v61 = vpop.f32.mrf.mxu0 }
 0x601   : > { %v924_v62 = vadd.f32 %v5226_v19, %v923_v61 }
 0x602   : > { %v3950_v50 = vpop.f32.mrf.mxu0 }
 0x603   : > { %v928_v59 = vadd.f32 %v924_v62, %v839_v57  ;;  %s4623_s29 = spop %4622  ;;  %v935_v52 = vsub.f32 0.0, %v924_v62  ;;  %v927_v0 = vsub.f32 %v856_v1, %v924_v62 }
 0x604   : > { %p854_p4 = scmp.lt.f32.partialorder %s4623_s29, 0.001 }
 0x605   : > { %936 = vmax.xlane.f32.xlu0 %v935_v52  ;;  %v929_v58 = vmax.f32 %v928_v59, 0.0 }
 0x606   : > { %p5862_p5 = por %p854_p4, %p5820_p3 }
 0x607   : > { %v947_v56 = vadd.f32 %v929_v58, %v927_v0  ;;  %v930_v63 = vsub.f32 %v928_v59, %v929_v58 }
 0x608   : > { %s931_s10 = scalar_select %p5862_p5, 1, 0 }
 0x609   : > { %3984 = vmatmul.mubr.f32.vlgmr.msra.gmra.mxu1 %v947_v56 }
 0x60a   : > { %v932_v49 = vstv %s931_s10  ;;  %4022 = vmatpush3.msra.mxu1 %v5221_v18  ;;  %4053 = vmatprep.mubr.msk.f32.mxu1 %vm5108_vm3, %v7165_v51 }
 0x60b   : > { %vm933_vm8 = vcmp.eq.s32.totalorder %v932_v49, 1  ;;  %4023 = vmatprep.subr.mxu1 %v7165_v51 }
 0x60c   : > { %v934_v1 = vsel %vm933_vm8, %v843_v55, %v924_v62  ;;  %4024 = vmatpush3.msra.mxu1 %v5219_v17 }
 0x60d   : > { %4025 = vmatprep.subr.mxu1 %v7165_v51 }
 0x60e   : > { %4026 = vmatpush3.msra.mxu1 %v5217_v16 }
 0x60f   : > { %4027 = vmatprep.subr.mxu1 %v7165_v51 }
 0x610   : > { %4028 = vmatpush3.msra.mxu1 %v5215_v15 }
 0x611   : > { %4029 = vmatprep.subr.mxu1 %v7165_v51 }
 0x612   : > { %4030 = vmatpush3.msra.mxu1 %v5213_v14 }
 0x613   : > { %4031 = vmatprep.subr.mxu1 %v7165_v51 }
 0x614   : > { %4032 = vmatpush3.msra.mxu1 %v5211_v13 }
 0x615   : > { %4033 = vmatprep.subr.mxu1 %v7165_v51 }
 0x616   : > { %4034 = vmatpush3.msra.mxu1 %v5209_v12 }
 0x617   : > { %4035 = vmatprep.subr.mxu1 %v7165_v51 }
 0x618   : > { %4036 = vmatpush3.msra.mxu1 %v5207_v11 }
 0x619   : > { %4037 = vmatprep.subr.mxu1 %v7165_v51 }
 0x61a   : > { %4038 = vmatpush3.msra.mxu1 %v5205_v10 }
 0x61b   : > { %4039 = vmatprep.subr.mxu1 %v7165_v51 }
 0x61c   : > { %4040 = vmatpush3.msra.mxu1 %v5203_v9 }
 0x61d   : > { %4041 = vmatprep.subr.mxu1 %v7165_v51 }
 0x61e   : > { %4042 = vmatpush3.msra.mxu1 %v5201_v8 }
 0x61f   : > { %4043 = vmatprep.subr.mxu1 %v7165_v51 }
 0x620   : > { %4044 = vmatpush3.msra.mxu1 %v5199_v7 }
 0x621   : > { %4045 = vmatprep.subr.mxu1 %v7165_v51 }
 0x622   : > { %4046 = vmatpush3.msra.mxu1 %v5197_v6 }
 0x623   : > { %4047 = vmatprep.subr.mxu1 %v7165_v51 }
 0x624   : > { %4048 = vmatpush3.msra.mxu1 %v5195_v5 }
 0x625   : > { %4049 = vmatprep.subr.mxu1 %v7165_v51 }
 0x626   : > { %4050 = vmatpush3.msra.mxu1 %v5193_v4 }
 0x627   : > { %4051 = vmatprep.subr.mxu1 %v7165_v51 }
 0x628   : > { %4052 = vmatpush3.msra.mxu1 %v7162_v3 }
 0x68e   : > { %v937_v57 = vpop.xlane.xlu0 %936 }
 0x68f   : > { %v938_v55 = vrot.slane %v937_v57, 4 }
 0x691   : > { %v939_v48 = vmax.f32 %v937_v57, %v938_v55 }
 0x693   : > { %v940_v53 = vrot.slane %v939_v48, 2 }
 0x695   : > { %v941_v54 = vmax.f32 %v939_v48, %v940_v53 }
 0x697   : > { %v942_v60 = vrot.slane %v941_v54, 1 }
 0x699   : > { %v943_v61 = vmax.f32 %v941_v54, %v942_v60 }
 0x69b   : > { %4624 = vpush %v943_v61 }
 0x6c9   : > { %v1014_v62 = vpop.f32.mrf.mxu1 }
 0x6ca   : > { %v1015_v50 = vadd.f32 %v5226_v19, %v1014_v62 }
 0x6cb   : > { %v3985_v59 = vpop.f32.mrf.mxu1 }
 0x6cc   : > { %v1019_v52 = vadd.f32 %v1015_v50, %v930_v63  ;;  %s4625_s5 = spop %4624  ;;  %v1026_v0 = vsub.f32 0.0, %v1015_v50  ;;  %v1018_v51 = vsub.f32 %v947_v56, %v1015_v50 }
 0x6cd   : > { %p945_p6 = scmp.lt.f32.partialorder %s4625_s5, 0.001 }
 0x6ce   : > { %1027 = vmax.xlane.f32.xlu1 %v1026_v0  ;;  %v1020_v58 = vmax.f32 %v1019_v52, 0.0 }
 0x6cf   : > { %p5904_p7 = por %p945_p6, %p5862_p5 }
 0x6d0   : > { %v1038_v49 = vadd.f32 %v1020_v58, %v1018_v51  ;;  %v1021_v57 = vsub.f32 %v1019_v52, %v1020_v58 }
 0x6d1   : > { %s1022_s14 = scalar_select %p5904_p7, 1, 0 }
 0x6d2   : > { %4019 = vmatmul.mubr.f32.vlgmr.msra.gmra.mxu0 %v1038_v49 }
 0x6d3   : > { %v1023_v55 = vstv %s1022_s14 }
 0x6d4   : > { %vm1024_vm9 = vcmp.eq.s32.totalorder %v1023_v55, 1 }
 0x6d5   : > { %v1025_v63 = vsel %vm1024_vm9, %v934_v1, %v1015_v50 }
 0x757   : > { %v1028_v48 = vpop.xlane.xlu1 %1027 }
 0x758   : > { %v1029_v53 = vrot.slane %v1028_v48, 4 }
 0x75a   : > { %v1030_v54 = vmax.f32 %v1028_v48, %v1029_v53 }
 0x75c   : > { %v1031_v56 = vrot.slane %v1030_v54, 2 }
 0x75e   : > { %v1032_v60 = vmax.f32 %v1030_v54, %v1031_v56 }
 0x760   : > { %v1033_v61 = vrot.slane %v1032_v60, 1 }
 0x762   : > { %v1034_v62 = vmax.f32 %v1032_v60, %v1033_v61 }
 0x764   : > { %4626 = vpush %v1034_v62 }
 0x792   : > { %v1105_v59 = vpop.f32.mrf.mxu0 }
 0x793   : > { %v1106_v0 = vadd.f32 %v5226_v19, %v1105_v59 }
 0x794   : > { %v4020_v51 = vpop.f32.mrf.mxu0 }
 0x795   : > { %v1110_v52 = vadd.f32 %v1106_v0, %v1021_v57  ;;  %s4627_s0 = spop %4626  ;;  %v1117_v58 = vsub.f32 0.0, %v1106_v0  ;;  %v1109_v3 = vsub.f32 %v1038_v49, %v1106_v0 }
 0x796   : > { %p1036_p8 = scmp.lt.f32.partialorder %s4627_s0, 0.001 }
 0x797   : > { %1118 = vmax.xlane.f32.xlu0 %v1117_v58  ;;  %v1111_v1 = vmax.f32 %v1110_v52, 0.0 }
 0x798   : > { %p5913_p9 = por %p1036_p8, %p5904_p7 }
 0x799   : > { %v1129_v50 = vadd.f32 %v1111_v1, %v1109_v3  ;;  %v1112_v55 = vsub.f32 %v1110_v52, %v1111_v1 }
 0x79a   : > { %s1113_s3 = scalar_select %p5913_p9, 1, 0 }
 0x79b   : > { %4054 = vmatmul.mubr.f32.vlgmr.msra.gmra.mxu1 %v1129_v50 }
 0x79c   : > { %v1114_v48 = vstv %s1113_s3 }
 0x79d   : > { %vm1115_vm10 = vcmp.eq.s32.totalorder %v1114_v48, 1 }
 0x79e   : > { %v1116_v57 = vsel %vm1115_vm10, %v1025_v63, %v1106_v0 }
 0x820   : > { %v1119_v53 = vpop.xlane.xlu0 %1118 }
 0x821   : > { %v1120_v54 = vrot.slane %v1119_v53, 4 }
 0x823   : > { %v1121_v56 = vmax.f32 %v1119_v53, %v1120_v54 }
 0x825   : > { %v1122_v49 = vrot.slane %v1121_v56, 2 }
 0x827   : > { %v1123_v60 = vmax.f32 %v1121_v56, %v1122_v49 }
 0x829   : > { %v1124_v61 = vrot.slane %v1123_v60, 1 }
 0x82b   : > { %v1125_v62 = vmax.f32 %v1123_v60, %v1124_v61 }
 0x82d   : > { %4628 = vpush %v1125_v62 }
 0x85b   : > { %v1196_v59 = vpop.f32.mrf.mxu1 }
 0x85c   : > { %v1197_v3 = vadd.f32 %v5226_v19, %v1196_v59 }
 0x85d   : > { %v4055_v51 = vpop.f32.mrf.mxu1 }
 0x85e   : > { %v1200_v51 = vsub.f32 %v1129_v50, %v1197_v3   ;;  %v1201_v52 = vadd.f32 %v1197_v3, %v1112_v55  ;;  %s4629_s6 = spop %4628  ;;  %v1208_v58 = vsub.f32 0.0, %v1197_v3 }
 0x85f   : > { %p1127_p10 = scmp.lt.f32.partialorder %s4629_s6, 0.001 }
 0x860   : > { %v1202_v48 = vmax.f32 %v1201_v52, 0.0   ;;  %1209 = vmax.xlane.f32.xlu1 %v1208_v58 }
 0x861   : > { %p5922_p11 = por %p1127_p10, %p5913_p9 }
 0x862   : > { %v1203_v1 = vsub.f32 %v1201_v52, %v1202_v48  }
 0x863   : > { %s1204_s12 = scalar_select %p5922_p11, 1, 0 }
 0x865   : > { %v1205_v63 = vstv %s1204_s12 }
 0x866   : > { %vm1206_vm11 = vcmp.eq.s32.totalorder %v1205_v63, 1 }
 0x867   : > { %v5928_v56 = vsel %vm1206_vm11, %v1116_v57, %v1197_v3  }
 0x868   : > { %v7172_v0 = vmov %v5928_v56 }
 0x869   : > { %v7175_v56 = vmov %v7172_v0 }
 0x8e9   : > { %v1210_v50 = vpop.xlane.xlu1 %1209 }
 0x8ea   : > { %v1211_v55 = vrot.slane %v1210_v50, 4 }
 0x8ec   : > { %v1212_v53 = vmax.f32 %v1210_v50, %v1211_v55 }
 0x8ee   : > { %v1213_v54 = vrot.slane %v1212_v53, 2 }
 0x8f0   : > { %v1214_v49 = vmax.f32 %v1212_v53, %v1213_v54 }
 0x8f2   : > { %v1215_v60 = vrot.slane %v1214_v49, 1 }
 0x8f4   : > { %v1216_v61 = vmax.f32 %v1214_v49, %v1215_v60 }
 0x8f6   : > { %4630 = vpush %v1216_v61 }
 0x927   : > { %s4631_s13 = spop %4630 }
 0x928   : > { %p1218_p12 = scmp.lt.f32.partialorder %s4631_s13, 0.001 }
 0x92a   : > { %p1219_p11 = por %p1218_p12, %p5922_p11  }
 0x92c   : > { %p486_p13 = pneg %p1219_p11 }
 0x92e   : > { %p488_p1 = pnand %p487_p0, %p486_p13 }
 0x92f   :  { %1232 = vmatprep.subr.mxu0 (%p488_p1), %v5228_v20  ;;  %1303 = vmatprep.subr.mxu1 (%p488_p1), %v5231_v21  ;;  %v7176_v1 = vld [vmem:[#allocation18_spill] sm:$0xff] (%p488_p1)  ;;  %v7177_v48 = vld [vmem:[#allocation19_spill] sm:$0xff] (%p488_p1)  ;;  %v7178_v57 = vld [vmem:[#allocation20_spill] sm:$0xff] (%p488_p1)  ;;  %p6067_p2 = pmov (%p488_p1), 0   ;;  %s6079_s7 = smov (%p488_p1), 0  }
 0x930   :  { %491 = sbr.rel (!%p488_p1) target bundleno = 507 (0x1fb), region = 97  ;;  %1233 = vmatpush1.msra.mxu0 (%p488_p1), %v5233_v22  ;;  %1304 = vmatpush1.msra.mxu1 (%p488_p1), %v5235_v23  ;;  %v7179_v56 = vld [vmem:[#allocation21_spill] sm:$0xff] (%p488_p1)  ;;  %v7180_v62 = vld [vmem:[#allocation22_spill] sm:$0xff] (%p488_p1)  ;;  %v7181_v59 = vld [vmem:[#allocation23_spill] sm:$0xff] (%p488_p1) }
 0x931   :  { %1234 = vmatprep.subr.mxu0 (%p488_p1), %v5239_v24  ;;  %1305 = vmatprep.subr.mxu1 (%p488_p1), %v5241_v25  ;;  %v7182_v3 = vld [vmem:[#allocation24_spill] sm:$0xff] (%p488_p1)  ;;  %v7183_v51 = vld [vmem:[#allocation25_spill] sm:$0xff] (%p488_p1)  ;;  %v7184_v52 = vld [vmem:[#allocation26_spill] sm:$0xff] (%p488_p1) }
 0x932   :  { %1235 = vmatpush1.msra.mxu0 (%p488_p1), %v5243_v26  ;;  %1306 = vmatpush1.msra.mxu1 (%p488_p1), %v5247_v27  ;;  %v7185_v58 = vld [vmem:[#allocation27_spill] sm:$0xff] (%p488_p1)  ;;  %v7186_v63 = vld [vmem:[#allocation28_spill] sm:$0xff] (%p488_p1)  ;;  %v7187_v50 = vld [vmem:[#allocation29_spill] sm:$0xff] (%p488_p1) }
 0x933   :  { %1236 = vmatprep.subr.mxu0 (%p488_p1), %v5249_v28  ;;  %1307 = vmatprep.subr.mxu1 (%p488_p1), %v5251_v29  ;;  %v7188_v55 = vld [vmem:[#allocation30_spill] sm:$0xff] (%p488_p1)  ;;  %v7189_v53 = vld [vmem:[#allocation31_spill] sm:$0xff] (%p488_p1)  ;;  %v7190_v54 = vld [vmem:[#allocation32_spill] sm:$0xff] (%p488_p1) }
 0x934   :  { %1237 = vmatpush1.msra.mxu0 (%p488_p1), %v5255_v30  ;;  %1308 = vmatpush1.msra.mxu1 (%p488_p1), %v5257_v31  ;;  %v7191_v49 = vld [vmem:[#allocation33_spill] sm:$0xff] (%p488_p1)  ;;  %v7192_v60 = vld [vmem:[#allocation34_spill] sm:$0xff] (%p488_p1)  ;;  %v7193_v61 = vld [vmem:[#allocation35_spill] sm:$0xff] (%p488_p1) }
 0x935   :  { %1238 = vmatprep.subr.mxu0 %v5259_v32  ;;  %1309 = vmatprep.subr.mxu1 %v5263_v33 }
 0x936   :  { %1239 = vmatpush1.msra.mxu0 %v5265_v34  ;;  %1310 = vmatpush1.msra.mxu1 %v5269_v35 }
 0x937   :  { %1240 = vmatprep.subr.mxu0 %v5271_v36  ;;  %1311 = vmatprep.subr.mxu1 %v5275_v37 }
 0x938   :  { %1241 = vmatpush1.msra.mxu0 %v5277_v38  ;;  %1312 = vmatpush1.msra.mxu1 %v5281_v39 }
 0x939   :  { %1242 = vmatprep.subr.mxu0 %v5283_v40  ;;  %1313 = vmatprep.subr.mxu1 %v5287_v41 }
 0x93a   :  { %1243 = vmatpush1.msra.mxu0 %v5289_v42  ;;  %1314 = vmatpush1.msra.mxu1 %v5293_v43 }
 0x93b   :  { %1244 = vmatprep.subr.mxu0 %v5295_v44  ;;  %1315 = vmatprep.subr.mxu1 %v5299_v45 }
 0x93c   :  { %1245 = vmatpush1.msra.mxu0 %v5301_v46  ;;  %1316 = vmatpush1.msra.mxu1 %v5305_v47 }
 0x93d   :  { %1246 = vmatprep.subr.mxu0 %v7176_v1  ;;  %1317 = vmatprep.subr.mxu1 %v7177_v48  ;;  %v7194_v1 = vld [vmem:[#allocation36_spill] sm:$0xff]  ;;  %v7195_v48 = vld [vmem:[#allocation37_spill] sm:$0xff] }
 0x93e   :  { %1247 = vmatpush1.msra.mxu0 %v7178_v57  ;;  %1318 = vmatpush1.msra.mxu1 %v7179_v56  ;;  %v7196_v57 = vld [vmem:[#allocation38_spill] sm:$0xff]  ;;  %v7197_v56 = vld [vmem:[#allocation39_spill] sm:$0xff] }
 0x93f   :  { %1248 = vmatprep.subr.mxu0 %v7180_v62  ;;  %1319 = vmatprep.subr.mxu1 %v7181_v59  ;;  %v7198_v62 = vld [vmem:[#allocation40_spill] sm:$0xff]  ;;  %v7199_v59 = vld [vmem:[#allocation41_spill] sm:$0xff] }
 0x940   :  { %1249 = vmatpush1.msra.mxu0 %v7182_v3  ;;  %1320 = vmatpush1.msra.mxu1 %v7183_v51  ;;  %v7200_v3 = vld [vmem:[#allocation42_spill] sm:$0xff]  ;;  %v7201_v51 = vld [vmem:[#allocation43_spill] sm:$0xff] }
 0x941   :  { %1250 = vmatprep.subr.mxu0 %v7184_v52  ;;  %1321 = vmatprep.subr.mxu1 %v7185_v58  ;;  %v6005_v58 = vsel %vm248_vm0, %v7172_v0, 0.0  ;;  %v7223_v52 = vld [vmem:[#allocation63_spill] sm:$0xff] }
 0x942   :  { %1251 = vmatpush1.msra.mxu0 %v7186_v63  ;;  %1322 = vmatpush1.msra.mxu1 %v7187_v50  ;;  %v7203_v63 = vld [vmem:[#allocation44_spill] sm:$0xff]  ;;  %v7204_v50 = vld [vmem:[#allocation45_spill] sm:$0xff]  ;;  %vm1223_vm12 = vcmp.ge.f32.partialorder %v5393_v2, %v6005_v58  ;;  %vm1227_vm13 = vcmp.ge.f32.partialorder %v6005_v58, %v5393_v2 }
 0x943   :  { %1252 = vmatprep.subr.mxu0 %v7188_v55  ;;  %1323 = vmatprep.subr.mxu1 %v7189_v53  ;;  %v7205_v55 = vld [vmem:[#allocation46_spill] sm:$0xff]  ;;  %v7206_v53 = vld [vmem:[#allocation47_spill] sm:$0xff] }
 0x944   :  { %1253 = vmatpush1.msra.mxu0 %v7190_v54  ;;  %1324 = vmatpush1.msra.mxu1 %v7191_v49  ;;  %v7207_v54 = vld [vmem:[#allocation48_spill] sm:$0xff]  ;;  %v7208_v49 = vld [vmem:[#allocation49_spill] sm:$0xff] }
 0x945   :  { %1254 = vmatprep.subr.mxu0 %v7192_v60  ;;  %1325 = vmatprep.subr.mxu1 %v7193_v61  ;;  %v1222_v60 = vsub.f32 %v6005_v58, %v5393_v2  ;;  %v7209_v61 = vld [vmem:[#allocation50_spill] sm:$0xff] }
 0x946   :  { %1255 = vmatpush1.msra.mxu0 %v7194_v1  ;;  %1326 = vmatpush1.msra.mxu1 %v7195_v48  ;;  %v7210_v1 = vld [vmem:[#allocation51_spill] sm:$0xff]  ;;  %v7211_v48 = vld [vmem:[#allocation52_spill] sm:$0xff] }
 0x947   :  { %1256 = vmatprep.subr.mxu0 %v7196_v57  ;;  %1327 = vmatprep.subr.mxu1 %v7197_v56  ;;  %v7212_v57 = vmov 0.0   ;;  %v7213_v56 = vld [vmem:[#allocation53_spill] sm:$0xff] }
 0x948   :  { %1257 = vmatpush1.msra.mxu0 %v7198_v62  ;;  %1328 = vmatpush1.msra.mxu1 %v7199_v59  ;;  %v7214_v62 = vld [vmem:[#allocation54_spill] sm:$0xff]  ;;  %v7215_v59 = vld [vmem:[#allocation55_spill] sm:$0xff] }
 0x949   :  { %1258 = vmatprep.subr.mxu0 %v7200_v3  ;;  %1329 = vmatprep.subr.mxu1 %v7201_v51  ;;  %v7216_v3 = vld [vmem:[#allocation56_spill] sm:$0xff]  ;;  %v7217_v51 = vld [vmem:[#allocation57_spill] sm:$0xff] }
 0x94a   :  { %1259 = vmatpush1.msra.mxu0 %v7203_v63  ;;  %1330 = vmatpush1.msra.mxu1 %v7204_v50  ;;  %v7218_v63 = vld [vmem:[#allocation58_spill] sm:$0xff]  ;;  %v7219_v50 = vld [vmem:[#allocation59_spill] sm:$0xff] }
 0x94b   :  { %1260 = vmatprep.subr.mxu0 %v7205_v55  ;;  %1331 = vmatprep.subr.mxu1 %v7206_v53  ;;  %v7220_v55 = vld [vmem:[#allocation60_spill] sm:$0xff]  ;;  %v7221_v53 = vld [vmem:[#allocation61_spill] sm:$0xff] }
 0x94c   :  { %1261 = vmatpush1.msra.mxu0 %v7207_v54  ;;  %1332 = vmatpush1.msra.mxu1 %v7208_v49  ;;  %v7222_v54 = vld [vmem:[#allocation62_spill] sm:$0xff]  ;;  %v7225_v49 = vld [vmem:[#allocation65_spill] sm:$0xff] }
 0x94d   :  { %1262 = vmatprep.subr.mxu0 %v7209_v61  ;;  %1333 = vmatprep.subr.mxu1 %v7210_v1  ;;  %v7226_v61 = vld [vmem:[#allocation66_spill] sm:$0xff]  ;;  %v7227_v1 = vld [vmem:[#allocation67_spill] sm:$0xff] }
 0x94e   :  { %1263 = vmatpush1.msra.mxu0 %v7211_v48  ;;  %1296 = vmatprep.mubr.f32.mxu0 %v7212_v57  ;;  %v7228_v48 = vld [vmem:[#allocation68_spill] sm:$0xff] }
 0x94f   :  { %1334 = vmatpush1.msra.mxu1 %v7213_v56  ;;  %1367 = vmatprep.mubr.f32.mxu1 %v7212_v57  ;;  %v7229_v56 = vld [vmem:[#allocation69_spill] sm:$0xff] }
 0x950   :  { %1297 = vmatmul.mubr.f32.vlgmr.msra.gmra.mxu0 %v1222_v60  ;;  %3259 = vmatmul.mubr.msk.f32.vlgmr.msra.gmra.mxu1 %vm248_vm0, %v7172_v0  ;;  %v7224_v0 = vld [vmem:[#allocation64_spill] sm:$0xff] }
 0x951   :  { %3434 = vmatprep.subr.mxu0 %v7214_v62  ;;  %v7230_v62 = vld [vmem:[#allocation70_spill] sm:$0xff] }
 0x952   :  { %3435 = vmatpush3.msra.mxu0 %v7215_v59  ;;  %v7231_v59 = vld [vmem:[#allocation71_spill] sm:$0xff] }
 0x953   :  { %3436 = vmatprep.subr.mxu0 %v7216_v3  ;;  %v7232_v3 = vld [vmem:[#allocation72_spill] sm:$0xff] }
 0x954   :  { %3437 = vmatpush3.msra.mxu0 %v7217_v51  ;;  %v7233_v51 = vld [vmem:[#allocation73_spill] sm:$0xff] }
 0x955   :  { %3438 = vmatprep.subr.mxu0 %v7218_v63  ;;  %v7234_v63 = vld [vmem:[#allocation74_spill] sm:$0xff] }
 0x956   :  { %3439 = vmatpush3.msra.mxu0 %v7219_v50  ;;  %v7235_v50 = vld [vmem:[#allocation75_spill] sm:$0xff] }
 0x957   :  { %3440 = vmatprep.subr.mxu0 %v7220_v55  ;;  %v7236_v55 = vld [vmem:[#allocation76_spill] sm:$0xff] }
 0x958   :  { %3441 = vmatpush3.msra.mxu0 %v7221_v53  ;;  %v7237_v53 = vld [vmem:[#allocation77_spill] sm:$0xff] }
 0x959   :  { %3442 = vmatprep.subr.mxu0 %v7222_v54  ;;  %v7238_v54 = vld [vmem:[#allocation78_spill] sm:$0xff] }
 0x95a   :  { %3443 = vmatpush3.msra.mxu0 %v7223_v52  ;;  %v7239_v52 = vld [vmem:[#allocation79_spill] sm:$0xff] }
 0x95b   :  { %3444 = vmatprep.subr.mxu0 %v7224_v0  ;;  %v7240_v0 = vld [vmem:[#allocation80_spill] sm:$0xff] }
 0x95c   :  { %3445 = vmatpush3.msra.mxu0 %v7225_v49  ;;  %v7241_v49 = vld [vmem:[#allocation81_spill] sm:$0xff] }
 0x95d   :  { %3446 = vmatprep.subr.mxu0 %v7226_v61  ;;  %v7242_v61 = vld [vmem:[#allocation82_spill] sm:$0xff] }
 0x95e   :  { %3447 = vmatpush3.msra.mxu0 %v7227_v1  ;;  %v7243_v1 = vld [vmem:[#allocation83_spill] sm:$0xff] }
 0x95f   :  { %3448 = vmatprep.subr.mxu0 %v7228_v48  ;;  %v7244_v48 = vld [vmem:[#allocation84_spill] sm:$0xff] }
 0x960   :  { %3449 = vmatpush3.msra.mxu0 %v7229_v56  ;;  %v7245_v56 = vld [vmem:[#allocation85_spill] sm:$0xff] }
 0x961   :  { %3450 = vmatprep.subr.mxu0 %v7230_v62 }
 0x962   :  { %3451 = vmatpush3.msra.mxu0 %v7231_v59 }
 0x963   :  { %3452 = vmatprep.subr.mxu0 %v7232_v3  ;;  %v7246_v3 = vld [vmem:[#allocation86_spill] sm:$0xff] }
 0x964   :  { %3453 = vmatpush3.msra.mxu0 %v7233_v51 }
 0x965   :  { %3454 = vmatprep.subr.mxu0 %v7234_v63 }
 0x966   :  { %3455 = vmatpush3.msra.mxu0 %v7235_v50  ;;  %v7247_v50 = vld [vmem:[#allocation87_spill] sm:$0xff] }
 0x967   :  { %3456 = vmatprep.subr.mxu0 %v7236_v55 }
 0x968   :  { %3457 = vmatpush3.msra.mxu0 %v7237_v53 }
 0x969   :  { %3458 = vmatprep.subr.mxu0 %v7238_v54 }
 0x96a   :  { %3459 = vmatpush3.msra.mxu0 %v7239_v52 }
 0x96b   :  { %3460 = vmatprep.subr.mxu0 %v7240_v0  ;;  %v3257_v0 = vsel %vm1223_vm12, 1.0, %v7212_v57 }
 0x96c   :  { %3461 = vmatpush3.msra.mxu0 %v7241_v49  ;;  %v3258_v49 = vsel %vm1227_vm13, 1.0, %v7212_v57 }
 0x96d   :  { %3462 = vmatprep.subr.mxu0 %v7242_v61  ;;  %v7248_v61 = vld [vmem:[#allocation88_spill] sm:$0xff] }
 0x96e   :  { %3463 = vmatpush3.msra.mxu0 %v7243_v1  ;;  %v1226_v1 = vmul.f32 %v3257_v0, %v7248_v61  ;;  %v6073_v0 = vmov 0.0  }
 0x96f   :  { %3464 = vmatprep.subr.mxu0 %v7244_v48  ;;  %v7249_v48 = vld [vmem:[#allocation89_spill] sm:$0xff] }
 0x970   :  { %3465 = vmatpush3.msra.mxu0 %v7245_v56  ;;  %v1230_v56 = vmul.f32 %v3258_v49, %v7249_v48  ;;  %v6075_v49 = vmov 0.0  }
 0xa10   :  { %v1298_v62 = vpop.f32.mrf.mxu0  ;;  %v1369_v59 = vpop.f32.mrf.mxu1 }
 0xa11   :  { %v1299_v51 = vadd.f32 %v1298_v62, %v7246_v3  ;;  %v1231_v62 = vadd.f32 %v1230_v56, %v1226_v1 }
 0xa12   :  { %v1300_v63 = vpop.f32.mrf.mxu0  ;;  %v1371_v53 = vpop.f32.mrf.mxu1 }
 0xa13   :  { %v1301_v55 = vadd.f32 %v1300_v63, %v7247_v50  ;;  %v1374_v52 = vmul.f32 %v1369_v59, %v1299_v51  ;;  %v1447_v51 = vmul.f32 0.1, %v1231_v62  ;;  %v1449_v50 = vmul.f32 0.1, %v1222_v60 }
 0xa15   :  { %v1375_v54 = vmul.f32 %v1371_v53, %v1301_v55 }
 0xa17   :  { %1440 = vmatprep.mubr.f32.mxu0 %v1375_v54 }
 0xa18   :  { %1441 = vmatmul.mubr.f32.vlgmr.msra.gmra.mxu0 %v1374_v52 }
 0xad8   :  { %v3466_v3 = vpop.f32.mrf.mxu0 }
 0xada   :  { %v3467_v63 = vpop.f32.mrf.mxu0 }
 0xadb   :  { %v3468_v59 = vadd.f32 %v3467_v63, %v3466_v3 }
 0xadd   :  { %v1446_v55 = vmul.f32 0.1, %v3468_v59 }
 0xadf   :  { %v1448_v53 = vadd.f32 %v1447_v51, %v1446_v55 }
 0xae1   :  { %v1450_v54 = vadd.f32 %v1449_v50, %v1448_v53 }
 0xae3   :  { %v1451_v52 = vsub.f32 %v6005_v58, %v1450_v54  }
 0xae5   :  { %v7252_v57 = vmov %v1451_v52 }
 0xae6 LB: > { %v7080_v58 = vmov 0.0   ;;  %vm5110_vm14 = vmmov 0   ;;  %v1465_v60 = vadd.f32 %v5063_v49, %v5067_v52  ;;  %v7254_v61 = vld [vmem:[#allocation17_spill] sm:$0xff]  ;;  %s1540_s18 = scalar_select %p5051_p2, 1, 0  ;;  %s5071_s7 = sphi %s6079_s7, %s2193_s7   ;;  %v5067_v52 = vphi %v1451_v52, %v7267_v52   ;;  %v5063_v49 = vphi %v6075_v49, %v2173_v49   ;;  %v5059_v0 = vphi %v6073_v0, %v2176_v0   ;;  %v5055_v57 = vphi %v7252_v57, %v7266_v57   ;;  %p5051_p2 = pphi %p6067_p2, %p2192_p2  }
 0xae7   : > { %4056 = vmatprep.subr.mxu0 %v7080_v58  ;;  %4088 = vmatprep.mubr.msk.f32.mxu0 %vm5110_vm14, %v7080_v58  ;;  %s2193_s7 = sadd.s32 8, %s5071_s7  }
 0xae8   : > { %4057 = vmatpush3.msra.mxu0 %v5221_v18  ;;  %4091 = vmatprep.subr.mxu1 %v7080_v58 }
 0xae9   : > { %4058 = vmatprep.subr.mxu0 %v7080_v58  ;;  %4092 = vmatpush3.msra.mxu1 %v5221_v18 }
 0xaea   : > { %4059 = vmatpush3.msra.mxu0 %v5219_v17  ;;  %4093 = vmatprep.subr.mxu1 %v7080_v58 }
 0xaeb   : > { %4060 = vmatprep.subr.mxu0 %v7080_v58  ;;  %4094 = vmatpush3.msra.mxu1 %v5219_v17 }
 0xaec   : > { %4061 = vmatpush3.msra.mxu0 %v5217_v16  ;;  %4095 = vmatprep.subr.mxu1 %v7080_v58 }
 0xaed   : > { %4062 = vmatprep.subr.mxu0 %v7080_v58  ;;  %4096 = vmatpush3.msra.mxu1 %v5217_v16 }
 0xaee   : > { %4063 = vmatpush3.msra.mxu0 %v5215_v15  ;;  %4097 = vmatprep.subr.mxu1 %v7080_v58 }
 0xaef   : > { %4064 = vmatprep.subr.mxu0 %v7080_v58  ;;  %4098 = vmatpush3.msra.mxu1 %v5215_v15 }
 0xaf0   : > { %4065 = vmatpush3.msra.mxu0 %v5213_v14  ;;  %4099 = vmatprep.subr.mxu1 %v7080_v58 }
 0xaf1   : > { %4066 = vmatprep.subr.mxu0 %v7080_v58  ;;  %4100 = vmatpush3.msra.mxu1 %v5213_v14 }
 0xaf2   : > { %4067 = vmatpush3.msra.mxu0 %v5211_v13  ;;  %4101 = vmatprep.subr.mxu1 %v7080_v58 }
 0xaf3   : > { %4068 = vmatprep.subr.mxu0 %v7080_v58  ;;  %4102 = vmatpush3.msra.mxu1 %v5211_v13 }
 0xaf4   : > { %4069 = vmatpush3.msra.mxu0 %v5209_v12  ;;  %4103 = vmatprep.subr.mxu1 %v7080_v58 }
 0xaf5   : > { %4070 = vmatprep.subr.mxu0 %v7080_v58  ;;  %4104 = vmatpush3.msra.mxu1 %v5209_v12 }
 0xaf6   : > { %4071 = vmatpush3.msra.mxu0 %v5207_v11  ;;  %4105 = vmatprep.subr.mxu1 %v7080_v58 }
 0xaf7   : > { %4072 = vmatprep.subr.mxu0 %v7080_v58  ;;  %4106 = vmatpush3.msra.mxu1 %v5207_v11 }
 0xaf8   : > { %4073 = vmatpush3.msra.mxu0 %v5205_v10  ;;  %4107 = vmatprep.subr.mxu1 %v7080_v58 }
 0xaf9   : > { %4074 = vmatprep.subr.mxu0 %v7080_v58  ;;  %4108 = vmatpush3.msra.mxu1 %v5205_v10 }
 0xafa   : > { %4075 = vmatpush3.msra.mxu0 %v5203_v9  ;;  %4109 = vmatprep.subr.mxu1 %v7080_v58 }
 0xafb   : > { %4076 = vmatprep.subr.mxu0 %v7080_v58  ;;  %4110 = vmatpush3.msra.mxu1 %v5203_v9 }
 0xafc   : > { %4077 = vmatpush3.msra.mxu0 %v5201_v8  ;;  %4111 = vmatprep.subr.mxu1 %v7080_v58 }
 0xafd   : > { %4078 = vmatprep.subr.mxu0 %v7080_v58  ;;  %4112 = vmatpush3.msra.mxu1 %v5201_v8 }
 0xafe   : > { %4079 = vmatpush3.msra.mxu0 %v5199_v7  ;;  %4113 = vmatprep.subr.mxu1 %v7080_v58 }
 0xaff   : > { %4080 = vmatprep.subr.mxu0 %v7080_v58  ;;  %4114 = vmatpush3.msra.mxu1 %v5199_v7 }
 0xb00   : > { %4081 = vmatpush3.msra.mxu0 %v5197_v6  ;;  %4115 = vmatprep.subr.mxu1 %v7080_v58 }
 0xb01   : > { %4082 = vmatprep.subr.mxu0 %v7080_v58  ;;  %4116 = vmatpush3.msra.mxu1 %v5197_v6 }
 0xb02   : > { %4083 = vmatpush3.msra.mxu0 %v5195_v5  ;;  %4117 = vmatprep.subr.mxu1 %v7080_v58 }
 0xb03   : > { %4084 = vmatprep.subr.mxu0 %v7080_v58  ;;  %4118 = vmatpush3.msra.mxu1 %v5195_v5 }
 0xb04   : > { %4085 = vmatpush3.msra.mxu0 %v5193_v4  ;;  %4119 = vmatprep.subr.mxu1 %v7080_v58 }
 0xb05   : > { %4086 = vmatprep.subr.mxu0 %v7080_v58  ;;  %4120 = vmatpush3.msra.mxu1 %v5193_v4 }
 0xb06   : > { %4087 = vmatpush3.msra.mxu0 %v7254_v61  ;;  %4121 = vmatprep.subr.mxu1 %v7080_v58 }
 0xb07   : > { %4089 = vmatmul.mubr.f32.vlgmr.msra.gmra.mxu0 %v1465_v60  ;;  %4122 = vmatpush3.msra.mxu1 %v7254_v61 }
 0xb08   : > { %4123 = vmatprep.mubr.msk.f32.mxu1 %vm5110_vm14, %v7080_v58  ;;  %4126 = vmatprep.subr.mxu0 %v7080_v58 }
 0xb09   : > { %4127 = vmatpush3.msra.mxu0 %v5221_v18  ;;  %4158 = vmatprep.mubr.msk.f32.mxu0 %vm5110_vm14, %v7080_v58 }
 0xb0a   : > { %4128 = vmatprep.subr.mxu0 %v7080_v58  ;;  %4161 = vmatprep.subr.mxu1 %v7080_v58 }
 0xb0b   : > { %4129 = vmatpush3.msra.mxu0 %v5219_v17 }
 0xb0c   : > { %4130 = vmatprep.subr.mxu0 %v7080_v58 }
 0xb0d   : > { %4131 = vmatpush3.msra.mxu0 %v5217_v16 }
 0xb0e   : > { %4132 = vmatprep.subr.mxu0 %v7080_v58 }
 0xb0f   : > { %4133 = vmatpush3.msra.mxu0 %v5215_v15 }
 0xb10   : > { %4134 = vmatprep.subr.mxu0 %v7080_v58 }
 0xb11   : > { %4135 = vmatpush3.msra.mxu0 %v5213_v14 }
 0xb12   : > { %4136 = vmatprep.subr.mxu0 %v7080_v58 }
 0xb13   : > { %4137 = vmatpush3.msra.mxu0 %v5211_v13 }
 0xb14   : > { %4138 = vmatprep.subr.mxu0 %v7080_v58 }
 0xb15   : > { %4139 = vmatpush3.msra.mxu0 %v5209_v12 }
 0xb16   : > { %4140 = vmatprep.subr.mxu0 %v7080_v58 }
 0xb17   : > { %4141 = vmatpush3.msra.mxu0 %v5207_v11 }
 0xb18   : > { %4142 = vmatprep.subr.mxu0 %v7080_v58 }
 0xb19   : > { %4143 = vmatpush3.msra.mxu0 %v5205_v10 }
 0xb1a   : > { %4144 = vmatprep.subr.mxu0 %v7080_v58 }
 0xb1b   : > { %4145 = vmatpush3.msra.mxu0 %v5203_v9 }
 0xb1c   : > { %4146 = vmatprep.subr.mxu0 %v7080_v58 }
 0xb1d   : > { %4147 = vmatpush3.msra.mxu0 %v5201_v8 }
 0xb1e   : > { %4148 = vmatprep.subr.mxu0 %v7080_v58 }
 0xb1f   : > { %4149 = vmatpush3.msra.mxu0 %v5199_v7 }
 0xb20   : > { %4150 = vmatprep.subr.mxu0 %v7080_v58 }
 0xb21   : > { %4151 = vmatpush3.msra.mxu0 %v5197_v6 }
 0xb22   : > { %4152 = vmatprep.subr.mxu0 %v7080_v58 }
 0xb23   : > { %4153 = vmatpush3.msra.mxu0 %v5195_v5 }
 0xb24   : > { %4154 = vmatprep.subr.mxu0 %v7080_v58 }
 0xb25   : > { %4155 = vmatpush3.msra.mxu0 %v5193_v4 }
 0xb26   : > { %4156 = vmatprep.subr.mxu0 %v7080_v58 }
 0xb27   : > { %4157 = vmatpush3.msra.mxu0 %v7254_v61 }
 0xb28   : > { %4196 = vmatprep.subr.mxu0 %v7080_v58 }
 0xbc7   : > { %v1532_v1 = vpop.f32.mrf.mxu0 }
 0xbc8   : > { %v6204_v48 = vadd.f32 %v5226_v19, %v1532_v1 }
 0xbc9   : > { %v4090_v56 = vpop.f32.mrf.mxu0 }
 0xbca   : > { %v1544_v62 = vsub.f32 0.0, %v6204_v48  ;;  %v1537_v3 = vadd.f32 %v5059_v0, %v6204_v48  ;;  %v1536_v63 = vsub.f32 %v1465_v60, %v6204_v48 }
 0xbcc   : > { %1545 = vmax.xlane.f32.xlu0 %v1544_v62  ;;  %v1538_v59 = vmax.f32 %v1537_v3, 0.0 }
 0xbce   : > { %v1539_v51 = vsub.f32 %v1537_v3, %v1538_v59  ;;  %v1556_v50 = vadd.f32 %v1538_v59, %v1536_v63 }
 0xbd0   : > { %4124 = vmatmul.mubr.f32.vlgmr.msra.gmra.mxu1 %v1556_v50 }
 0xbd1   : > { %4162 = vmatpush3.msra.mxu1 %v5221_v18  ;;  %4193 = vmatprep.mubr.msk.f32.mxu1 %vm5110_vm14, %v7080_v58 }
 0xbd2   : > { %4163 = vmatprep.subr.mxu1 %v7080_v58 }
 0xbd3   : > { %4164 = vmatpush3.msra.mxu1 %v5219_v17 }
 0xbd4   : > { %4165 = vmatprep.subr.mxu1 %v7080_v58 }
 0xbd5   : > { %4166 = vmatpush3.msra.mxu1 %v5217_v16 }
 0xbd6   : > { %4167 = vmatprep.subr.mxu1 %v7080_v58 }
 0xbd7   : > { %4168 = vmatpush3.msra.mxu1 %v5215_v15 }
 0xbd8   : > { %4169 = vmatprep.subr.mxu1 %v7080_v58 }
 0xbd9   : > { %4170 = vmatpush3.msra.mxu1 %v5213_v14 }
 0xbda   : > { %4171 = vmatprep.subr.mxu1 %v7080_v58 }
 0xbdb   : > { %4172 = vmatpush3.msra.mxu1 %v5211_v13 }
 0xbdc   : > { %4173 = vmatprep.subr.mxu1 %v7080_v58 }
 0xbdd   : > { %4174 = vmatpush3.msra.mxu1 %v5209_v12 }
 0xbde   : > { %4175 = vmatprep.subr.mxu1 %v7080_v58 }
 0xbdf   : > { %4176 = vmatpush3.msra.mxu1 %v5207_v11 }
 0xbe0   : > { %4177 = vmatprep.subr.mxu1 %v7080_v58 }
 0xbe1   : > { %4178 = vmatpush3.msra.mxu1 %v5205_v10 }
 0xbe2   : > { %4179 = vmatprep.subr.mxu1 %v7080_v58 }
 0xbe3   : > { %4180 = vmatpush3.msra.mxu1 %v5203_v9 }
 0xbe4   : > { %4181 = vmatprep.subr.mxu1 %v7080_v58 }
 0xbe5   : > { %4182 = vmatpush3.msra.mxu1 %v5201_v8 }
 0xbe6   : > { %4183 = vmatprep.subr.mxu1 %v7080_v58 }
 0xbe7   : > { %4184 = vmatpush3.msra.mxu1 %v5199_v7 }
 0xbe8   : > { %4185 = vmatprep.subr.mxu1 %v7080_v58 }
 0xbe9   : > { %4186 = vmatpush3.msra.mxu1 %v5197_v6 }
 0xbea   : > { %4187 = vmatprep.subr.mxu1 %v7080_v58 }
 0xbeb   : > { %4188 = vmatpush3.msra.mxu1 %v5195_v5 }
 0xbec   : > { %4189 = vmatprep.subr.mxu1 %v7080_v58 }
 0xbed   : > { %4190 = vmatpush3.msra.mxu1 %v5193_v4 }
 0xbee   : > { %4191 = vmatprep.subr.mxu1 %v7080_v58 }
 0xbef   : > { %4192 = vmatpush3.msra.mxu1 %v7254_v61 }
 0xbf0   : > { %4231 = vmatprep.subr.mxu1 %v7080_v58  ;;  %v1541_v58 = vstv %s1540_s18 }
 0xbf1   : > { %vm1542_vm15 = vcmp.eq.s32.totalorder %v1541_v58, 1 }
 0xc55   : > { %v1546_v55 = vpop.xlane.xlu0 %1545 }
 0xc56   : > { %v1547_v53 = vrot.slane %v1546_v55, 4 }
 0xc58   : > { %v1548_v54 = vmax.f32 %v1546_v55, %v1547_v53 }
 0xc5a   : > { %v1549_v52 = vrot.slane %v1548_v54, 2 }
 0xc5c   : > { %v1550_v0 = vmax.f32 %v1548_v54, %v1549_v52  ;;  %v7256_v52 = vmov 0.0  }
 0xc5e   : > { %v1551_v49 = vrot.slane %v1550_v0, 1 }
 0xc60   : > { %v1552_v60 = vmax.f32 %v1550_v0, %v1551_v49 }
 0xc62   : > { %4632 = vpush %v1552_v60 }
 0xc90   : > { %v1623_v1 = vpop.f32.mrf.mxu1 }
 0xc91   : > { %v1624_v56 = vadd.f32 %v5226_v19, %v1623_v1 }
 0xc92   : > { %v4125_v62 = vpop.f32.mrf.mxu1 }
 0xc93   : > { %v1628_v3 = vadd.f32 %v1624_v56, %v1539_v51  ;;  %s4633_s19 = spop %4632  ;;  %v1635_v63 = vsub.f32 0.0, %v1624_v56  ;;  %v1627_v59 = vsub.f32 %v1556_v50, %v1624_v56  ;;  %v1543_v50 = vsel %vm1542_vm15, %v5055_v57, %v6204_v48 }
 0xc94   : > { %p1554_p3 = scmp.lt.f32.partialorder %s4633_s19, 0.001 }
 0xc95   : > { %1636 = vmax.xlane.f32.xlu0 %v1635_v63  ;;  %v1629_v55 = vmax.f32 %v1628_v3, 0.0 }
 0xc96   : > { %p6249_p4 = por %p5051_p2, %p1554_p3 }
 0xc97   : > { %v1647_v53 = vadd.f32 %v1629_v55, %v1627_v59  ;;  %v1630_v54 = vsub.f32 %v1628_v3, %v1629_v55 }
 0xc98   : > { %s1631_s21 = scalar_select %p6249_p4, 1, 0 }
 0xc99   : > { %4159 = vmatmul.mubr.f32.vlgmr.msra.gmra.mxu0 %v1647_v53 }
 0xc9a   : > { %v1632_v51 = vstv %s1631_s21  ;;  %4197 = vmatpush3.msra.mxu0 %v5221_v18  ;;  %4228 = vmatprep.mubr.msk.f32.mxu0 %vm5110_vm14, %v7256_v52 }
 0xc9b   : > { %vm1633_vm1 = vcmp.eq.s32.totalorder %v1632_v51, 1  ;;  %4198 = vmatprep.subr.mxu0 %v7256_v52 }
 0xc9c   : > { %v1634_v0 = vsel %vm1633_vm1, %v1543_v50, %v1624_v56  ;;  %4199 = vmatpush3.msra.mxu0 %v5219_v17 }
 0xc9d   : > { %4200 = vmatprep.subr.mxu0 %v7256_v52 }
 0xc9e   : > { %4201 = vmatpush3.msra.mxu0 %v5217_v16 }
 0xc9f   : > { %4202 = vmatprep.subr.mxu0 %v7256_v52 }
 0xca0   : > { %4203 = vmatpush3.msra.mxu0 %v5215_v15 }
 0xca1   : > { %4204 = vmatprep.subr.mxu0 %v7256_v52 }
 0xca2   : > { %4205 = vmatpush3.msra.mxu0 %v5213_v14 }
 0xca3   : > { %4206 = vmatprep.subr.mxu0 %v7256_v52 }
 0xca4   : > { %4207 = vmatpush3.msra.mxu0 %v5211_v13 }
 0xca5   : > { %4208 = vmatprep.subr.mxu0 %v7256_v52 }
 0xca6   : > { %4209 = vmatpush3.msra.mxu0 %v5209_v12 }
 0xca7   : > { %4210 = vmatprep.subr.mxu0 %v7256_v52 }
 0xca8   : > { %4211 = vmatpush3.msra.mxu0 %v5207_v11 }
 0xca9   : > { %4212 = vmatprep.subr.mxu0 %v7256_v52 }
 0xcaa   : > { %4213 = vmatpush3.msra.mxu0 %v5205_v10 }
 0xcab   : > { %4214 = vmatprep.subr.mxu0 %v7256_v52 }
 0xcac   : > { %4215 = vmatpush3.msra.mxu0 %v5203_v9 }
 0xcad   : > { %4216 = vmatprep.subr.mxu0 %v7256_v52 }
 0xcae   : > { %4217 = vmatpush3.msra.mxu0 %v5201_v8 }
 0xcaf   : > { %4218 = vmatprep.subr.mxu0 %v7256_v52 }
 0xcb0   : > { %4219 = vmatpush3.msra.mxu0 %v5199_v7 }
 0xcb1   : > { %4220 = vmatprep.subr.mxu0 %v7256_v52 }
 0xcb2   : > { %4221 = vmatpush3.msra.mxu0 %v5197_v6 }
 0xcb3   : > { %4222 = vmatprep.subr.mxu0 %v7256_v52 }
 0xcb4   : > { %4223 = vmatpush3.msra.mxu0 %v5195_v5 }
 0xcb5   : > { %4224 = vmatprep.subr.mxu0 %v7256_v52 }
 0xcb6   : > { %4225 = vmatpush3.msra.mxu0 %v5193_v4 }
 0xcb7   : > { %4226 = vmatprep.subr.mxu0 %v7256_v52 }
 0xcb8   : > { %4227 = vmatpush3.msra.mxu0 %v7254_v61 }
 0xcb9   : > { %4266 = vmatprep.subr.mxu0 %v7256_v52 }
 0xd1e   : > { %v1637_v57 = vpop.xlane.xlu0 %1636 }
 0xd1f   : > { %v1638_v58 = vrot.slane %v1637_v57, 4 }
 0xd21   : > { %v1639_v48 = vmax.f32 %v1637_v57, %v1638_v58 }
 0xd23   : > { %v1640_v49 = vrot.slane %v1639_v48, 2 }
 0xd25   : > { %v1641_v60 = vmax.f32 %v1639_v48, %v1640_v49 }
 0xd27   : > { %v1642_v1 = vrot.slane %v1641_v60, 1 }
 0xd29   : > { %v1643_v56 = vmax.f32 %v1641_v60, %v1642_v1 }
 0xd2b   : > { %4634 = vpush %v1643_v56 }
 0xd59   : > { %v1714_v62 = vpop.f32.mrf.mxu0 }
 0xd5a   : > { %v1715_v3 = vadd.f32 %v5226_v19, %v1714_v62 }
 0xd5b   : > { %v4160_v63 = vpop.f32.mrf.mxu0 }
 0xd5c   : > { %v1719_v59 = vadd.f32 %v1715_v3, %v1630_v54  ;;  %s4635_s22 = spop %4634  ;;  %v1726_v55 = vsub.f32 0.0, %v1715_v3  ;;  %v1718_v51 = vsub.f32 %v1647_v53, %v1715_v3 }
 0xd5d   : > { %p1645_p5 = scmp.lt.f32.partialorder %s4635_s22, 0.001 }
 0xd5e   : > { %1727 = vmax.xlane.f32.xlu1 %v1726_v55  ;;  %v1720_v50 = vmax.f32 %v1719_v59, 0.0 }
 0xd5f   : > { %p6294_p6 = por %p1645_p5, %p6249_p4  ;;  %p1460_p5 = scmp.lt.s32.totalorder %s2193_s7, 300 }
 0xd60   : > { %v1738_v57 = vadd.f32 %v1720_v50, %v1718_v51  ;;  %v1721_v58 = vsub.f32 %v1719_v59, %v1720_v50 }
 0xd61   : > { %s1722_s24 = scalar_select %p6294_p6, 1, 0 }
 0xd62   : > { %4194 = vmatmul.mubr.f32.vlgmr.msra.gmra.mxu1 %v1738_v57 }
 0xd63   : > { %v1723_v48 = vstv %s1722_s24  ;;  %4232 = vmatpush3.msra.mxu1 %v5221_v18  ;;  %4263 = vmatprep.mubr.msk.f32.mxu1 %vm5110_vm14, %v7256_v52 }
 0xd64   : > { %vm1724_vm2 = vcmp.eq.s32.totalorder %v1723_v48, 1  ;;  %4233 = vmatprep.subr.mxu1 %v7256_v52 }
 0xd65   : > { %v1725_v53 = vsel %vm1724_vm2, %v1634_v0, %v1715_v3  ;;  %4234 = vmatpush3.msra.mxu1 %v5219_v17 }
 0xd66   : > { %4235 = vmatprep.subr.mxu1 %v7256_v52 }
 0xd67   : > { %4236 = vmatpush3.msra.mxu1 %v5217_v16 }
 0xd68   : > { %4237 = vmatprep.subr.mxu1 %v7256_v52 }
 0xd69   : > { %4238 = vmatpush3.msra.mxu1 %v5215_v15 }
 0xd6a   : > { %4239 = vmatprep.subr.mxu1 %v7256_v52 }
 0xd6b   : > { %4240 = vmatpush3.msra.mxu1 %v5213_v14 }
 0xd6c   : > { %4241 = vmatprep.subr.mxu1 %v7256_v52 }
 0xd6d   : > { %4242 = vmatpush3.msra.mxu1 %v5211_v13 }
 0xd6e   : > { %4243 = vmatprep.subr.mxu1 %v7256_v52 }
 0xd6f   : > { %4244 = vmatpush3.msra.mxu1 %v5209_v12 }
 0xd70   : > { %4245 = vmatprep.subr.mxu1 %v7256_v52 }
 0xd71   : > { %4246 = vmatpush3.msra.mxu1 %v5207_v11 }
 0xd72   : > { %4247 = vmatprep.subr.mxu1 %v7256_v52 }
 0xd73   : > { %4248 = vmatpush3.msra.mxu1 %v5205_v10 }
 0xd74   : > { %4249 = vmatprep.subr.mxu1 %v7256_v52 }
 0xd75   : > { %4250 = vmatpush3.msra.mxu1 %v5203_v9 }
 0xd76   : > { %4251 = vmatprep.subr.mxu1 %v7256_v52 }
 0xd77   : > { %4252 = vmatpush3.msra.mxu1 %v5201_v8 }
 0xd78   : > { %4253 = vmatprep.subr.mxu1 %v7256_v52 }
 0xd79   : > { %4254 = vmatpush3.msra.mxu1 %v5199_v7 }
 0xd7a   : > { %4255 = vmatprep.subr.mxu1 %v7256_v52 }
 0xd7b   : > { %4256 = vmatpush3.msra.mxu1 %v5197_v6 }
 0xd7c   : > { %4257 = vmatprep.subr.mxu1 %v7256_v52 }
 0xd7d   : > { %4258 = vmatpush3.msra.mxu1 %v5195_v5 }
 0xd7e   : > { %4259 = vmatprep.subr.mxu1 %v7256_v52 }
 0xd7f   : > { %4260 = vmatpush3.msra.mxu1 %v5193_v4 }
 0xd80   : > { %4261 = vmatprep.subr.mxu1 %v7256_v52 }
 0xd81   : > { %4262 = vmatpush3.msra.mxu1 %v7254_v61 }
 0xd82   : > { %4301 = vmatprep.subr.mxu1 %v7256_v52 }
 0xde7   : > { %v1728_v54 = vpop.xlane.xlu1 %1727 }
 0xde8   : > { %v1729_v0 = vrot.slane %v1728_v54, 4 }
 0xdea   : > { %v1730_v49 = vmax.f32 %v1728_v54, %v1729_v0 }
 0xdec   : > { %v1731_v60 = vrot.slane %v1730_v49, 2 }
 0xdee   : > { %v1732_v1 = vmax.f32 %v1730_v49, %v1731_v60 }
 0xdf0   : > { %v1733_v56 = vrot.slane %v1732_v1, 1 }
 0xdf2   : > { %v1734_v62 = vmax.f32 %v1732_v1, %v1733_v56 }
 0xdf4   : > { %4636 = vpush %v1734_v62 }
 0xe22   : > { %v1805_v3 = vpop.f32.mrf.mxu1 }
 0xe23   : > { %v1806_v63 = vadd.f32 %v5226_v19, %v1805_v3 }
 0xe24   : > { %v4195_v59 = vpop.f32.mrf.mxu1 }
 0xe25   : > { %v1810_v55 = vadd.f32 %v1806_v63, %v1721_v58  ;;  %s4637_s1 = spop %4636  ;;  %v1817_v51 = vsub.f32 0.0, %v1806_v63  ;;  %v1809_v50 = vsub.f32 %v1738_v57, %v1806_v63 }
 0xe26   : > { %p1736_p7 = scmp.lt.f32.partialorder %s4637_s1, 0.001 }
 0xe27   : > { %1818 = vmax.xlane.f32.xlu1 %v1817_v51  ;;  %v1811_v48 = vmax.f32 %v1810_v55, 0.0 }
 0xe28   : > { %p6337_p8 = por %p1736_p7, %p6294_p6 }
 0xe29   : > { %v1829_v54 = vadd.f32 %v1811_v48, %v1809_v50  ;;  %v1812_v0 = vsub.f32 %v1810_v55, %v1811_v48 }
 0xe2a   : > { %s1813_s26 = scalar_select %p6337_p8, 1, 0 }
 0xe2b   : > { %4229 = vmatmul.mubr.f32.vlgmr.msra.gmra.mxu0 %v1829_v54 }
 0xe2c   : > { %v1814_v49 = vstv %s1813_s26  ;;  %4267 = vmatpush3.msra.mxu0 %v5221_v18  ;;  %4298 = vmatprep.mubr.msk.f32.mxu0 %vm5110_vm14, %v7256_v52 }
 0xe2d   : > { %vm1815_vm3 = vcmp.eq.s32.totalorder %v1814_v49, 1  ;;  %4268 = vmatprep.subr.mxu0 %v7256_v52 }
 0xe2e   : > { %v1816_v57 = vsel %vm1815_vm3, %v1725_v53, %v1806_v63  ;;  %4269 = vmatpush3.msra.mxu0 %v5219_v17 }
 0xe2f   : > { %4270 = vmatprep.subr.mxu0 %v7256_v52 }
 0xe30   : > { %4271 = vmatpush3.msra.mxu0 %v5217_v16 }
 0xe31   : > { %4272 = vmatprep.subr.mxu0 %v7256_v52 }
 0xe32   : > { %4273 = vmatpush3.msra.mxu0 %v5215_v15 }
 0xe33   : > { %4274 = vmatprep.subr.mxu0 %v7256_v52 }
 0xe34   : > { %4275 = vmatpush3.msra.mxu0 %v5213_v14 }
 0xe35   : > { %4276 = vmatprep.subr.mxu0 %v7256_v52 }
 0xe36   : > { %4277 = vmatpush3.msra.mxu0 %v5211_v13 }
 0xe37   : > { %4278 = vmatprep.subr.mxu0 %v7256_v52 }
 0xe38   : > { %4279 = vmatpush3.msra.mxu0 %v5209_v12 }
 0xe39   : > { %4280 = vmatprep.subr.mxu0 %v7256_v52 }
 0xe3a   : > { %4281 = vmatpush3.msra.mxu0 %v5207_v11 }
 0xe3b   : > { %4282 = vmatprep.subr.mxu0 %v7256_v52 }
 0xe3c   : > { %4283 = vmatpush3.msra.mxu0 %v5205_v10 }
 0xe3d   : > { %4284 = vmatprep.subr.mxu0 %v7256_v52 }
 0xe3e   : > { %4285 = vmatpush3.msra.mxu0 %v5203_v9 }
 0xe3f   : > { %4286 = vmatprep.subr.mxu0 %v7256_v52 }
 0xe40   : > { %4287 = vmatpush3.msra.mxu0 %v5201_v8 }
 0xe41   : > { %4288 = vmatprep.subr.mxu0 %v7256_v52 }
 0xe42   : > { %4289 = vmatpush3.msra.mxu0 %v5199_v7 }
 0xe43   : > { %4290 = vmatprep.subr.mxu0 %v7256_v52 }
 0xe44   : > { %4291 = vmatpush3.msra.mxu0 %v5197_v6 }
 0xe45   : > { %4292 = vmatprep.subr.mxu0 %v7256_v52 }
 0xe46   : > { %4293 = vmatpush3.msra.mxu0 %v5195_v5 }
 0xe47   : > { %4294 = vmatprep.subr.mxu0 %v7256_v52 }
 0xe48   : > { %4295 = vmatpush3.msra.mxu0 %v5193_v4 }
 0xe49   : > { %4296 = vmatprep.subr.mxu0 %v7256_v52 }
 0xe4a   : > { %4297 = vmatpush3.msra.mxu0 %v7254_v61 }
 0xeb0   : > { %v1819_v58 = vpop.xlane.xlu1 %1818 }
 0xeb1   : > { %v1820_v53 = vrot.slane %v1819_v58, 4 }
 0xeb3   : > { %v1821_v60 = vmax.f32 %v1819_v58, %v1820_v53 }
 0xeb5   : > { %v1822_v1 = vrot.slane %v1821_v60, 2 }
 0xeb7   : > { %v1823_v56 = vmax.f32 %v1821_v60, %v1822_v1 }
 0xeb9   : > { %v1824_v62 = vrot.slane %v1823_v56, 1 }
 0xebb   : > { %v1825_v3 = vmax.f32 %v1823_v56, %v1824_v62 }
 0xebd   : > { %4638 = vpush %v1825_v3 }
 0xeeb   : > { %v1896_v63 = vpop.f32.mrf.mxu0 }
 0xeec   : > { %v1897_v59 = vadd.f32 %v5226_v19, %v1896_v63 }
 0xeed   : > { %v4230_v55 = vpop.f32.mrf.mxu0 }
 0xeee   : > { %v1901_v51 = vadd.f32 %v1897_v59, %v1812_v0  ;;  %s4639_s27 = spop %4638  ;;  %v1908_v50 = vsub.f32 0.0, %v1897_v59  ;;  %v1900_v48 = vsub.f32 %v1829_v54, %v1897_v59 }
 0xeef   : > { %p1827_p9 = scmp.lt.f32.partialorder %s4639_s27, 0.001 }
 0xef0   : > { %1909 = vmax.xlane.f32.xlu0 %v1908_v50  ;;  %v1902_v49 = vmax.f32 %v1901_v51, 0.0 }
 0xef1   : > { %p6379_p10 = por %p1827_p9, %p6337_p8 }
 0xef2   : > { %v1920_v58 = vadd.f32 %v1902_v49, %v1900_v48  ;;  %v1903_v53 = vsub.f32 %v1901_v51, %v1902_v49 }
 0xef3   : > { %s1904_s29 = scalar_select %p6379_p10, 1, 0 }
 0xef4   : > { %4264 = vmatmul.mubr.f32.vlgmr.msra.gmra.mxu1 %v1920_v58 }
 0xef5   : > { %v1905_v60 = vstv %s1904_s29  ;;  %4302 = vmatpush3.msra.mxu1 %v5221_v18  ;;  %4333 = vmatprep.mubr.msk.f32.mxu1 %vm5110_vm14, %v7256_v52 }
 0xef6   : > { %vm1906_vm4 = vcmp.eq.s32.totalorder %v1905_v60, 1  ;;  %4303 = vmatprep.subr.mxu1 %v7256_v52 }
 0xef7   : > { %v1907_v54 = vsel %vm1906_vm4, %v1816_v57, %v1897_v59  ;;  %4304 = vmatpush3.msra.mxu1 %v5219_v17 }
 0xef8   : > { %4305 = vmatprep.subr.mxu1 %v7256_v52 }
 0xef9   : > { %4306 = vmatpush3.msra.mxu1 %v5217_v16 }
 0xefa   : > { %4307 = vmatprep.subr.mxu1 %v7256_v52 }
 0xefb   : > { %4308 = vmatpush3.msra.mxu1 %v5215_v15 }
 0xefc   : > { %4309 = vmatprep.subr.mxu1 %v7256_v52 }
 0xefd   : > { %4310 = vmatpush3.msra.mxu1 %v5213_v14 }
 0xefe   : > { %4311 = vmatprep.subr.mxu1 %v7256_v52 }
 0xeff   : > { %4312 = vmatpush3.msra.mxu1 %v5211_v13 }
 0xf00   : > { %4313 = vmatprep.subr.mxu1 %v7256_v52 }
 0xf01   : > { %4314 = vmatpush3.msra.mxu1 %v5209_v12 }
 0xf02   : > { %4315 = vmatprep.subr.mxu1 %v7256_v52 }
 0xf03   : > { %4316 = vmatpush3.msra.mxu1 %v5207_v11 }
 0xf04   : > { %4317 = vmatprep.subr.mxu1 %v7256_v52 }
 0xf05   : > { %4318 = vmatpush3.msra.mxu1 %v5205_v10 }
 0xf06   : > { %4319 = vmatprep.subr.mxu1 %v7256_v52 }
 0xf07   : > { %4320 = vmatpush3.msra.mxu1 %v5203_v9 }
 0xf08   : > { %4321 = vmatprep.subr.mxu1 %v7256_v52 }
 0xf09   : > { %4322 = vmatpush3.msra.mxu1 %v5201_v8 }
 0xf0a   : > { %4323 = vmatprep.subr.mxu1 %v7256_v52 }
 0xf0b   : > { %4324 = vmatpush3.msra.mxu1 %v5199_v7 }
 0xf0c   : > { %4325 = vmatprep.subr.mxu1 %v7256_v52 }
 0xf0d   : > { %4326 = vmatpush3.msra.mxu1 %v5197_v6 }
 0xf0e   : > { %4327 = vmatprep.subr.mxu1 %v7256_v52 }
 0xf0f   : > { %4328 = vmatpush3.msra.mxu1 %v5195_v5 }
 0xf10   : > { %4329 = vmatprep.subr.mxu1 %v7256_v52 }
 0xf11   : > { %4330 = vmatpush3.msra.mxu1 %v5193_v4 }
 0xf12   : > { %4331 = vmatprep.subr.mxu1 %v7256_v52 }
 0xf13   : > { %4332 = vmatpush3.msra.mxu1 %v7254_v61 }
 0xf79   : > { %v1910_v0 = vpop.xlane.xlu0 %1909 }
 0xf7a   : > { %v1911_v57 = vrot.slane %v1910_v0, 4 }
 0xf7c   : > { %v1912_v1 = vmax.f32 %v1910_v0, %v1911_v57 }
 0xf7e   : > { %v1913_v56 = vrot.slane %v1912_v1, 2 }
 0xf80   : > { %v1914_v62 = vmax.f32 %v1912_v1, %v1913_v56 }
 0xf82   : > { %v1915_v3 = vrot.slane %v1914_v62, 1 }
 0xf84   : > { %v1916_v63 = vmax.f32 %v1914_v62, %v1915_v3 }
 0xf86   : > { %4640 = vpush %v1916_v63 }
 0xfb4   : > { %v1987_v59 = vpop.f32.mrf.mxu1 }
 0xfb5   : > { %v1988_v55 = vadd.f32 %v5226_v19, %v1987_v59 }
 0xfb6   : > { %v4265_v51 = vpop.f32.mrf.mxu1 }
 0xfb7   : > { %v1992_v50 = vadd.f32 %v1988_v55, %v1903_v53  ;;  %s4641_s30 = spop %4640  ;;  %v1999_v48 = vsub.f32 0.0, %v1988_v55  ;;  %v1991_v52 = vsub.f32 %v1920_v58, %v1988_v55 }
 0xfb8   : > { %p1918_p11 = scmp.lt.f32.partialorder %s4641_s30, 0.001 }
 0xfb9   : > { %2000 = vmax.xlane.f32.xlu1 %v1999_v48  ;;  %v1993_v61 = vmax.f32 %v1992_v50, 0.0 }
 0xfba   : > { %p6421_p12 = por %p1918_p11, %p6379_p10 }
 0xfbb   : > { %v2011_v49 = vadd.f32 %v1993_v61, %v1991_v52  ;;  %v1994_v60 = vsub.f32 %v1992_v50, %v1993_v61 }
 0xfbc   : > { %s1995_s5 = scalar_select %p6421_p12, 1, 0 }
 0xfbd   : > { %4299 = vmatmul.mubr.f32.vlgmr.msra.gmra.mxu0 %v2011_v49 }
 0xfbe   : > { %v1996_v0 = vstv %s1995_s5 }
 0xfbf   : > { %vm1997_vm5 = vcmp.eq.s32.totalorder %v1996_v0, 1 }
 0xfc0   : > { %v1998_v53 = vsel %vm1997_vm5, %v1907_v54, %v1988_v55 }
0x1042   : > { %v2001_v57 = vpop.xlane.xlu1 %2000 }
0x1043   : > { %v2002_v1 = vrot.slane %v2001_v57, 4 }
0x1045   : > { %v2003_v56 = vmax.f32 %v2001_v57, %v2002_v1 }
0x1047   : > { %v2004_v58 = vrot.slane %v2003_v56, 2 }
0x1049   : > { %v2005_v62 = vmax.f32 %v2003_v56, %v2004_v58 }
0x104b   : > { %v2006_v3 = vrot.slane %v2005_v62, 1 }
0x104d   : > { %v2007_v63 = vmax.f32 %v2005_v62, %v2006_v3 }
0x104f   : > { %4642 = vpush %v2007_v63 }
0x107d   : > { %v2078_v59 = vpop.f32.mrf.mxu0 }
0x107e   : > { %v2079_v51 = vadd.f32 %v5226_v19, %v2078_v59 }
0x107f   : > { %v4300_v48 = vpop.f32.mrf.mxu0 }
0x1080   : > { %v2083_v50 = vadd.f32 %v2079_v51, %v1994_v60  ;;  %s4643_s11 = spop %4642  ;;  %v2090_v52 = vsub.f32 0.0, %v2079_v51  ;;  %v2082_v61 = vsub.f32 %v2011_v49, %v2079_v51 }
0x1081   : > { %p2009_p13 = scmp.lt.f32.partialorder %s4643_s11, 0.001 }
0x1082   : > { %2091 = vmax.xlane.f32.xlu0 %v2090_v52  ;;  %v2084_v54 = vmax.f32 %v2083_v50, 0.0 }
0x1083   : > { %p6430_p0 = por %p2009_p13, %p6421_p12 }
0x1084   : > { %v2102_v55 = vadd.f32 %v2084_v54, %v2082_v61  ;;  %v2085_v0 = vsub.f32 %v2083_v50, %v2084_v54 }
0x1085   : > { %s2086_s0 = scalar_select %p6430_p0, 1, 0 }
0x1086   : > { %4334 = vmatmul.mubr.f32.vlgmr.msra.gmra.mxu1 %v2102_v55 }
0x1087   : > { %v2087_v57 = vstv %s2086_s0 }
0x1088   : > { %vm2088_vm6 = vcmp.eq.s32.totalorder %v2087_v57, 1 }
0x1089   : > { %v2089_v60 = vsel %vm2088_vm6, %v1998_v53, %v2079_v51 }
0x110b   : > { %v2092_v1 = vpop.xlane.xlu0 %2091 }
0x110c   : > { %v2093_v56 = vrot.slane %v2092_v1, 4 }
0x110e   : > { %v2094_v58 = vmax.f32 %v2092_v1, %v2093_v56 }
0x1110   : > { %v2095_v49 = vrot.slane %v2094_v58, 2 }
0x1112   : > { %v2096_v62 = vmax.f32 %v2094_v58, %v2095_v49 }
0x1114   : > { %v2097_v3 = vrot.slane %v2096_v62, 1 }
0x1116   : > { %v2098_v63 = vmax.f32 %v2096_v62, %v2097_v3 }
0x1118   : > { %4644 = vpush %v2098_v63 }
0x1146   : > { %v2169_v59 = vpop.f32.mrf.mxu1 }
0x1147   : > { %v2170_v48 = vadd.f32 %v5226_v19, %v2169_v59 }
0x1148   : > { %v4335_v50 = vpop.f32.mrf.mxu1 }
0x1149   : > { %v2173_v49 = vsub.f32 %v2102_v55, %v2170_v48   ;;  %v2174_v52 = vadd.f32 %v2170_v48, %v2085_v0  ;;  %s4645_s15 = spop %4644  ;;  %v2181_v61 = vsub.f32 0.0, %v2170_v48 }
0x114a   : > { %p2100_p1 = scmp.lt.f32.partialorder %s4645_s15, 0.001 }
0x114b   : > { %v2175_v53 = vmax.f32 %v2174_v52, 0.0   ;;  %2182 = vmax.xlane.f32.xlu1 %v2181_v61 }
0x114c   : > { %p6439_p2 = por %p2100_p1, %p6430_p0 }
0x114d   : > { %v2176_v0 = vsub.f32 %v2174_v52, %v2175_v53   ;;  %v7267_v52 = vmov %v2175_v53 }
0x114e   : > { %s2177_s6 = scalar_select %p6439_p2, 1, 0 }
0x1150   : > { %v2178_v51 = vstv %s2177_s6 }
0x1151   : > { %vm2179_vm7 = vcmp.eq.s32.totalorder %v2178_v51, 1 }
0x1152   : > { %v6445_v57 = vsel %vm2179_vm7, %v2089_v60, %v2170_v48  }
0x1153   : > { %v7263_v54 = vmov %v6445_v57 }
0x1154   : > { %v7266_v57 = vmov %v7263_v54 }
0x11d4   : > { %v2183_v55 = vpop.xlane.xlu1 %2182 }
0x11d5   : > { %v2184_v1 = vrot.slane %v2183_v55, 4 }
0x11d7   : > { %v2185_v56 = vmax.f32 %v2183_v55, %v2184_v1 }
0x11d9   : > { %v2186_v58 = vrot.slane %v2185_v56, 2 }
0x11db   : > { %v2187_v62 = vmax.f32 %v2185_v56, %v2186_v58 }
0x11dd   : > { %v2188_v3 = vrot.slane %v2187_v62, 1 }
0x11df   : > { %v2189_v63 = vmax.f32 %v2187_v62, %v2188_v3 }
0x11e1   : > { %4646 = vpush %v2189_v63 }
0x1212   : > { %s4647_s2 = spop %4646 }
0x1213   : > { %p2191_p3 = scmp.lt.f32.partialorder %s4647_s2, 0.001 }
0x1215   : > { %p2192_p2 = por %p2191_p3, %p6439_p2  }
0x1217   : > { %p1459_p4 = pneg %p2192_p2 }
0x1219   : > { %p1461_p6 = pnand %p1460_p5, %p1459_p4 }
0x121a   :  { %2205 = vmatprep.subr.mxu0 (%p1461_p6), %v5228_v20  ;;  %2276 = vmatprep.subr.mxu1 (%p1461_p6), %v5231_v21  ;;  %v7268_v20 = vld [vmem:[#allocation18_spill] sm:$0xff] (%p1461_p6)  ;;  %v7269_v21 = vld [vmem:[#allocation19_spill] sm:$0xff] (%p1461_p6)  ;;  %v7295_v0 = vld [vmem:[#allocation44_spill] sm:$0xff] (%p1461_p6)  ;;  %v7304_v51 = vmov (%p1461_p6), 0.0   ;;  %p6584_p7 = pmov (%p1461_p6), 0   ;;  %s6596_s4 = smov (%p1461_p6), 0  }
0x121b   :  { %1464 = sbr.rel (!%p1461_p6) target bundleno = 2790 (0xae6), region = 108  ;;  %2206 = vmatpush1.msra.mxu0 (%p1461_p6), %v5233_v22  ;;  %2277 = vmatpush1.msra.mxu1 (%p1461_p6), %v5235_v23  ;;  %v7270_v22 = vld [vmem:[#allocation20_spill] sm:$0xff] (%p1461_p6)  ;;  %v7271_v23 = vld [vmem:[#allocation21_spill] sm:$0xff] (%p1461_p6)  ;;  %v7297_v60 = vld [vmem:[#allocation46_spill] sm:$0xff] (%p1461_p6) }
0x121c   :  { %2207 = vmatprep.subr.mxu0 (%p1461_p6), %v5239_v24  ;;  %2278 = vmatprep.subr.mxu1 (%p1461_p6), %v5241_v25  ;;  %v7272_v24 = vld [vmem:[#allocation22_spill] sm:$0xff] (%p1461_p6)  ;;  %v7273_v25 = vld [vmem:[#allocation23_spill] sm:$0xff] (%p1461_p6)  ;;  %v7296_v57 = vld [vmem:[#allocation45_spill] sm:$0xff] (%p1461_p6) }
0x121d   :  { %2208 = vmatpush1.msra.mxu0 (%p1461_p6), %v5243_v26  ;;  %2279 = vmatpush1.msra.mxu1 (%p1461_p6), %v5247_v27  ;;  %v7274_v26 = vld [vmem:[#allocation24_spill] sm:$0xff] (%p1461_p6)  ;;  %v7275_v27 = vld [vmem:[#allocation25_spill] sm:$0xff] (%p1461_p6)  ;;  %v7298_v49 = vld [vmem:[#allocation47_spill] sm:$0xff] (%p1461_p6) }
0x121e   :  { %2209 = vmatprep.subr.mxu0 (%p1461_p6), %v5249_v28  ;;  %2280 = vmatprep.subr.mxu1 (%p1461_p6), %v5251_v29  ;;  %v7276_v28 = vld [vmem:[#allocation26_spill] sm:$0xff] (%p1461_p6)  ;;  %v7277_v29 = vld [vmem:[#allocation27_spill] sm:$0xff] (%p1461_p6)  ;;  %v7299_v59 = vld [vmem:[#allocation48_spill] sm:$0xff] (%p1461_p6) }
0x121f   :  { %2210 = vmatpush1.msra.mxu0 (%p1461_p6), %v5255_v30  ;;  %2281 = vmatpush1.msra.mxu1 (%p1461_p6), %v5257_v31  ;;  %v7278_v30 = vld [vmem:[#allocation28_spill] sm:$0xff] (%p1461_p6)  ;;  %v7279_v31 = vld [vmem:[#allocation29_spill] sm:$0xff] (%p1461_p6)  ;;  %v7301_v52 = vld [vmem:[#allocation50_spill] sm:$0xff] (%p1461_p6) }
0x1220   :  { %2211 = vmatprep.subr.mxu0 %v5259_v32  ;;  %2282 = vmatprep.subr.mxu1 %v5263_v33  ;;  %v7280_v32 = vld [vmem:[#allocation30_spill] sm:$0xff]  ;;  %v7281_v33 = vld [vmem:[#allocation31_spill] sm:$0xff]  ;;  %v7300_v48 = vld [vmem:[#allocation49_spill] sm:$0xff] }
0x1221   :  { %2212 = vmatpush1.msra.mxu0 %v5265_v34  ;;  %2283 = vmatpush1.msra.mxu1 %v5269_v35  ;;  %v7282_v34 = vld [vmem:[#allocation32_spill] sm:$0xff]  ;;  %v7283_v35 = vld [vmem:[#allocation33_spill] sm:$0xff]  ;;  %v7302_v61 = vld [vmem:[#allocation51_spill] sm:$0xff] }
0x1222   :  { %2213 = vmatprep.subr.mxu0 %v5271_v36  ;;  %2284 = vmatprep.subr.mxu1 %v5275_v37  ;;  %v7284_v36 = vld [vmem:[#allocation34_spill] sm:$0xff]  ;;  %v7285_v37 = vld [vmem:[#allocation35_spill] sm:$0xff]  ;;  %v7303_v53 = vld [vmem:[#allocation52_spill] sm:$0xff] }
0x1223   :  { %2214 = vmatpush1.msra.mxu0 %v5277_v38  ;;  %2285 = vmatpush1.msra.mxu1 %v5281_v39  ;;  %v7286_v38 = vld [vmem:[#allocation36_spill] sm:$0xff]  ;;  %v7287_v39 = vld [vmem:[#allocation37_spill] sm:$0xff]  ;;  %v7306_v1 = vld [vmem:[#allocation54_spill] sm:$0xff] }
0x1224   :  { %2215 = vmatprep.subr.mxu0 %v5283_v40  ;;  %2286 = vmatprep.subr.mxu1 %v5287_v41  ;;  %v7288_v40 = vld [vmem:[#allocation38_spill] sm:$0xff]  ;;  %v7289_v41 = vld [vmem:[#allocation39_spill] sm:$0xff]  ;;  %v7305_v55 = vld [vmem:[#allocation53_spill] sm:$0xff] }
0x1225   :  { %2216 = vmatpush1.msra.mxu0 %v5289_v42  ;;  %2287 = vmatpush1.msra.mxu1 %v5293_v43  ;;  %v7290_v42 = vld [vmem:[#allocation40_spill] sm:$0xff]  ;;  %v7291_v43 = vld [vmem:[#allocation41_spill] sm:$0xff]  ;;  %v7307_v56 = vld [vmem:[#allocation55_spill] sm:$0xff] }
0x1226   :  { %2217 = vmatprep.subr.mxu0 %v5295_v44  ;;  %2288 = vmatprep.subr.mxu1 %v5299_v45  ;;  %v7292_v44 = vld [vmem:[#allocation42_spill] sm:$0xff]  ;;  %v7293_v45 = vld [vmem:[#allocation43_spill] sm:$0xff]  ;;  %v7308_v58 = vld [vmem:[#allocation56_spill] sm:$0xff] }
0x1227   :  { %2218 = vmatpush1.msra.mxu0 %v5301_v46  ;;  %2289 = vmatpush1.msra.mxu1 %v5305_v47  ;;  %v6522_v47 = vsel %vm248_vm0, %v7263_v54, 0.0  ;;  %v7309_v62 = vld [vmem:[#allocation57_spill] sm:$0xff]  ;;  %v7310_v3 = vld [vmem:[#allocation58_spill] sm:$0xff]  ;;  %v7311_v63 = vld [vmem:[#allocation59_spill] sm:$0xff] }
0x1228   :  { %2219 = vmatprep.subr.mxu0 %v7268_v20  ;;  %2290 = vmatprep.subr.mxu1 %v7269_v21  ;;  %v2195_v50 = vsub.f32 %v6522_v47, %v5393_v2  ;;  %v7312_v20 = vld [vmem:[#allocation60_spill] sm:$0xff]  ;;  %v7313_v21 = vld [vmem:[#allocation61_spill] sm:$0xff]  ;;  %vm2196_vm8 = vcmp.ge.f32.partialorder %v5393_v2, %v6522_v47  ;;  %vm2200_vm9 = vcmp.ge.f32.partialorder %v6522_v47, %v5393_v2 }
0x1229   :  { %2220 = vmatpush1.msra.mxu0 %v7270_v22  ;;  %2291 = vmatpush1.msra.mxu1 %v7271_v23  ;;  %v7314_v22 = vld [vmem:[#allocation62_spill] sm:$0xff]  ;;  %v7315_v23 = vld [vmem:[#allocation63_spill] sm:$0xff] }
0x122a   :  { %2221 = vmatprep.subr.mxu0 %v7272_v24  ;;  %2292 = vmatprep.subr.mxu1 %v7273_v25  ;;  %v7317_v24 = vld [vmem:[#allocation65_spill] sm:$0xff]  ;;  %v7318_v25 = vld [vmem:[#allocation66_spill] sm:$0xff] }
0x122b   :  { %2222 = vmatpush1.msra.mxu0 %v7274_v26  ;;  %2293 = vmatpush1.msra.mxu1 %v7275_v27  ;;  %v7319_v26 = vld [vmem:[#allocation67_spill] sm:$0xff]  ;;  %v7320_v27 = vld [vmem:[#allocation68_spill] sm:$0xff] }
0x122c   :  { %2223 = vmatprep.subr.mxu0 %v7276_v28  ;;  %2294 = vmatprep.subr.mxu1 %v7277_v29  ;;  %v7321_v28 = vld [vmem:[#allocation69_spill] sm:$0xff]  ;;  %v7322_v29 = vld [vmem:[#allocation70_spill] sm:$0xff] }
0x122d   :  { %2224 = vmatpush1.msra.mxu0 %v7278_v30  ;;  %2295 = vmatpush1.msra.mxu1 %v7279_v31  ;;  %v7323_v30 = vld [vmem:[#allocation71_spill] sm:$0xff]  ;;  %v7324_v31 = vld [vmem:[#allocation72_spill] sm:$0xff] }
0x122e   :  { %2225 = vmatprep.subr.mxu0 %v7280_v32  ;;  %2296 = vmatprep.subr.mxu1 %v7281_v33  ;;  %v7325_v32 = vld [vmem:[#allocation73_spill] sm:$0xff]  ;;  %v7326_v33 = vld [vmem:[#allocation74_spill] sm:$0xff] }
0x122f   :  { %2226 = vmatpush1.msra.mxu0 %v7282_v34  ;;  %2297 = vmatpush1.msra.mxu1 %v7283_v35  ;;  %v7327_v34 = vld [vmem:[#allocation75_spill] sm:$0xff]  ;;  %v7328_v35 = vld [vmem:[#allocation76_spill] sm:$0xff] }
0x1230   :  { %2227 = vmatprep.subr.mxu0 %v7284_v36  ;;  %2298 = vmatprep.subr.mxu1 %v7285_v37  ;;  %v7329_v36 = vld [vmem:[#allocation77_spill] sm:$0xff]  ;;  %v7330_v37 = vld [vmem:[#allocation78_spill] sm:$0xff] }
0x1231   :  { %2228 = vmatpush1.msra.mxu0 %v7286_v38  ;;  %2299 = vmatpush1.msra.mxu1 %v7287_v39  ;;  %v7331_v38 = vld [vmem:[#allocation79_spill] sm:$0xff]  ;;  %v7332_v39 = vld [vmem:[#allocation80_spill] sm:$0xff] }
0x1232   :  { %2229 = vmatprep.subr.mxu0 %v7288_v40  ;;  %2300 = vmatprep.subr.mxu1 %v7289_v41  ;;  %v7333_v40 = vld [vmem:[#allocation81_spill] sm:$0xff]  ;;  %v7334_v41 = vld [vmem:[#allocation82_spill] sm:$0xff] }
0x1233   :  { %2230 = vmatpush1.msra.mxu0 %v7290_v42  ;;  %2301 = vmatpush1.msra.mxu1 %v7291_v43  ;;  %v7335_v42 = vld [vmem:[#allocation83_spill] sm:$0xff]  ;;  %v7336_v43 = vld [vmem:[#allocation84_spill] sm:$0xff] }
0x1234   :  { %2231 = vmatprep.subr.mxu0 %v7292_v44  ;;  %2302 = vmatprep.subr.mxu1 %v7293_v45  ;;  %v7337_v44 = vld [vmem:[#allocation85_spill] sm:$0xff] }
0x1235   :  { %2232 = vmatpush1.msra.mxu0 %v7295_v0  ;;  %2303 = vmatpush1.msra.mxu1 %v7296_v57  ;;  %v7338_v0 = vld [vmem:[#allocation86_spill] sm:$0xff] }
0x1236   :  { %2233 = vmatprep.subr.mxu0 %v7297_v60  ;;  %2304 = vmatprep.subr.mxu1 %v7298_v49  ;;  %v7339_v49 = vld [vmem:[#allocation87_spill] sm:$0xff] }
0x1237   :  { %2234 = vmatpush1.msra.mxu0 %v7299_v59  ;;  %2305 = vmatpush1.msra.mxu1 %v7300_v48 }
0x1238   :  { %2235 = vmatprep.subr.mxu0 %v7301_v52  ;;  %2306 = vmatprep.subr.mxu1 %v7302_v61 }
0x1239   :  { %2236 = vmatpush1.msra.mxu0 %v7303_v53  ;;  %2269 = vmatprep.mubr.f32.mxu0 %v7304_v51  ;;  %v3260_v53 = vsel %vm2196_vm8, 1.0, %v7304_v51 }
0x123a   :  { %2307 = vmatpush1.msra.mxu1 %v7305_v55  ;;  %2340 = vmatprep.mubr.f32.mxu1 %v7304_v51  ;;  %v3261_v55 = vsel %vm2200_vm9, 1.0, %v7304_v51  ;;  %v6590_v51 = vmov 0.0  }
0x123b   :  { %2270 = vmatmul.mubr.f32.vlgmr.msra.gmra.mxu0 %v2195_v50  ;;  %3262 = vmatmul.mubr.msk.f32.vlgmr.msra.gmra.mxu1 %vm248_vm0, %v7263_v54  ;;  %v7316_v54 = vld [vmem:[#allocation64_spill] sm:$0xff] }
0x123c   :  { %3605 = vmatprep.subr.mxu0 %v7306_v1  ;;  %v7340_v1 = vld [vmem:[#allocation88_spill] sm:$0xff] }
0x123d   :  { %3606 = vmatpush3.msra.mxu0 %v7307_v56  ;;  %v2199_v56 = vmul.f32 %v3260_v53, %v7340_v1 }
0x123e   :  { %3607 = vmatprep.subr.mxu0 %v7308_v58  ;;  %v7341_v58 = vld [vmem:[#allocation89_spill] sm:$0xff] }
0x123f   :  { %3608 = vmatpush3.msra.mxu0 %v7309_v62  ;;  %v2203_v62 = vmul.f32 %v3261_v55, %v7341_v58 }
0x1240   :  { %3609 = vmatprep.subr.mxu0 %v7310_v3 }
0x1241   :  { %3610 = vmatpush3.msra.mxu0 %v7311_v63  ;;  %v2204_v3 = vadd.f32 %v2203_v62, %v2199_v56 }
0x1242   :  { %3611 = vmatprep.subr.mxu0 %v7312_v20 }
0x1243   :  { %3612 = vmatpush3.msra.mxu0 %v7313_v21 }
0x1244   :  { %3613 = vmatprep.subr.mxu0 %v7314_v22  ;;  %v2420_v22 = vmul.f32 0.1, %v2204_v3 }
0x1245   :  { %3614 = vmatpush3.msra.mxu0 %v7315_v23  ;;  %v2422_v23 = vmul.f32 0.1, %v2195_v50 }
0x1246   :  { %3615 = vmatprep.subr.mxu0 %v7316_v54 }
0x1247   :  { %3616 = vmatpush3.msra.mxu0 %v7317_v24 }
0x1248   :  { %3617 = vmatprep.subr.mxu0 %v7318_v25 }
0x1249   :  { %3618 = vmatpush3.msra.mxu0 %v7319_v26 }
0x124a   :  { %3619 = vmatprep.subr.mxu0 %v7320_v27  ;;  %v6592_v27 = vmov 0.0  }
0x124b   :  { %3620 = vmatpush3.msra.mxu0 %v7321_v28 }
0x124c   :  { %3621 = vmatprep.subr.mxu0 %v7322_v29 }
0x124d   :  { %3622 = vmatpush3.msra.mxu0 %v7323_v30 }
0x124e   :  { %3623 = vmatprep.subr.mxu0 %v7324_v31 }
0x124f   :  { %3624 = vmatpush3.msra.mxu0 %v7325_v32 }
0x1250   :  { %3625 = vmatprep.subr.mxu0 %v7326_v33 }
0x1251   :  { %3626 = vmatpush3.msra.mxu0 %v7327_v34 }
0x1252   :  { %3627 = vmatprep.subr.mxu0 %v7328_v35 }
0x1253   :  { %3628 = vmatpush3.msra.mxu0 %v7329_v36 }
0x1254   :  { %3629 = vmatprep.subr.mxu0 %v7330_v37 }
0x1255   :  { %3630 = vmatpush3.msra.mxu0 %v7331_v38 }
0x1256   :  { %3631 = vmatprep.subr.mxu0 %v7332_v39 }
0x1257   :  { %3632 = vmatpush3.msra.mxu0 %v7333_v40 }
0x1258   :  { %3633 = vmatprep.subr.mxu0 %v7334_v41 }
0x1259   :  { %3634 = vmatpush3.msra.mxu0 %v7335_v42 }
0x125a   :  { %3635 = vmatprep.subr.mxu0 %v7336_v43 }
0x125b   :  { %3636 = vmatpush3.msra.mxu0 %v7337_v44 }
0x12fb   :  { %v2271_v45 = vpop.f32.mrf.mxu0  ;;  %v2342_v46 = vpop.f32.mrf.mxu1 }
0x12fc   :  { %v2272_v57 = vadd.f32 %v2271_v45, %v7338_v0 }
0x12fd   :  { %v2273_v60 = vpop.f32.mrf.mxu0  ;;  %v2344_v48 = vpop.f32.mrf.mxu1 }
0x12fe   :  { %v2274_v59 = vadd.f32 %v2273_v60, %v7339_v49  ;;  %v2347_v61 = vmul.f32 %v2342_v46, %v2272_v57 }
0x1300   :  { %v2348_v52 = vmul.f32 %v2344_v48, %v2274_v59 }
0x1302   :  { %2413 = vmatprep.mubr.f32.mxu0 %v2348_v52 }
0x1303   :  { %2414 = vmatmul.mubr.f32.vlgmr.msra.gmra.mxu0 %v2347_v61 }
0x13c3   :  { %v3637_v63 = vpop.f32.mrf.mxu0 }
0x13c5   :  { %v3638_v20 = vpop.f32.mrf.mxu0 }
0x13c6   :  { %v3639_v21 = vadd.f32 %v3638_v20, %v3637_v63 }
0x13c8   :  { %v2419_v54 = vmul.f32 0.1, %v3639_v21 }
0x13ca   :  { %v2421_v24 = vadd.f32 %v2420_v22, %v2419_v54 }
0x13cc   :  { %v2423_v25 = vadd.f32 %v2422_v23, %v2421_v24 }
0x13ce   :  { %v2424_v26 = vsub.f32 %v6522_v47, %v2423_v25  }
0x13d0   :  { %v7344_v2 = vmov %v2424_v26 }
0x13d1 LB: > { %v5111_v47 = vmov 0.0   ;;  %vm5112_vm10 = vmmov 0   ;;  %v2438_v50 = vadd.f32 %v5087_v27, %v5091_v26  ;;  %v7346_v28 = vld [vmem:[#allocation17_spill] sm:$0xff]  ;;  %s2513_s7 = scalar_select %p5075_p7, 1, 0  ;;  %s5095_s4 = sphi %s6596_s4, %s3166_s4   ;;  %v5091_v26 = vphi %v2424_v26, %v3148_v26   ;;  %v5087_v27 = vphi %v6592_v27, %v3146_v27   ;;  %v5083_v51 = vphi %v6590_v51, %v3149_v51   ;;  %v5079_v2 = vphi %v7344_v2, %v7356_v2   ;;  %p5075_p7 = pphi %p6584_p7, %p3165_p7  }
0x13d2   : > { %4336 = vmatprep.subr.mxu0 %v5111_v47  ;;  %4368 = vmatprep.mubr.msk.f32.mxu0 %vm5112_vm10, %v5111_v47  ;;  %s3166_s4 = sadd.s32 8, %s5095_s4  }
0x13d3   : > { %4337 = vmatpush3.msra.mxu0 %v5221_v18  ;;  %4371 = vmatprep.subr.mxu1 %v5111_v47  ;;  %v2514_v59 = vstv %s2513_s7 }
0x13d4   : > { %4338 = vmatprep.subr.mxu0 %v5111_v47  ;;  %4372 = vmatpush3.msra.mxu1 %v5221_v18  ;;  %vm2515_vm11 = vcmp.eq.s32.totalorder %v2514_v59, 1 }
0x13d5   : > { %4339 = vmatpush3.msra.mxu0 %v5219_v17  ;;  %4373 = vmatprep.subr.mxu1 %v5111_v47 }
0x13d6   : > { %4340 = vmatprep.subr.mxu0 %v5111_v47  ;;  %4374 = vmatpush3.msra.mxu1 %v5219_v17 }
0x13d7   : > { %4341 = vmatpush3.msra.mxu0 %v5217_v16  ;;  %4375 = vmatprep.subr.mxu1 %v5111_v47 }
0x13d8   : > { %4342 = vmatprep.subr.mxu0 %v5111_v47  ;;  %4376 = vmatpush3.msra.mxu1 %v5217_v16 }
0x13d9   : > { %4343 = vmatpush3.msra.mxu0 %v5215_v15  ;;  %4377 = vmatprep.subr.mxu1 %v5111_v47 }
0x13da   : > { %4344 = vmatprep.subr.mxu0 %v5111_v47  ;;  %4378 = vmatpush3.msra.mxu1 %v5215_v15 }
0x13db   : > { %4345 = vmatpush3.msra.mxu0 %v5213_v14  ;;  %4379 = vmatprep.subr.mxu1 %v5111_v47 }
0x13dc   : > { %4346 = vmatprep.subr.mxu0 %v5111_v47  ;;  %4380 = vmatpush3.msra.mxu1 %v5213_v14 }
0x13dd   : > { %4347 = vmatpush3.msra.mxu0 %v5211_v13  ;;  %4381 = vmatprep.subr.mxu1 %v5111_v47 }
0x13de   : > { %4348 = vmatprep.subr.mxu0 %v5111_v47  ;;  %4382 = vmatpush3.msra.mxu1 %v5211_v13 }
0x13df   : > { %4349 = vmatpush3.msra.mxu0 %v5209_v12  ;;  %4383 = vmatprep.subr.mxu1 %v5111_v47 }
0x13e0   : > { %4350 = vmatprep.subr.mxu0 %v5111_v47  ;;  %4384 = vmatpush3.msra.mxu1 %v5209_v12 }
0x13e1   : > { %4351 = vmatpush3.msra.mxu0 %v5207_v11  ;;  %4385 = vmatprep.subr.mxu1 %v5111_v47 }
0x13e2   : > { %4352 = vmatprep.subr.mxu0 %v5111_v47  ;;  %4386 = vmatpush3.msra.mxu1 %v5207_v11 }
0x13e3   : > { %4353 = vmatpush3.msra.mxu0 %v5205_v10  ;;  %4387 = vmatprep.subr.mxu1 %v5111_v47 }
0x13e4   : > { %4354 = vmatprep.subr.mxu0 %v5111_v47  ;;  %4388 = vmatpush3.msra.mxu1 %v5205_v10 }
0x13e5   : > { %4355 = vmatpush3.msra.mxu0 %v5203_v9  ;;  %4389 = vmatprep.subr.mxu1 %v5111_v47 }
0x13e6   : > { %4356 = vmatprep.subr.mxu0 %v5111_v47  ;;  %4390 = vmatpush3.msra.mxu1 %v5203_v9 }
0x13e7   : > { %4357 = vmatpush3.msra.mxu0 %v5201_v8  ;;  %4391 = vmatprep.subr.mxu1 %v5111_v47 }
0x13e8   : > { %4358 = vmatprep.subr.mxu0 %v5111_v47  ;;  %4392 = vmatpush3.msra.mxu1 %v5201_v8 }
0x13e9   : > { %4359 = vmatpush3.msra.mxu0 %v5199_v7  ;;  %4393 = vmatprep.subr.mxu1 %v5111_v47 }
0x13ea   : > { %4360 = vmatprep.subr.mxu0 %v5111_v47  ;;  %4394 = vmatpush3.msra.mxu1 %v5199_v7 }
0x13eb   : > { %4361 = vmatpush3.msra.mxu0 %v5197_v6  ;;  %4395 = vmatprep.subr.mxu1 %v5111_v47 }
0x13ec   : > { %4362 = vmatprep.subr.mxu0 %v5111_v47  ;;  %4396 = vmatpush3.msra.mxu1 %v5197_v6 }
0x13ed   : > { %4363 = vmatpush3.msra.mxu0 %v5195_v5  ;;  %4397 = vmatprep.subr.mxu1 %v5111_v47 }
0x13ee   : > { %4364 = vmatprep.subr.mxu0 %v5111_v47  ;;  %4398 = vmatpush3.msra.mxu1 %v5195_v5 }
0x13ef   : > { %4365 = vmatpush3.msra.mxu0 %v5193_v4  ;;  %4399 = vmatprep.subr.mxu1 %v5111_v47 }
0x13f0   : > { %4366 = vmatprep.subr.mxu0 %v5111_v47  ;;  %4400 = vmatpush3.msra.mxu1 %v5193_v4 }
0x13f1   : > { %4367 = vmatpush3.msra.mxu0 %v7346_v28  ;;  %4401 = vmatprep.subr.mxu1 %v5111_v47 }
0x13f2   : > { %4369 = vmatmul.mubr.f32.vlgmr.msra.gmra.mxu0 %v2438_v50  ;;  %4402 = vmatpush3.msra.mxu1 %v7346_v28 }
0x13f3   : > { %4403 = vmatprep.mubr.msk.f32.mxu1 %vm5112_vm10, %v5111_v47  ;;  %4406 = vmatprep.subr.mxu0 %v5111_v47 }
0x13f4   : > { %4407 = vmatpush3.msra.mxu0 %v5221_v18  ;;  %4438 = vmatprep.mubr.msk.f32.mxu0 %vm5112_vm10, %v5111_v47 }
0x13f5   : > { %4408 = vmatprep.subr.mxu0 %v5111_v47  ;;  %4441 = vmatprep.subr.mxu1 %v5111_v47 }
0x13f6   : > { %4409 = vmatpush3.msra.mxu0 %v5219_v17 }
0x13f7   : > { %4410 = vmatprep.subr.mxu0 %v5111_v47 }
0x13f8   : > { %4411 = vmatpush3.msra.mxu0 %v5217_v16 }
0x13f9   : > { %4412 = vmatprep.subr.mxu0 %v5111_v47 }
0x13fa   : > { %4413 = vmatpush3.msra.mxu0 %v5215_v15 }
0x13fb   : > { %4414 = vmatprep.subr.mxu0 %v5111_v47 }
0x13fc   : > { %4415 = vmatpush3.msra.mxu0 %v5213_v14 }
0x13fd   : > { %4416 = vmatprep.subr.mxu0 %v5111_v47 }
0x13fe   : > { %4417 = vmatpush3.msra.mxu0 %v5211_v13 }
0x13ff   : > { %4418 = vmatprep.subr.mxu0 %v5111_v47 }
0x1400   : > { %4419 = vmatpush3.msra.mxu0 %v5209_v12 }
0x1401   : > { %4420 = vmatprep.subr.mxu0 %v5111_v47 }
0x1402   : > { %4421 = vmatpush3.msra.mxu0 %v5207_v11 }
0x1403   : > { %4422 = vmatprep.subr.mxu0 %v5111_v47 }
0x1404   : > { %4423 = vmatpush3.msra.mxu0 %v5205_v10 }
0x1405   : > { %4424 = vmatprep.subr.mxu0 %v5111_v47 }
0x1406   : > { %4425 = vmatpush3.msra.mxu0 %v5203_v9 }
0x1407   : > { %4426 = vmatprep.subr.mxu0 %v5111_v47 }
0x1408   : > { %4427 = vmatpush3.msra.mxu0 %v5201_v8 }
0x1409   : > { %4428 = vmatprep.subr.mxu0 %v5111_v47 }
0x140a   : > { %4429 = vmatpush3.msra.mxu0 %v5199_v7 }
0x140b   : > { %4430 = vmatprep.subr.mxu0 %v5111_v47 }
0x140c   : > { %4431 = vmatpush3.msra.mxu0 %v5197_v6 }
0x140d   : > { %4432 = vmatprep.subr.mxu0 %v5111_v47 }
0x140e   : > { %4433 = vmatpush3.msra.mxu0 %v5195_v5 }
0x140f   : > { %4434 = vmatprep.subr.mxu0 %v5111_v47 }
0x1410   : > { %4435 = vmatpush3.msra.mxu0 %v5193_v4 }
0x1411   : > { %4436 = vmatprep.subr.mxu0 %v5111_v47 }
0x1412   : > { %4437 = vmatpush3.msra.mxu0 %v7346_v28 }
0x1413   : > { %4476 = vmatprep.subr.mxu0 %v5111_v47 }
0x14b2   : > { %v2505_v29 = vpop.f32.mrf.mxu0 }
0x14b3   : > { %v6721_v30 = vadd.f32 %v5226_v19, %v2505_v29 }
0x14b4   : > { %v4370_v31 = vpop.f32.mrf.mxu0 }
0x14b5   : > { %v2517_v32 = vsub.f32 0.0, %v6721_v30  ;;  %v2510_v33 = vadd.f32 %v5083_v51, %v6721_v30  ;;  %v2509_v34 = vsub.f32 %v2438_v50, %v6721_v30  ;;  %v2516_v55 = vsel %vm2515_vm11, %v5079_v2, %v6721_v30 }
0x14b7   : > { %2518 = vmax.xlane.f32.xlu0 %v2517_v32  ;;  %v2511_v35 = vmax.f32 %v2510_v33, 0.0 }
0x14b9   : > { %v2512_v36 = vsub.f32 %v2510_v33, %v2511_v35  ;;  %v2529_v37 = vadd.f32 %v2511_v35, %v2509_v34 }
0x14bb   : > { %4404 = vmatmul.mubr.f32.vlgmr.msra.gmra.mxu1 %v2529_v37 }
0x14bc   : > { %4442 = vmatpush3.msra.mxu1 %v5221_v18  ;;  %4473 = vmatprep.mubr.msk.f32.mxu1 %vm5112_vm10, %v5111_v47 }
0x14bd   : > { %4443 = vmatprep.subr.mxu1 %v5111_v47 }
0x14be   : > { %4444 = vmatpush3.msra.mxu1 %v5219_v17 }
0x14bf   : > { %4445 = vmatprep.subr.mxu1 %v5111_v47 }
0x14c0   : > { %4446 = vmatpush3.msra.mxu1 %v5217_v16 }
0x14c1   : > { %4447 = vmatprep.subr.mxu1 %v5111_v47 }
0x14c2   : > { %4448 = vmatpush3.msra.mxu1 %v5215_v15 }
0x14c3   : > { %4449 = vmatprep.subr.mxu1 %v5111_v47 }
0x14c4   : > { %4450 = vmatpush3.msra.mxu1 %v5213_v14 }
0x14c5   : > { %4451 = vmatprep.subr.mxu1 %v5111_v47 }
0x14c6   : > { %4452 = vmatpush3.msra.mxu1 %v5211_v13 }
0x14c7   : > { %4453 = vmatprep.subr.mxu1 %v5111_v47 }
0x14c8   : > { %4454 = vmatpush3.msra.mxu1 %v5209_v12 }
0x14c9   : > { %4455 = vmatprep.subr.mxu1 %v5111_v47 }
0x14ca   : > { %4456 = vmatpush3.msra.mxu1 %v5207_v11 }
0x14cb   : > { %4457 = vmatprep.subr.mxu1 %v5111_v47 }
0x14cc   : > { %4458 = vmatpush3.msra.mxu1 %v5205_v10 }
0x14cd   : > { %4459 = vmatprep.subr.mxu1 %v5111_v47 }
0x14ce   : > { %4460 = vmatpush3.msra.mxu1 %v5203_v9 }
0x14cf   : > { %4461 = vmatprep.subr.mxu1 %v5111_v47 }
0x14d0   : > { %4462 = vmatpush3.msra.mxu1 %v5201_v8 }
0x14d1   : > { %4463 = vmatprep.subr.mxu1 %v5111_v47 }
0x14d2   : > { %4464 = vmatpush3.msra.mxu1 %v5199_v7 }
0x14d3   : > { %4465 = vmatprep.subr.mxu1 %v5111_v47 }
0x14d4   : > { %4466 = vmatpush3.msra.mxu1 %v5197_v6 }
0x14d5   : > { %4467 = vmatprep.subr.mxu1 %v5111_v47 }
0x14d6   : > { %4468 = vmatpush3.msra.mxu1 %v5195_v5 }
0x14d7   : > { %4469 = vmatprep.subr.mxu1 %v5111_v47 }
0x14d8   : > { %4470 = vmatpush3.msra.mxu1 %v5193_v4 }
0x14d9   : > { %4471 = vmatprep.subr.mxu1 %v5111_v47 }
0x14da   : > { %4472 = vmatpush3.msra.mxu1 %v7346_v28 }
0x14db   : > { %4511 = vmatprep.subr.mxu1 %v5111_v47 }
0x1540   : > { %v2519_v38 = vpop.xlane.xlu0 %2518 }
0x1541   : > { %v2520_v39 = vrot.slane %v2519_v38, 4 }
0x1543   : > { %v2521_v40 = vmax.f32 %v2519_v38, %v2520_v39 }
0x1545   : > { %v2522_v41 = vrot.slane %v2521_v40, 2 }
0x1547   : > { %v2523_v42 = vmax.f32 %v2521_v40, %v2522_v41 }
0x1549   : > { %v2524_v43 = vrot.slane %v2523_v42, 1 }
0x154b   : > { %v2525_v44 = vmax.f32 %v2523_v42, %v2524_v43 }
0x154d   : > { %4648 = vpush %v2525_v44 }
0x157b   : > { %v2596_v45 = vpop.f32.mrf.mxu1 }
0x157c   : > { %v2597_v46 = vadd.f32 %v5226_v19, %v2596_v45 }
0x157d   : > { %v4405_v0 = vpop.f32.mrf.mxu1 }
0x157e   : > { %v2601_v57 = vadd.f32 %v2597_v46, %v2512_v36  ;;  %s4649_s8 = spop %4648  ;;  %v2608_v60 = vsub.f32 0.0, %v2597_v46  ;;  %v2600_v49 = vsub.f32 %v2529_v37, %v2597_v46 }
0x157f   : > { %p2527_p8 = scmp.lt.f32.partialorder %s4649_s8, 0.001 }
0x1580   : > { %2609 = vmax.xlane.f32.xlu0 %v2608_v60  ;;  %v2602_v48 = vmax.f32 %v2601_v57, 0.0 }
0x1581   : > { %p6766_p9 = por %p5075_p7, %p2527_p8 }
0x1582   : > { %v2620_v52 = vadd.f32 %v2602_v48, %v2600_v49  ;;  %v2603_v61 = vsub.f32 %v2601_v57, %v2602_v48 }
0x1583   : > { %s2604_s19 = scalar_select %p6766_p9, 1, 0 }
0x1584   : > { %4439 = vmatmul.mubr.f32.vlgmr.msra.gmra.mxu0 %v2620_v52 }
0x1585   : > { %v2605_v53 = vstv %s2604_s19  ;;  %4477 = vmatpush3.msra.mxu0 %v5221_v18  ;;  %4508 = vmatprep.mubr.msk.f32.mxu0 %vm5112_vm10, %v5111_v47 }
0x1586   : > { %vm2606_vm12 = vcmp.eq.s32.totalorder %v2605_v53, 1  ;;  %4478 = vmatprep.subr.mxu0 %v5111_v47 }
0x1587   : > { %v2607_v1 = vsel %vm2606_vm12, %v2516_v55, %v2597_v46  ;;  %4479 = vmatpush3.msra.mxu0 %v5219_v17 }
0x1588   : > { %4480 = vmatprep.subr.mxu0 %v5111_v47 }
0x1589   : > { %4481 = vmatpush3.msra.mxu0 %v5217_v16 }
0x158a   : > { %4482 = vmatprep.subr.mxu0 %v5111_v47 }
0x158b   : > { %4483 = vmatpush3.msra.mxu0 %v5215_v15 }
0x158c   : > { %4484 = vmatprep.subr.mxu0 %v5111_v47 }
0x158d   : > { %4485 = vmatpush3.msra.mxu0 %v5213_v14 }
0x158e   : > { %4486 = vmatprep.subr.mxu0 %v5111_v47 }
0x158f   : > { %4487 = vmatpush3.msra.mxu0 %v5211_v13 }
0x1590   : > { %4488 = vmatprep.subr.mxu0 %v5111_v47 }
0x1591   : > { %4489 = vmatpush3.msra.mxu0 %v5209_v12 }
0x1592   : > { %4490 = vmatprep.subr.mxu0 %v5111_v47 }
0x1593   : > { %4491 = vmatpush3.msra.mxu0 %v5207_v11 }
0x1594   : > { %4492 = vmatprep.subr.mxu0 %v5111_v47 }
0x1595   : > { %4493 = vmatpush3.msra.mxu0 %v5205_v10 }
0x1596   : > { %4494 = vmatprep.subr.mxu0 %v5111_v47 }
0x1597   : > { %4495 = vmatpush3.msra.mxu0 %v5203_v9 }
0x1598   : > { %4496 = vmatprep.subr.mxu0 %v5111_v47 }
0x1599   : > { %4497 = vmatpush3.msra.mxu0 %v5201_v8 }
0x159a   : > { %4498 = vmatprep.subr.mxu0 %v5111_v47 }
0x159b   : > { %4499 = vmatpush3.msra.mxu0 %v5199_v7 }
0x159c   : > { %4500 = vmatprep.subr.mxu0 %v5111_v47 }
0x159d   : > { %4501 = vmatpush3.msra.mxu0 %v5197_v6 }
0x159e   : > { %4502 = vmatprep.subr.mxu0 %v5111_v47 }
0x159f   : > { %4503 = vmatpush3.msra.mxu0 %v5195_v5 }
0x15a0   : > { %4504 = vmatprep.subr.mxu0 %v5111_v47 }
0x15a1   : > { %4505 = vmatpush3.msra.mxu0 %v5193_v4 }
0x15a2   : > { %4506 = vmatprep.subr.mxu0 %v5111_v47 }
0x15a3   : > { %4507 = vmatpush3.msra.mxu0 %v7346_v28 }
0x15a4   : > { %4546 = vmatprep.subr.mxu0 %v5111_v47 }
0x1609   : > { %v2610_v56 = vpop.xlane.xlu0 %2609 }
0x160a   : > { %v2611_v58 = vrot.slane %v2610_v56, 4 }
0x160c   : > { %v2612_v62 = vmax.f32 %v2610_v56, %v2611_v58 }
0x160e   : > { %v2613_v3 = vrot.slane %v2612_v62, 2 }
0x1610   : > { %v2614_v63 = vmax.f32 %v2612_v62, %v2613_v3 }
0x1612   : > { %v2615_v20 = vrot.slane %v2614_v63, 1 }
0x1614   : > { %v2616_v21 = vmax.f32 %v2614_v63, %v2615_v20 }
0x1616   : > { %4650 = vpush %v2616_v21 }
0x1644   : > { %v2687_v22 = vpop.f32.mrf.mxu0 }
0x1645   : > { %v2688_v23 = vadd.f32 %v5226_v19, %v2687_v22 }
0x1646   : > { %v4440_v54 = vpop.f32.mrf.mxu0 }
0x1647   : > { %v2692_v24 = vadd.f32 %v2688_v23, %v2603_v61  ;;  %s4651_s20 = spop %4650  ;;  %v2699_v25 = vsub.f32 0.0, %v2688_v23  ;;  %v2691_v26 = vsub.f32 %v2620_v52, %v2688_v23 }
0x1648   : > { %p2618_p10 = scmp.lt.f32.partialorder %s4651_s20, 0.001 }
0x1649   : > { %2700 = vmax.xlane.f32.xlu1 %v2699_v25  ;;  %v2693_v2 = vmax.f32 %v2692_v24, 0.0 }
0x164a   : > { %p6811_p11 = por %p2618_p10, %p6766_p9  ;;  %p2433_p10 = scmp.lt.s32.totalorder %s3166_s4, 300 }
0x164b   : > { %v2711_v51 = vadd.f32 %v2693_v2, %v2691_v26  ;;  %v2694_v27 = vsub.f32 %v2692_v24, %v2693_v2 }
0x164c   : > { %s2695_s22 = scalar_select %p6811_p11, 1, 0 }
0x164d   : > { %4474 = vmatmul.mubr.f32.vlgmr.msra.gmra.mxu1 %v2711_v51 }
0x164e   : > { %v2696_v50 = vstv %s2695_s22  ;;  %4512 = vmatpush3.msra.mxu1 %v5221_v18  ;;  %4543 = vmatprep.mubr.msk.f32.mxu1 %vm5112_vm10, %v5111_v47 }
0x164f   : > { %vm2697_vm13 = vcmp.eq.s32.totalorder %v2696_v50, 1  ;;  %4513 = vmatprep.subr.mxu1 %v5111_v47 }
0x1650   : > { %v2698_v29 = vsel %vm2697_vm13, %v2607_v1, %v2688_v23  ;;  %4514 = vmatpush3.msra.mxu1 %v5219_v17 }
0x1651   : > { %4515 = vmatprep.subr.mxu1 %v5111_v47 }
0x1652   : > { %4516 = vmatpush3.msra.mxu1 %v5217_v16 }
0x1653   : > { %4517 = vmatprep.subr.mxu1 %v5111_v47 }
0x1654   : > { %4518 = vmatpush3.msra.mxu1 %v5215_v15 }
0x1655   : > { %4519 = vmatprep.subr.mxu1 %v5111_v47 }
0x1656   : > { %4520 = vmatpush3.msra.mxu1 %v5213_v14 }
0x1657   : > { %4521 = vmatprep.subr.mxu1 %v5111_v47 }
0x1658   : > { %4522 = vmatpush3.msra.mxu1 %v5211_v13 }
0x1659   : > { %4523 = vmatprep.subr.mxu1 %v5111_v47 }
0x165a   : > { %4524 = vmatpush3.msra.mxu1 %v5209_v12 }
0x165b   : > { %4525 = vmatprep.subr.mxu1 %v5111_v47 }
0x165c   : > { %4526 = vmatpush3.msra.mxu1 %v5207_v11 }
0x165d   : > { %4527 = vmatprep.subr.mxu1 %v5111_v47 }
0x165e   : > { %4528 = vmatpush3.msra.mxu1 %v5205_v10 }
0x165f   : > { %4529 = vmatprep.subr.mxu1 %v5111_v47 }
0x1660   : > { %4530 = vmatpush3.msra.mxu1 %v5203_v9 }
0x1661   : > { %4531 = vmatprep.subr.mxu1 %v5111_v47 }
0x1662   : > { %4532 = vmatpush3.msra.mxu1 %v5201_v8 }
0x1663   : > { %4533 = vmatprep.subr.mxu1 %v5111_v47 }
0x1664   : > { %4534 = vmatpush3.msra.mxu1 %v5199_v7 }
0x1665   : > { %4535 = vmatprep.subr.mxu1 %v5111_v47 }
0x1666   : > { %4536 = vmatpush3.msra.mxu1 %v5197_v6 }
0x1667   : > { %4537 = vmatprep.subr.mxu1 %v5111_v47 }
0x1668   : > { %4538 = vmatpush3.msra.mxu1 %v5195_v5 }
0x1669   : > { %4539 = vmatprep.subr.mxu1 %v5111_v47 }
0x166a   : > { %4540 = vmatpush3.msra.mxu1 %v5193_v4 }
0x166b   : > { %4541 = vmatprep.subr.mxu1 %v5111_v47 }
0x166c   : > { %4542 = vmatpush3.msra.mxu1 %v7346_v28 }
0x166d   : > { %4581 = vmatprep.subr.mxu1 %v5111_v47 }
0x16d2   : > { %v2701_v30 = vpop.xlane.xlu1 %2700 }
0x16d3   : > { %v2702_v31 = vrot.slane %v2701_v30, 4 }
0x16d5   : > { %v2703_v32 = vmax.f32 %v2701_v30, %v2702_v31 }
0x16d7   : > { %v2704_v33 = vrot.slane %v2703_v32, 2 }
0x16d9   : > { %v2705_v34 = vmax.f32 %v2703_v32, %v2704_v33 }
0x16db   : > { %v2706_v35 = vrot.slane %v2705_v34, 1 }
0x16dd   : > { %v2707_v36 = vmax.f32 %v2705_v34, %v2706_v35 }
0x16df   : > { %4652 = vpush %v2707_v36 }
0x170d   : > { %v2778_v37 = vpop.f32.mrf.mxu1 }
0x170e   : > { %v2779_v38 = vadd.f32 %v5226_v19, %v2778_v37 }
0x170f   : > { %v4475_v39 = vpop.f32.mrf.mxu1 }
0x1710   : > { %v2783_v40 = vadd.f32 %v2779_v38, %v2694_v27  ;;  %s4653_s23 = spop %4652  ;;  %v2790_v41 = vsub.f32 0.0, %v2779_v38  ;;  %v2782_v42 = vsub.f32 %v2711_v51, %v2779_v38 }
0x1711   : > { %p2709_p12 = scmp.lt.f32.partialorder %s4653_s23, 0.001 }
0x1712   : > { %2791 = vmax.xlane.f32.xlu1 %v2790_v41  ;;  %v2784_v43 = vmax.f32 %v2783_v40, 0.0 }
0x1713   : > { %p6854_p13 = por %p2709_p12, %p6811_p11 }
0x1714   : > { %v2802_v44 = vadd.f32 %v2784_v43, %v2782_v42  ;;  %v2785_v45 = vsub.f32 %v2783_v40, %v2784_v43 }
0x1715   : > { %s2786_s1 = scalar_select %p6854_p13, 1, 0 }
0x1716   : > { %4509 = vmatmul.mubr.f32.vlgmr.msra.gmra.mxu0 %v2802_v44 }
0x1717   : > { %v2787_v46 = vstv %s2786_s1  ;;  %4547 = vmatpush3.msra.mxu0 %v5221_v18  ;;  %4578 = vmatprep.mubr.msk.f32.mxu0 %vm5112_vm10, %v5111_v47 }
0x1718   : > { %vm2788_vm14 = vcmp.eq.s32.totalorder %v2787_v46, 1  ;;  %4548 = vmatprep.subr.mxu0 %v5111_v47 }
0x1719   : > { %v2789_v0 = vsel %vm2788_vm14, %v2698_v29, %v2779_v38  ;;  %4549 = vmatpush3.msra.mxu0 %v5219_v17 }
0x171a   : > { %4550 = vmatprep.subr.mxu0 %v5111_v47 }
0x171b   : > { %4551 = vmatpush3.msra.mxu0 %v5217_v16 }
0x171c   : > { %4552 = vmatprep.subr.mxu0 %v5111_v47 }
0x171d   : > { %4553 = vmatpush3.msra.mxu0 %v5215_v15 }
0x171e   : > { %4554 = vmatprep.subr.mxu0 %v5111_v47 }
0x171f   : > { %4555 = vmatpush3.msra.mxu0 %v5213_v14 }
0x1720   : > { %4556 = vmatprep.subr.mxu0 %v5111_v47 }
0x1721   : > { %4557 = vmatpush3.msra.mxu0 %v5211_v13 }
0x1722   : > { %4558 = vmatprep.subr.mxu0 %v5111_v47 }
0x1723   : > { %4559 = vmatpush3.msra.mxu0 %v5209_v12 }
0x1724   : > { %4560 = vmatprep.subr.mxu0 %v5111_v47 }
0x1725   : > { %4561 = vmatpush3.msra.mxu0 %v5207_v11 }
0x1726   : > { %4562 = vmatprep.subr.mxu0 %v5111_v47 }
0x1727   : > { %4563 = vmatpush3.msra.mxu0 %v5205_v10 }
0x1728   : > { %4564 = vmatprep.subr.mxu0 %v5111_v47 }
0x1729   : > { %4565 = vmatpush3.msra.mxu0 %v5203_v9 }
0x172a   : > { %4566 = vmatprep.subr.mxu0 %v5111_v47 }
0x172b   : > { %4567 = vmatpush3.msra.mxu0 %v5201_v8 }
0x172c   : > { %4568 = vmatprep.subr.mxu0 %v5111_v47 }
0x172d   : > { %4569 = vmatpush3.msra.mxu0 %v5199_v7 }
0x172e   : > { %4570 = vmatprep.subr.mxu0 %v5111_v47 }
0x172f   : > { %4571 = vmatpush3.msra.mxu0 %v5197_v6 }
0x1730   : > { %4572 = vmatprep.subr.mxu0 %v5111_v47 }
0x1731   : > { %4573 = vmatpush3.msra.mxu0 %v5195_v5 }
0x1732   : > { %4574 = vmatprep.subr.mxu0 %v5111_v47 }
0x1733   : > { %4575 = vmatpush3.msra.mxu0 %v5193_v4 }
0x1734   : > { %4576 = vmatprep.subr.mxu0 %v5111_v47 }
0x1735   : > { %4577 = vmatpush3.msra.mxu0 %v7346_v28 }
0x179b   : > { %v2792_v57 = vpop.xlane.xlu1 %2791 }
0x179c   : > { %v2793_v60 = vrot.slane %v2792_v57, 4 }
0x179e   : > { %v2794_v49 = vmax.f32 %v2792_v57, %v2793_v60 }
0x17a0   : > { %v2795_v59 = vrot.slane %v2794_v49, 2 }
0x17a2   : > { %v2796_v48 = vmax.f32 %v2794_v49, %v2795_v59 }
0x17a4   : > { %v2797_v52 = vrot.slane %v2796_v48, 1 }
0x17a6   : > { %v2798_v61 = vmax.f32 %v2796_v48, %v2797_v52 }
0x17a8   : > { %4654 = vpush %v2798_v61 }
0x17d6   : > { %v2869_v53 = vpop.f32.mrf.mxu0 }
0x17d7   : > { %v2870_v55 = vadd.f32 %v5226_v19, %v2869_v53 }
0x17d8   : > { %v4510_v1 = vpop.f32.mrf.mxu0 }
0x17d9   : > { %v2874_v56 = vadd.f32 %v2870_v55, %v2785_v45  ;;  %s4655_s25 = spop %4654  ;;  %v2881_v58 = vsub.f32 0.0, %v2870_v55  ;;  %v2873_v62 = vsub.f32 %v2802_v44, %v2870_v55 }
0x17da   : > { %p2800_p0 = scmp.lt.f32.partialorder %s4655_s25, 0.001 }
0x17db   : > { %2882 = vmax.xlane.f32.xlu0 %v2881_v58  ;;  %v2875_v3 = vmax.f32 %v2874_v56, 0.0 }
0x17dc   : > { %p6896_p1 = por %p2800_p0, %p6854_p13 }
0x17dd   : > { %v2893_v63 = vadd.f32 %v2875_v3, %v2873_v62  ;;  %v2876_v20 = vsub.f32 %v2874_v56, %v2875_v3 }
0x17de   : > { %s2877_s27 = scalar_select %p6896_p1, 1, 0 }
0x17df   : > { %4544 = vmatmul.mubr.f32.vlgmr.msra.gmra.mxu1 %v2893_v63 }
0x17e0   : > { %v2878_v21 = vstv %s2877_s27  ;;  %4582 = vmatpush3.msra.mxu1 %v5221_v18  ;;  %4613 = vmatprep.mubr.msk.f32.mxu1 %vm5112_vm10, %v5111_v47 }
0x17e1   : > { %vm2879_vm15 = vcmp.eq.s32.totalorder %v2878_v21, 1  ;;  %4583 = vmatprep.subr.mxu1 %v5111_v47 }
0x17e2   : > { %v2880_v22 = vsel %vm2879_vm15, %v2789_v0, %v2870_v55  ;;  %4584 = vmatpush3.msra.mxu1 %v5219_v17 }
0x17e3   : > { %4585 = vmatprep.subr.mxu1 %v5111_v47 }
0x17e4   : > { %4586 = vmatpush3.msra.mxu1 %v5217_v16 }
0x17e5   : > { %4587 = vmatprep.subr.mxu1 %v5111_v47 }
0x17e6   : > { %4588 = vmatpush3.msra.mxu1 %v5215_v15 }
0x17e7   : > { %4589 = vmatprep.subr.mxu1 %v5111_v47 }
0x17e8   : > { %4590 = vmatpush3.msra.mxu1 %v5213_v14 }
0x17e9   : > { %4591 = vmatprep.subr.mxu1 %v5111_v47 }
0x17ea   : > { %4592 = vmatpush3.msra.mxu1 %v5211_v13 }
0x17eb   : > { %4593 = vmatprep.subr.mxu1 %v5111_v47 }
0x17ec   : > { %4594 = vmatpush3.msra.mxu1 %v5209_v12 }
0x17ed   : > { %4595 = vmatprep.subr.mxu1 %v5111_v47 }
0x17ee   : > { %4596 = vmatpush3.msra.mxu1 %v5207_v11 }
0x17ef   : > { %4597 = vmatprep.subr.mxu1 %v5111_v47 }
0x17f0   : > { %4598 = vmatpush3.msra.mxu1 %v5205_v10 }
0x17f1   : > { %4599 = vmatprep.subr.mxu1 %v5111_v47 }
0x17f2   : > { %4600 = vmatpush3.msra.mxu1 %v5203_v9 }
0x17f3   : > { %4601 = vmatprep.subr.mxu1 %v5111_v47 }
0x17f4   : > { %4602 = vmatpush3.msra.mxu1 %v5201_v8 }
0x17f5   : > { %4603 = vmatprep.subr.mxu1 %v5111_v47 }
0x17f6   : > { %4604 = vmatpush3.msra.mxu1 %v5199_v7 }
0x17f7   : > { %4605 = vmatprep.subr.mxu1 %v5111_v47 }
0x17f8   : > { %4606 = vmatpush3.msra.mxu1 %v5197_v6 }
0x17f9   : > { %4607 = vmatprep.subr.mxu1 %v5111_v47 }
0x17fa   : > { %4608 = vmatpush3.msra.mxu1 %v5195_v5 }
0x17fb   : > { %4609 = vmatprep.subr.mxu1 %v5111_v47 }
0x17fc   : > { %4610 = vmatpush3.msra.mxu1 %v5193_v4 }
0x17fd   : > { %4611 = vmatprep.subr.mxu1 %v5111_v47 }
0x17fe   : > { %4612 = vmatpush3.msra.mxu1 %v7346_v28 }
0x1864   : > { %v2883_v23 = vpop.xlane.xlu0 %2882 }
0x1865   : > { %v2884_v54 = vrot.slane %v2883_v23, 4 }
0x1867   : > { %v2885_v24 = vmax.f32 %v2883_v23, %v2884_v54 }
0x1869   : > { %v2886_v25 = vrot.slane %v2885_v24, 2 }
0x186b   : > { %v2887_v26 = vmax.f32 %v2885_v24, %v2886_v25 }
0x186d   : > { %v2888_v2 = vrot.slane %v2887_v26, 1 }
0x186f   : > { %v2889_v51 = vmax.f32 %v2887_v26, %v2888_v2 }
0x1871   : > { %4656 = vpush %v2889_v51 }
0x189f   : > { %v2960_v27 = vpop.f32.mrf.mxu1 }
0x18a0   : > { %v2961_v50 = vadd.f32 %v5226_v19, %v2960_v27 }
0x18a1   : > { %v4545_v29 = vpop.f32.mrf.mxu1 }
0x18a2   : > { %v2965_v30 = vadd.f32 %v2961_v50, %v2876_v20  ;;  %s4657_s28 = spop %4656  ;;  %v2972_v31 = vsub.f32 0.0, %v2961_v50  ;;  %v2964_v47 = vsub.f32 %v2893_v63, %v2961_v50 }
0x18a3   : > { %p2891_p2 = scmp.lt.f32.partialorder %s4657_s28, 0.001 }
0x18a4   : > { %2973 = vmax.xlane.f32.xlu1 %v2972_v31  ;;  %v2966_v28 = vmax.f32 %v2965_v30, 0.0 }
0x18a5   : > { %p6938_p3 = por %p2891_p2, %p6896_p1 }
0x18a6   : > { %v2984_v32 = vadd.f32 %v2966_v28, %v2964_v47  ;;  %v2967_v33 = vsub.f32 %v2965_v30, %v2966_v28 }
0x18a7   : > { %s2968_s30 = scalar_select %p6938_p3, 1, 0 }
0x18a8   : > { %4579 = vmatmul.mubr.f32.vlgmr.msra.gmra.mxu0 %v2984_v32 }
0x18a9   : > { %v2969_v34 = vstv %s2968_s30 }
0x18aa   : > { %vm2970_vm1 = vcmp.eq.s32.totalorder %v2969_v34, 1 }
0x18ab   : > { %v2971_v35 = vsel %vm2970_vm1, %v2880_v22, %v2961_v50 }
0x192d   : > { %v2974_v36 = vpop.xlane.xlu1 %2973 }
0x192e   : > { %v2975_v37 = vrot.slane %v2974_v36, 4 }
0x1930   : > { %v2976_v38 = vmax.f32 %v2974_v36, %v2975_v37 }
0x1932   : > { %v2977_v39 = vrot.slane %v2976_v38, 2 }
0x1934   : > { %v2978_v40 = vmax.f32 %v2976_v38, %v2977_v39 }
0x1936   : > { %v2979_v41 = vrot.slane %v2978_v40, 1 }
0x1938   : > { %v2980_v42 = vmax.f32 %v2978_v40, %v2979_v41 }
0x193a   : > { %4658 = vpush %v2980_v42 }
0x1968   : > { %v3051_v43 = vpop.f32.mrf.mxu0 }
0x1969   : > { %v3052_v44 = vadd.f32 %v5226_v19, %v3051_v43 }
0x196a   : > { %v4580_v45 = vpop.f32.mrf.mxu0 }
0x196b   : > { %v3056_v46 = vadd.f32 %v3052_v44, %v2967_v33  ;;  %s4659_s10 = spop %4658  ;;  %v3063_v0 = vsub.f32 0.0, %v3052_v44  ;;  %v3055_v57 = vsub.f32 %v2984_v32, %v3052_v44 }
0x196c   : > { %p2982_p4 = scmp.lt.f32.partialorder %s4659_s10, 0.001 }
0x196d   : > { %3064 = vmax.xlane.f32.xlu0 %v3063_v0  ;;  %v3057_v60 = vmax.f32 %v3056_v46, 0.0 }
0x196e   : > { %p6947_p5 = por %p2982_p4, %p6938_p3 }
0x196f   : > { %v3075_v49 = vadd.f32 %v3057_v60, %v3055_v57  ;;  %v3058_v59 = vsub.f32 %v3056_v46, %v3057_v60 }
0x1970   : > { %s3059_s11 = scalar_select %p6947_p5, 1, 0 }
0x1971   : > { %4614 = vmatmul.mubr.f32.vlgmr.msra.gmra.mxu1 %v3075_v49 }
0x1972   : > { %v3060_v48 = vstv %s3059_s11 }
0x1973   : > { %vm3061_vm2 = vcmp.eq.s32.totalorder %v3060_v48, 1 }
0x1974   : > { %v3062_v52 = vsel %vm3061_vm2, %v2971_v35, %v3052_v44 }
0x19f6   : > { %v3065_v61 = vpop.xlane.xlu0 %3064 }
0x19f7   : > { %v3066_v53 = vrot.slane %v3065_v61, 4 }
0x19f9   : > { %v3067_v55 = vmax.f32 %v3065_v61, %v3066_v53 }
0x19fb   : > { %v3068_v1 = vrot.slane %v3067_v55, 2 }
0x19fd   : > { %v3069_v56 = vmax.f32 %v3067_v55, %v3068_v1 }
0x19ff   : > { %v3070_v58 = vrot.slane %v3069_v56, 1 }
0x1a01   : > { %v3071_v62 = vmax.f32 %v3069_v56, %v3070_v58 }
0x1a03   : > { %4660 = vpush %v3071_v62 }
0x1a31   : > { %v3142_v3 = vpop.f32.mrf.mxu1 }
0x1a32   : > { %v3143_v63 = vadd.f32 %v5226_v19, %v3142_v3 }
0x1a33   : > { %v4615_v20 = vpop.f32.mrf.mxu1 }
0x1a34   : > { %v3146_v27 = vsub.f32 %v3075_v49, %v3143_v63   ;;  %v3147_v21 = vadd.f32 %v3143_v63, %v3058_v59  ;;  %s4661_s14 = spop %4660  ;;  %v3154_v22 = vsub.f32 0.0, %v3143_v63 }
0x1a35   : > { %p3073_p6 = scmp.lt.f32.partialorder %s4661_s14, 0.001 }
0x1a36   : > { %v3148_v26 = vmax.f32 %v3147_v21, 0.0   ;;  %3155 = vmax.xlane.f32.xlu1 %v3154_v22 }
0x1a37   : > { %p6956_p7 = por %p3073_p6, %p6947_p5 }
0x1a38   : > { %v3149_v51 = vsub.f32 %v3147_v21, %v3148_v26  }
0x1a39   : > { %s3150_s15 = scalar_select %p6956_p7, 1, 0 }
0x1a3b   : > { %v3151_v23 = vstv %s3150_s15 }
0x1a3c   : > { %vm3152_vm3 = vcmp.eq.s32.totalorder %v3151_v23, 1 }
0x1a3d   : > { %v3153_v54 = vsel %vm3152_vm3, %v3062_v52, %v3143_v63  }
0x1abf   : > { %v3156_v24 = vpop.xlane.xlu1 %3155 }
0x1ac0   : > { %v3157_v25 = vrot.slane %v3156_v24, 4 }
0x1ac2   : > { %v3158_v2 = vmax.f32 %v3156_v24, %v3157_v25 }
0x1ac4   : > { %v3159_v50 = vrot.slane %v3158_v2, 2 }
0x1ac6   : > { %v3160_v29 = vmax.f32 %v3158_v2, %v3159_v50  ;;  %v7356_v2 = vmov %v3153_v54 }
0x1ac8   : > { %v3161_v30 = vrot.slane %v3160_v29, 1 }
0x1aca   : > { %v3162_v31 = vmax.f32 %v3160_v29, %v3161_v30 }
0x1acc   : > { %4662 = vpush %v3162_v31 }
0x1afd   : > { %s4663_s3 = spop %4662 }
0x1afe   : > { %p3164_p8 = scmp.lt.f32.partialorder %s4663_s3, 0.001 }
0x1b00   : > { %p3165_p7 = por %p3164_p8, %p6956_p7  }
0x1b02   : > { %p2432_p9 = pneg %p3165_p7 }
0x1b04   : > { %p2434_p11 = pnand %p2433_p10, %p2432_p9 }
0x1b05   :  { %v3167_v28 = vsel (%p2434_p11), %vm248_vm0, %v3153_v54, 0.0  ;;  %s5113_s2 = smov (%p2434_p11), [#allocation11]  }
0x1b06   :  { %2437 = sbr.rel (!%p2434_p11) target bundleno = 5073 (0x13d1), region = 119  ;;  %3168 = vst [vmem:[#allocation11] sm:$0xff] (%p2434_p11), %v3167_v28  ;;  %s3175_s12 = sshll.u32 (%p2434_p11), %s5113_s2, 4  ;;  %s3176_s12 = int_to_ptr.vmem [resolvable:$true] %s3175_s12 }
0x1b07   :  { %s4925_s13 = scalar_lea.vmem (%p2434_p11), %s3176_s12, 128  ;;  %p4930_p13 = scmp.lt.s32.totalorder (%p2434_p11), %s3176_s12, %s3176_s12 }
0x1b08   :  { %p4926_p12 = scmp.ne.s32.totalorder (%p2434_p11), %s3176_s12, %s4925_s13  ;;  %p4931_p0 = scmp.lt.s32.totalorder (%p2434_p11), %s4925_s13, %s4925_s13 }
0x1b0a   :  { %p4932_p1 = por (%p2434_p11), %p4931_p0, %p4930_p13 }
0x1b0c   :  { %p4933_p2 = pnand %p4932_p1, %p4926_p12 }
0x1b0e   :  { %4936 = shalt.err (!%p4933_p2)
}
0x1b0f   :  { %3178 = dma.vmem_to_hbm [thread:$0]  %s3176_s12, 128, %s6993_s9, [#allocation4]  }
0x1b10   :  { %5023 = dma.done.wait [#allocation4], 128  }
0x1b11   :  { %5024 = vsyncadd [#allocation4], 4294967168 }
0x1b12   :  { %3182 = vsyncpa [#allocation3], 1 }
0x1b13   :  { %3183 = vsyncpa [#allocation6], 1 }
0x1b14   :  { %3184 = vsyncpa [#allocation9], 1 }
0x1b15   :  { %3185 = vsyncpa [#allocation4], 1 }

</bundles_post_ra>
